<compile_context>
chip_gen: v6e
topology: v6e:2x2x1
jax: 0.10.0
libtpu: 0.0.40
codegen_flags: <defaults>
</compile_context>

<pallas_src>
import jax
import jax.numpy as jnp
from jax.experimental import pallas as pl
from jax.experimental.pallas import tpu as pltpu


def _vac_sequence_kernel(h0_ref, c0_ref, feat_ref, prior_ref,
                         wh_ref, wkv_ref, v_ref, wg_ref, b_ref,
                         h_seq_ref, c_seq_ref):
  """One grid step = one full sequence (all T timesteps) of the cell."""
  B, H = h0_ref.shape
  BN, _ = feat_ref.shape
  N = BN // B
  T = prior_ref.shape[0]

  # ---- hoisted, h-independent work (once per sequence) ---------------------
  # Fused key/value projection: single 2-D matmul (B*N, C) @ (C, 2H).
  kv = jnp.dot(feat_ref[...], wkv_ref[...], preferred_element_type=jnp.float32)
  key = kv[:, :H].reshape(B, N, H)          # (B, N, H)
  value = kv[:, H:].reshape(B, N, H)        # (B, N, C); module requires C == H
  wh = wh_ref[...]                          # (H, H)
  v_row = v_ref[...]                        # (1, H)
  wg = wg_ref[...]                          # (C+H, 4H) = [Wih^T ; Whh^T]
  b = b_ref[...]                            # (1, 4H)   = b_ih + b_hh

  # ---- recurrent T-step loop, state carried in registers -------------------
  def step(t, carry):
    h, c = carry                                               # (B, H) each
    prior = prior_ref[t]                                       # (B, N)

    query = jnp.dot(h, wh, preferred_element_type=jnp.float32)        # (B, H)
    # Attention scores with N on the lane axis: (B, N).
    scores = jnp.sum(jnp.tanh(query[:, None, :] + key) * v_row, axis=-1)

    # softmax over N folded with prior weighting + normalization:
    #   x = Σ_n e·prior·value / max(Σ_n e·prior, 1e-5·Σ_n e)
    # (algebraically identical to softmax -> *prior -> clamp(1e-5) -> divide).
    m = jnp.max(scores, axis=-1, keepdims=True)                # (B, 1)
    e = jnp.exp(scores - m)                                    # (B, N)
    sum_e = jnp.sum(e, axis=-1, keepdims=True)                 # (B, 1)
    w = e * prior                                              # (B, N)
    num = jnp.sum(w[:, :, None] * value, axis=1)               # (B, C)
    den = jnp.maximum(jnp.sum(w, axis=-1, keepdims=True), 1e-5 * sum_e)
    x = num * pl.reciprocal(den, approx=True)                  # LSTM input

    # Fused LSTMCell gates: [x, h] @ [Wih^T ; Whh^T] + (b_ih + b_hh).
    xh = jnp.concatenate([x, h], axis=-1)                      # (B, C+H)
    gates = jnp.dot(xh, wg, preferred_element_type=jnp.float32) + b
    i_g = jax.nn.sigmoid(gates[:, 0 * H:1 * H])
    f_g = jax.nn.sigmoid(gates[:, 1 * H:2 * H])
    g_g = jnp.tanh(gates[:, 2 * H:3 * H])
    o_g = jax.nn.sigmoid(gates[:, 3 * H:4 * H])
    c_new = f_g * c + i_g * g_g
    h_new = o_g * jnp.tanh(c_new)

    # Per-step states go into the VMEM-resident (T, B, H) output block;
    # HBM writeback happens once per sequence.
    h_seq_ref[t] = h_new
    c_seq_ref[t] = c_new
    return h_new, c_new

  jax.lax.fori_loop(0, T, step, (h0_ref[...], c0_ref[...]), unroll=True)


def visual_attention_cell_sequence(h0, c0, feat_maps, prior_maps, params):
  """Runs the VisualAttentionCell for T steps over S independent sequences.

  h0, c0:      (S, B, H)     initial LSTM states per sequence
  feat_maps:   (S, N, B, C)  module layout (spatial, batch, channels), fixed per seq
  prior_maps:  (S, T, N, B)  module layout, one prior per timestep
  Returns (h_seq, c_seq): (S, T, B, H) states after every step.
  """
  S, N, B, C = feat_maps.shape
  T = prior_maps.shape[1]
  H = h0.shape[-1]
  # The module's .view(N, B, C) on the Wv projection requires attn == hidden.
  assert C == H, "VisualAttentionCell requires attn_size == hidden_size"

  # Lane-dense layouts (done once, outside the kernel):
  #   feat  -> (S, B*N, C) so key/value come from one flat 2-D matmul,
  #   prior -> (S, T, B, N) so softmax reductions run over the lane axis.
  feat_flat = jnp.transpose(feat_maps, (0, 2, 1, 3)).reshape(S, B * N, C)
  prior_bn = jnp.transpose(prior_maps, (0, 1, 3, 2))

  # Fused weights.
  wkv = jnp.concatenate([params["Wk"], params["Wv"]], axis=1)        # (C, 2H)
  wg = jnp.concatenate([params["Wih_t"], params["Whh_t"]], axis=0)   # (C+H, 4H)

  grid_spec = pltpu.PrefetchScalarGridSpec(
      num_scalar_prefetch=0,
      grid=(S,),
      in_specs=[
          pl.BlockSpec((None, B, H), lambda s: (s, 0, 0)),           # h0
          pl.BlockSpec((None, B, H), lambda s: (s, 0, 0)),           # c0
          pl.BlockSpec((None, B * N, C), lambda s: (s, 0, 0)),       # feat (flat)
          pl.BlockSpec((None, T, B, N), lambda s: (s, 0, 0, 0)),     # priors
          pl.BlockSpec((H, H), lambda s: (0, 0)),                    # Wh
          pl.BlockSpec((C, 2 * H), lambda s: (0, 0)),                # [Wk | Wv]
          pl.BlockSpec((1, H), lambda s: (0, 0)),                    # v^T
          pl.BlockSpec((C + H, 4 * H), lambda s: (0, 0)),            # gate weights
          pl.BlockSpec((1, 4 * H), lambda s: (0, 0)),                # gate bias
      ],
      out_specs=[
          pl.BlockSpec((None, T, B, H), lambda s: (s, 0, 0, 0)),     # h per step
          pl.BlockSpec((None, T, B, H), lambda s: (s, 0, 0, 0)),     # c per step
      ],
  )
  out_shape = (jax.ShapeDtypeStruct((S, T, B, H), jnp.float32),
               jax.ShapeDtypeStruct((S, T, B, H), jnp.float32))
  return pl.pallas_call(
      _vac_sequence_kernel,
      grid_spec=grid_spec,
      out_shape=out_shape,
      compiler_params=pltpu.CompilerParams(
          # Sequences are independent -> megacore parallel on v7x;
          # harmless no-op on single-TensorCore v5e / v6e.
          dimension_semantics=("parallel",)),
  )(h0, c0, feat_flat, prior_bn,
    params["Wh"], wkv, params["v_row"], wg, params["b"])


def visual_attention_cell(h, c, feat_map, prior_map, params):
  """One forward of the PyTorch module: hidden=(h, c), feat_map (N, B, C),
  prior_map (N, B) -> (h_new, c_new).  Degenerate S=1, T=1 sequence."""
  h_seq, c_seq = visual_attention_cell_sequence(
      h[None], c[None], feat_map[None], prior_map[None, None], params)
  return h_seq[0, 0], c_seq[0, 0]


def reference_step(h, c, feat_map, prior_map, params):
  """Pure-JAX mirror of the PyTorch VisualAttentionCell.forward (one step)."""
  H = h.shape[1]
  N, B, C = feat_map.shape
  query = h @ params["Wh"]
  key = (feat_map.reshape(-1, C) @ params["Wk"]).reshape(N, B, H)
  value = (feat_map.reshape(-1, C) @ params["Wv"]).reshape(N, B, C)
  scores = jnp.tanh(query + key).reshape(-1, H)
  scores = (scores @ params["v"]).reshape(N, B)
  scores = jax.nn.softmax(scores, axis=0)
  attn = scores * prior_map
  context = jnp.sum(attn[:, :, None] * value, axis=0)
  sum_w = jnp.clip(jnp.sum(attn, axis=0), 1e-5, None)[:, None]
  x = context / sum_w
  gates = x @ params["Wih_t"] + h @ params["Whh_t"] + params["b"]
  i_g = jax.nn.sigmoid(gates[:, 0 * H:1 * H])
  f_g = jax.nn.sigmoid(gates[:, 1 * H:2 * H])
  g_g = jnp.tanh(gates[:, 2 * H:3 * H])
  o_g = jax.nn.sigmoid(gates[:, 3 * H:4 * H])
  c_new = f_g * c + i_g * g_g
  h_new = o_g * jnp.tanh(c_new)
  return h_new, c_new


if __name__ == "__main__":
  H = 32    # hidden_size
  C = 32    # attn_size (must equal hidden_size: module's value .view(N,B,C))
  N = 16    # spatial positions
  B = 2     # batch
  S = 2     # independent sequences (parallel grid axis)
  T = 8     # recurrent timesteps per sequence

  key = jax.random.PRNGKey(0)
  ks = jax.random.split(key, 12)

  # Attention parameters (module declares zeros/empty; init deterministically
  # with small random values so the kernel exercises a non-degenerate path).
  Wh = 0.1 * jax.random.normal(ks[0], (H, H), jnp.float32)
  Wk = 0.1 * jax.random.normal(ks[1], (C, H), jnp.float32)
  Wv = 0.1 * jax.random.normal(ks[2], (C, H), jnp.float32)
  v = 0.1 * jax.random.normal(ks[3], (H, 1), jnp.float32)

  # LSTMCell parameters (PyTorch shapes: W_ih (4H, C), W_hh (4H, H)).
  k_lstm = 1.0 / jnp.sqrt(H)
  W_ih = jax.random.uniform(ks[4], (4 * H, C), jnp.float32, -k_lstm, k_lstm)
  W_hh = jax.random.uniform(ks[5], (4 * H, H), jnp.float32, -k_lstm, k_lstm)
  b_ih = jax.random.uniform(ks[6], (4 * H,), jnp.float32, -k_lstm, k_lstm)
  b_hh = jax.random.uniform(ks[7], (4 * H,), jnp.float32, -k_lstm, k_lstm)

  params = {
      "Wh": Wh, "Wk": Wk, "Wv": Wv,
      "v": v,                                  # (H, 1)  reference form
      "v_row": v.reshape(1, H),                # (1, H)  kernel form
      "Wih_t": W_ih.T,                         # (C, 4H)
      "Whh_t": W_hh.T,                         # (H, 4H)
      "b": (b_ih + b_hh).reshape(1, 4 * H),    # (1, 4H)
  }

  h0 = jax.random.normal(ks[8], (S, B, H), jnp.float32)
  c0 = jax.random.normal(ks[9], (S, B, H), jnp.float32)
  feat_maps = jax.random.normal(ks[10], (S, N, B, C), jnp.float32)
  prior_maps = jax.nn.softmax(
      jax.random.normal(ks[11], (S, T, N, B), jnp.float32), axis=2)

  # ---- optimized kernel: whole T-step recurrence in a single pallas_call ---
  h_seq, c_seq = visual_attention_cell_sequence(
      h0, c0, feat_maps, prior_maps, params)
  jax.block_until_ready((h_seq, c_seq))

  # ---- verify every step against the pure-JAX mirror of the PyTorch module.
  # Tolerance accounts for TPU reduced-precision matmul defaults and the
  # approx reciprocal accumulated across the 8-step recurrence; real layout /
  # gating bugs would produce O(0.1–1) errors.
  rtol = atol = 1e-2
  for s in range(S):
    h_r, c_r = h0[s], c0[s]
    for t in range(T):
      h_r, c_r = reference_step(h_r, c_r, feat_maps[s], prior_maps[s, t],
                                params)
      assert jnp.allclose(h_seq[s, t], h_r, rtol=rtol, atol=atol), (s, t, "h")
      assert jnp.allclose(c_seq[s, t], c_r, rtol=rtol, atol=atol), (s, t, "c")

  # ---- a single module forward (literal PyTorch forward) via the same kernel.
  h1, c1 = visual_attention_cell(h0[0], c0[0], feat_maps[0], prior_maps[0, 0],
                                 params)
  jax.block_until_ready((h1, c1))
  hr, cr = reference_step(h0[0], c0[0], feat_maps[0], prior_maps[0, 0], params)
  assert jnp.allclose(h1, hr, rtol=rtol, atol=atol), "single-step h mismatch"
  assert jnp.allclose(c1, cr, rtol=rtol, atol=atol), "single-step c mismatch"

  print("KERNEL_OK")
</pallas_src>

<mosaic_0001>
module attributes {stable_mosaic.version = 11 : i64} {
  func.func @_vac_sequence_kernel(%arg0: i32, %arg1: memref<1x2x32xf32, #tpu.memory_space<vmem>>, %arg2: memref<1x2x32xf32, #tpu.memory_space<vmem>>, %arg3: memref<1x32x32xf32, #tpu.memory_space<vmem>>, %arg4: memref<1x8x2x16xf32, #tpu.memory_space<vmem>>, %arg5: memref<32x32xf32, #tpu.memory_space<vmem>>, %arg6: memref<32x64xf32, #tpu.memory_space<vmem>>, %arg7: memref<1x32xf32, #tpu.memory_space<vmem>>, %arg8: memref<64x128xf32, #tpu.memory_space<vmem>>, %arg9: memref<1x128xf32, #tpu.memory_space<vmem>>, %arg10: memref<1x8x2x32xf32, #tpu.memory_space<vmem>>, %arg11: memref<1x8x2x32xf32, #tpu.memory_space<vmem>>) attributes {dimension_semantics = [#tpu.dimension_semantics<parallel>], iteration_bounds = array<i64: 2>, scalar_prefetch = 0 : i64, scratch_operands = 0 : i64, tpu.core_type = #tpu.core_type<tc>, window_params = [{transform_indices = @transform_0, window_bounds = array<i64: 1, 2, 32>}, {transform_indices = @transform_1, window_bounds = array<i64: 1, 2, 32>}, {transform_indices = @transform_2, window_bounds = array<i64: 1, 32, 32>}, {transform_indices = @transform_3, window_bounds = array<i64: 1, 8, 2, 16>}, {pipeline_mode = #tpu.pipeline_mode<synchronous>, transform_indices = @transform_4, window_bounds = array<i64: 32, 32>}, {pipeline_mode = #tpu.pipeline_mode<synchronous>, transform_indices = @transform_5, window_bounds = array<i64: 32, 64>}, {pipeline_mode = #tpu.pipeline_mode<synchronous>, transform_indices = @transform_6, window_bounds = array<i64: 1, 32>}, {pipeline_mode = #tpu.pipeline_mode<synchronous>, transform_indices = @transform_7, window_bounds = array<i64: 64, 128>}, {pipeline_mode = #tpu.pipeline_mode<synchronous>, transform_indices = @transform_8, window_bounds = array<i64: 1, 128>}, {transform_indices = @transform_9, window_bounds = array<i64: 1, 8, 2, 32>}, {transform_indices = @transform_10, window_bounds = array<i64: 1, 8, 2, 32>}]} {
    %c0 = arith.constant 0 : index
    %c0_0 = arith.constant 0 : index
    %c0_1 = arith.constant 0 : index
    %0 = vector.load %arg3[%c0, %c0_0, %c0_1] : memref<1x32x32xf32, #tpu.memory_space<vmem>>, vector<1x32x32xf32>
    %1 = vector.shape_cast %0 : vector<1x32x32xf32> to vector<32x32xf32>
    %c0_2 = arith.constant 0 : index
    %c0_3 = arith.constant 0 : index
    %2 = vector.load %arg6[%c0_2, %c0_3] : memref<32x64xf32, #tpu.memory_space<vmem>>, vector<32x64xf32>
    %cst = arith.constant dense<0.000000e+00> : vector<32x64xf32>
    %3 = tpu.matmul %1, %2, %cst {dimension_numbers = #tpu.dot_dimension_numbers<[1], [0], [0], [1], [0, 0, 1, 1], [], []>} : vector<32x32xf32>, vector<32x64xf32>, vector<32x64xf32> -> vector<32x64xf32>
    %4 = vector.extract_strided_slice %3 {offsets = [0, 0], sizes = [32, 32], strides = [1, 1]} : vector<32x64xf32> to vector<32x32xf32>
    %5 = vector.shape_cast %4 : vector<32x32xf32> to vector<2x16x32xf32>
    %6 = vector.extract_strided_slice %3 {offsets = [0, 32], sizes = [32, 32], strides = [1, 1]} : vector<32x64xf32> to vector<32x32xf32>
    %7 = vector.shape_cast %6 : vector<32x32xf32> to vector<2x16x32xf32>
    %c0_4 = arith.constant 0 : index
    %c0_5 = arith.constant 0 : index
    %8 = vector.load %arg5[%c0_4, %c0_5] : memref<32x32xf32, #tpu.memory_space<vmem>>, vector<32x32xf32>
    %c0_6 = arith.constant 0 : index
    %c0_7 = arith.constant 0 : index
    %9 = vector.load %arg7[%c0_6, %c0_7] : memref<1x32xf32, #tpu.memory_space<vmem>>, vector<1x32xf32>
    %c0_8 = arith.constant 0 : index
    %c0_9 = arith.constant 0 : index
    %10 = vector.load %arg8[%c0_8, %c0_9] : memref<64x128xf32, #tpu.memory_space<vmem>>, vector<64x128xf32>
    %c0_10 = arith.constant 0 : index
    %c0_11 = arith.constant 0 : index
    %11 = vector.load %arg9[%c0_10, %c0_11] : memref<1x128xf32, #tpu.memory_space<vmem>>, vector<1x128xf32>
    %c0_12 = arith.constant 0 : index
    %c0_13 = arith.constant 0 : index
    %c0_14 = arith.constant 0 : index
    %12 = vector.load %arg1[%c0_12, %c0_13, %c0_14] : memref<1x2x32xf32, #tpu.memory_space<vmem>>, vector<1x2x32xf32>
    %13 = vector.shape_cast %12 : vector<1x2x32xf32> to vector<2x32xf32>
    %c0_15 = arith.constant 0 : index
    %c0_16 = arith.constant 0 : index
    %c0_17 = arith.constant 0 : index
    %14 = vector.load %arg2[%c0_15, %c0_16, %c0_17] : memref<1x2x32xf32, #tpu.memory_space<vmem>>, vector<1x2x32xf32>
    %15 = vector.shape_cast %14 : vector<1x2x32xf32> to vector<2x32xf32>
    %c0_i32 = arith.constant 0 : i32
    %c0_18 = arith.constant 0 : index
    %16 = arith.index_cast %c0_i32 : i32 to index
    %c0_19 = arith.constant 0 : index
    %c0_20 = arith.constant 0 : index
    %17 = vector.load %arg4[%c0_18, %16, %c0_19, %c0_20] : memref<1x8x2x16xf32, #tpu.memory_space<vmem>>, vector<1x1x2x16xf32>
    %18 = vector.shape_cast %17 : vector<1x1x2x16xf32> to vector<2x16xf32>
    %cst_21 = arith.constant dense<0.000000e+00> : vector<2x32xf32>
    %19 = tpu.matmul %13, %8, %cst_21 {dimension_numbers = #tpu.dot_dimension_numbers<[1], [0], [0], [1], [0, 0, 1, 1], [], []>} : vector<2x32xf32>, vector<32x32xf32>, vector<2x32xf32> -> vector<2x32xf32>
    %20 = vector.shape_cast %19 : vector<2x32xf32> to vector<2x1x32xf32>
    %21 = vector.broadcast %20 : vector<2x1x32xf32> to vector<2x16x32xf32>
    %22 = arith.addf %21, %5 : vector<2x16x32xf32>
    %23 = math.tanh %22 : vector<2x16x32xf32>
    %24 = vector.shape_cast %9 : vector<1x32xf32> to vector<1x1x32xf32>
    %25 = vector.broadcast %24 : vector<1x1x32xf32> to vector<2x16x32xf32>
    %26 = arith.mulf %23, %25 : vector<2x16x32xf32>
    %cst_22 = arith.constant dense<0.000000e+00> : vector<2x16xf32>
    %27 = vector.multi_reduction <add>, %26, %cst_22 [2] : vector<2x16x32xf32> to vector<2x16xf32>
    %cst_23 = arith.constant dense<0xFF800000> : vector<2xf32>
    %28 = vector.multi_reduction <maximumf>, %27, %cst_23 [1] : vector<2x16xf32> to vector<2xf32>
    %29 = vector.shape_cast %28 : vector<2xf32> to vector<2x1xf32>
    %30 = vector.broadcast %29 : vector<2x1xf32> to vector<2x16xf32>
    %31 = arith.subf %27, %30 : vector<2x16xf32>
    %32 = math.exp %31 : vector<2x16xf32>
    %cst_24 = arith.constant dense<0.000000e+00> : vector<2xf32>
    %33 = vector.multi_reduction <add>, %32, %cst_24 [1] : vector<2x16xf32> to vector<2xf32>
    %34 = vector.shape_cast %33 : vector<2xf32> to vector<2x1xf32>
    %35 = arith.mulf %32, %18 : vector<2x16xf32>
    %36 = vector.shape_cast %35 : vector<2x16xf32> to vector<2x16x1xf32>
    %37 = vector.broadcast %36 : vector<2x16x1xf32> to vector<2x16x32xf32>
    %38 = arith.mulf %37, %7 : vector<2x16x32xf32>
    %cst_25 = arith.constant dense<0.000000e+00> : vector<2x32xf32>
    %39 = vector.multi_reduction <add>, %38, %cst_25 [1] : vector<2x16x32xf32> to vector<2x32xf32>
    %cst_26 = arith.constant dense<0.000000e+00> : vector<2xf32>
    %40 = vector.multi_reduction <add>, %35, %cst_26 [1] : vector<2x16xf32> to vector<2xf32>
    %41 = vector.shape_cast %40 : vector<2xf32> to vector<2x1xf32>
    %cst_27 = arith.constant 9.99999974E-6 : f32
    %42 = vector.broadcast %cst_27 : f32 to vector<2x1xf32>
    %43 = arith.mulf %42, %34 : vector<2x1xf32>
    %44 = arith.maximumf %41, %43 : vector<2x1xf32>
    %45 = tpu.reciprocal %44 {approx = true} : vector<2x1xf32> -> vector<2x1xf32>
    %46 = vector.broadcast %45 : vector<2x1xf32> to vector<2x32xf32>
    %47 = arith.mulf %39, %46 : vector<2x32xf32>
    %48 = tpu.concatenate %47, %13 in 1 : vector<2x32xf32>, vector<2x32xf32> -> vector<2x64xf32>
    %cst_28 = arith.constant dense<0.000000e+00> : vector<2x128xf32>
    %49 = tpu.matmul %48, %10, %cst_28 {dimension_numbers = #tpu.dot_dimension_numbers<[1], [0], [0], [1], [0, 0, 1, 1], [], []>} : vector<2x64xf32>, vector<64x128xf32>, vector<2x128xf32> -> vector<2x128xf32>
    %50 = vector.broadcast %11 : vector<1x128xf32> to vector<2x128xf32>
    %51 = arith.addf %49, %50 : vector<2x128xf32>
    %52 = vector.extract_strided_slice %51 {offsets = [0, 0], sizes = [2, 32], strides = [1, 1]} : vector<2x128xf32> to vector<2x32xf32>
    %53 = arith.negf %52 : vector<2x32xf32>
    %54 = math.exp %53 : vector<2x32xf32>
    %cst_29 = arith.constant 1.000000e+00 : f32
    %55 = vector.broadcast %cst_29 : f32 to vector<2x32xf32>
    %56 = arith.addf %55, %54 : vector<2x32xf32>
    %57 = arith.divf %55, %56 : vector<2x32xf32>
    %58 = vector.extract_strided_slice %51 {offsets = [0, 32], sizes = [2, 32], strides = [1, 1]} : vector<2x128xf32> to vector<2x32xf32>
    %59 = arith.negf %58 : vector<2x32xf32>
    %60 = math.exp %59 : vector<2x32xf32>
    %cst_30 = arith.constant 1.000000e+00 : f32
    %61 = vector.broadcast %cst_30 : f32 to vector<2x32xf32>
    %62 = arith.addf %61, %60 : vector<2x32xf32>
    %63 = arith.divf %61, %62 : vector<2x32xf32>
    %64 = vector.extract_strided_slice %51 {offsets = [0, 64], sizes = [2, 32], strides = [1, 1]} : vector<2x128xf32> to vector<2x32xf32>
    %65 = math.tanh %64 : vector<2x32xf32>
    %66 = vector.extract_strided_slice %51 {offsets = [0, 96], sizes = [2, 32], strides = [1, 1]} : vector<2x128xf32> to vector<2x32xf32>
    %67 = arith.negf %66 : vector<2x32xf32>
    %68 = math.exp %67 : vector<2x32xf32>
    %cst_31 = arith.constant 1.000000e+00 : f32
    %69 = vector.broadcast %cst_31 : f32 to vector<2x32xf32>
    %70 = arith.addf %69, %68 : vector<2x32xf32>
    %71 = arith.divf %69, %70 : vector<2x32xf32>
    %72 = arith.mulf %63, %15 : vector<2x32xf32>
    %73 = arith.mulf %57, %65 : vector<2x32xf32>
    %74 = arith.addf %72, %73 : vector<2x32xf32>
    %75 = math.tanh %74 : vector<2x32xf32>
    %76 = arith.mulf %71, %75 : vector<2x32xf32>
    %c0_32 = arith.constant 0 : index
    %77 = arith.index_cast %c0_i32 : i32 to index
    %c0_33 = arith.constant 0 : index
    %c0_34 = arith.constant 0 : index
    %78 = vector.load %arg10[%c0_32, %77, %c0_33, %c0_34] : memref<1x8x2x32xf32, #tpu.memory_space<vmem>>, vector<1x1x2x32xf32>
    %79 = vector.shape_cast %78 : vector<1x1x2x32xf32> to vector<2x32xf32>
    %80 = vector.shape_cast %76 : vector<2x32xf32> to vector<1x1x2x32xf32>
    tpu.vector_store %arg10[%c0_32, %77, %c0_33, %c0_34], %80 {strides = array<i32>} : memref<1x8x2x32xf32, #tpu.memory_space<vmem>>, vector<1x1x2x32xf32>,
    %c0_35 = arith.constant 0 : index
    %81 = arith.index_cast %c0_i32 : i32 to index
    %c0_36 = arith.constant 0 : index
    %c0_37 = arith.constant 0 : index
    %82 = vector.load %arg11[%c0_35, %81, %c0_36, %c0_37] : memref<1x8x2x32xf32, #tpu.memory_space<vmem>>, vector<1x1x2x32xf32>
    %83 = vector.shape_cast %82 : vector<1x1x2x32xf32> to vector<2x32xf32>
    %84 = vector.shape_cast %74 : vector<2x32xf32> to vector<1x1x2x32xf32>
    tpu.vector_store %arg11[%c0_35, %81, %c0_36, %c0_37], %84 {strides = array<i32>} : memref<1x8x2x32xf32, #tpu.memory_space<vmem>>, vector<1x1x2x32xf32>,
    %c1_i32 = arith.constant 1 : i32
    %c0_38 = arith.constant 0 : index
    %85 = arith.index_cast %c1_i32 : i32 to index
    %c0_39 = arith.constant 0 : index
    %c0_40 = arith.constant 0 : index
    %86 = vector.load %arg4[%c0_38, %85, %c0_39, %c0_40] : memref<1x8x2x16xf32, #tpu.memory_space<vmem>>, vector<1x1x2x16xf32>
    %87 = vector.shape_cast %86 : vector<1x1x2x16xf32> to vector<2x16xf32>
    %cst_41 = arith.constant dense<0.000000e+00> : vector<2x32xf32>
    %88 = tpu.matmul %76, %8, %cst_41 {dimension_numbers = #tpu.dot_dimension_numbers<[1], [0], [0], [1], [0, 0, 1, 1], [], []>} : vector<2x32xf32>, vector<32x32xf32>, vector<2x32xf32> -> vector<2x32xf32>
    %89 = vector.shape_cast %88 : vector<2x32xf32> to vector<2x1x32xf32>
    %90 = vector.broadcast %89 : vector<2x1x32xf32> to vector<2x16x32xf32>
    %91 = arith.addf %90, %5 : vector<2x16x32xf32>
    %92 = math.tanh %91 : vector<2x16x32xf32>
    %93 = vector.shape_cast %9 : vector<1x32xf32> to vector<1x1x32xf32>
    %94 = vector.broadcast %93 : vector<1x1x32xf32> to vector<2x16x32xf32>
    %95 = arith.mulf %92, %94 : vector<2x16x32xf32>
    %cst_42 = arith.constant dense<0.000000e+00> : vector<2x16xf32>
    %96 = vector.multi_reduction <add>, %95, %cst_42 [2] : vector<2x16x32xf32> to vector<2x16xf32>
    %cst_43 = arith.constant dense<0xFF800000> : vector<2xf32>
    %97 = vector.multi_reduction <maximumf>, %96, %cst_43 [1] : vector<2x16xf32> to vector<2xf32>
    %98 = vector.shape_cast %97 : vector<2xf32> to vector<2x1xf32>
    %99 = vector.broadcast %98 : vector<2x1xf32> to vector<2x16xf32>
    %100 = arith.subf %96, %99 : vector<2x16xf32>
    %101 = math.exp %100 : vector<2x16xf32>
    %cst_44 = arith.constant dense<0.000000e+00> : vector<2xf32>
    %102 = vector.multi_reduction <add>, %101, %cst_44 [1] : vector<2x16xf32> to vector<2xf32>
    %103 = vector.shape_cast %102 : vector<2xf32> to vector<2x1xf32>
    %104 = arith.mulf %101, %87 : vector<2x16xf32>
    %105 = vector.shape_cast %104 : vector<2x16xf32> to vector<2x16x1xf32>
    %106 = vector.broadcast %105 : vector<2x16x1xf32> to vector<2x16x32xf32>
    %107 = arith.mulf %106, %7 : vector<2x16x32xf32>
    %cst_45 = arith.constant dense<0.000000e+00> : vector<2x32xf32>
    %108 = vector.multi_reduction <add>, %107, %cst_45 [1] : vector<2x16x32xf32> to vector<2x32xf32>
    %cst_46 = arith.constant dense<0.000000e+00> : vector<2xf32>
    %109 = vector.multi_reduction <add>, %104, %cst_46 [1] : vector<2x16xf32> to vector<2xf32>
    %110 = vector.shape_cast %109 : vector<2xf32> to vector<2x1xf32>
    %cst_47 = arith.constant 9.99999974E-6 : f32
    %111 = vector.broadcast %cst_47 : f32 to vector<2x1xf32>
    %112 = arith.mulf %111, %103 : vector<2x1xf32>
    %113 = arith.maximumf %110, %112 : vector<2x1xf32>
    %114 = tpu.reciprocal %113 {approx = true} : vector<2x1xf32> -> vector<2x1xf32>
    %115 = vector.broadcast %114 : vector<2x1xf32> to vector<2x32xf32>
    %116 = arith.mulf %108, %115 : vector<2x32xf32>
    %117 = tpu.concatenate %116, %76 in 1 : vector<2x32xf32>, vector<2x32xf32> -> vector<2x64xf32>
    %cst_48 = arith.constant dense<0.000000e+00> : vector<2x128xf32>
    %118 = tpu.matmul %117, %10, %cst_48 {dimension_numbers = #tpu.dot_dimension_numbers<[1], [0], [0], [1], [0, 0, 1, 1], [], []>} : vector<2x64xf32>, vector<64x128xf32>, vector<2x128xf32> -> vector<2x128xf32>
    %119 = vector.broadcast %11 : vector<1x128xf32> to vector<2x128xf32>
    %120 = arith.addf %118, %119 : vector<2x128xf32>
    %121 = vector.extract_strided_slice %120 {offsets = [0, 0], sizes = [2, 32], strides = [1, 1]} : vector<2x128xf32> to vector<2x32xf32>
    %122 = arith.negf %121 : vector<2x32xf32>
    %123 = math.exp %122 : vector<2x32xf32>
    %cst_49 = arith.constant 1.000000e+00 : f32
    %124 = vector.broadcast %cst_49 : f32 to vector<2x32xf32>
    %125 = arith.addf %124, %123 : vector<2x32xf32>
    %126 = arith.divf %124, %125 : vector<2x32xf32>
    %127 = vector.extract_strided_slice %120 {offsets = [0, 32], sizes = [2, 32], strides = [1, 1]} : vector<2x128xf32> to vector<2x32xf32>
    %128 = arith.negf %127 : vector<2x32xf32>
    %129 = math.exp %128 : vector<2x32xf32>
    %cst_50 = arith.constant 1.000000e+00 : f32
    %130 = vector.broadcast %cst_50 : f32 to vector<2x32xf32>
    %131 = arith.addf %130, %129 : vector<2x32xf32>
    %132 = arith.divf %130, %131 : vector<2x32xf32>
    %133 = vector.extract_strided_slice %120 {offsets = [0, 64], sizes = [2, 32], strides = [1, 1]} : vector<2x128xf32> to vector<2x32xf32>
    %134 = math.tanh %133 : vector<2x32xf32>
    %135 = vector.extract_strided_slice %120 {offsets = [0, 96], sizes = [2, 32], strides = [1, 1]} : vector<2x128xf32> to vector<2x32xf32>
    %136 = arith.negf %135 : vector<2x32xf32>
    %137 = math.exp %136 : vector<2x32xf32>
    %cst_51 = arith.constant 1.000000e+00 : f32
    %138 = vector.broadcast %cst_51 : f32 to vector<2x32xf32>
    %139 = arith.addf %138, %137 : vector<2x32xf32>
    %140 = arith.divf %138, %139 : vector<2x32xf32>
    %141 = arith.mulf %132, %74 : vector<2x32xf32>
    %142 = arith.mulf %126, %134 : vector<2x32xf32>
    %143 = arith.addf %141, %142 : vector<2x32xf32>
    %144 = math.tanh %143 : vector<2x32xf32>
    %145 = arith.mulf %140, %144 : vector<2x32xf32>
    %c0_52 = arith.constant 0 : index
    %146 = arith.index_cast %c1_i32 : i32 to index
    %c0_53 = arith.constant 0 : index
    %c0_54 = arith.constant 0 : index
    %147 = vector.load %arg10[%c0_52, %146, %c0_53, %c0_54] : memref<1x8x2x32xf32, #tpu.memory_space<vmem>>, vector<1x1x2x32xf32>
    %148 = vector.shape_cast %147 : vector<1x1x2x32xf32> to vector<2x32xf32>
    %149 = vector.shape_cast %145 : vector<2x32xf32> to vector<1x1x2x32xf32>
    tpu.vector_store %arg10[%c0_52, %146, %c0_53, %c0_54], %149 {strides = array<i32>} : memref<1x8x2x32xf32, #tpu.memory_space<vmem>>, vector<1x1x2x32xf32>,
    %c0_55 = arith.constant 0 : index
    %150 = arith.index_cast %c1_i32 : i32 to index
    %c0_56 = arith.constant 0 : index
    %c0_57 = arith.constant 0 : index
    %151 = vector.load %arg11[%c0_55, %150, %c0_56, %c0_57] : memref<1x8x2x32xf32, #tpu.memory_space<vmem>>, vector<1x1x2x32xf32>
    %152 = vector.shape_cast %151 : vector<1x1x2x32xf32> to vector<2x32xf32>
    %153 = vector.shape_cast %143 : vector<2x32xf32> to vector<1x1x2x32xf32>
    tpu.vector_store %arg11[%c0_55, %150, %c0_56, %c0_57], %153 {strides = array<i32>} : memref<1x8x2x32xf32, #tpu.memory_space<vmem>>, vector<1x1x2x32xf32>,
    %c2_i32 = arith.constant 2 : i32
    %c0_58 = arith.constant 0 : index
    %154 = arith.index_cast %c2_i32 : i32 to index
    %c0_59 = arith.constant 0 : index
    %c0_60 = arith.constant 0 : index
    %155 = vector.load %arg4[%c0_58, %154, %c0_59, %c0_60] : memref<1x8x2x16xf32, #tpu.memory_space<vmem>>, vector<1x1x2x16xf32>
    %156 = vector.shape_cast %155 : vector<1x1x2x16xf32> to vector<2x16xf32>
    %cst_61 = arith.constant dense<0.000000e+00> : vector<2x32xf32>
    %157 = tpu.matmul %145, %8, %cst_61 {dimension_numbers = #tpu.dot_dimension_numbers<[1], [0], [0], [1], [0, 0, 1, 1], [], []>} : vector<2x32xf32>, vector<32x32xf32>, vector<2x32xf32> -> vector<2x32xf32>
    %158 = vector.shape_cast %157 : vector<2x32xf32> to vector<2x1x32xf32>
    %159 = vector.broadcast %158 : vector<2x1x32xf32> to vector<2x16x32xf32>
    %160 = arith.addf %159, %5 : vector<2x16x32xf32>
    %161 = math.tanh %160 : vector<2x16x32xf32>
    %162 = vector.shape_cast %9 : vector<1x32xf32> to vector<1x1x32xf32>
    %163 = vector.broadcast %162 : vector<1x1x32xf32> to vector<2x16x32xf32>
    %164 = arith.mulf %161, %163 : vector<2x16x32xf32>
    %cst_62 = arith.constant dense<0.000000e+00> : vector<2x16xf32>
    %165 = vector.multi_reduction <add>, %164, %cst_62 [2] : vector<2x16x32xf32> to vector<2x16xf32>
    %cst_63 = arith.constant dense<0xFF800000> : vector<2xf32>
    %166 = vector.multi_reduction <maximumf>, %165, %cst_63 [1] : vector<2x16xf32> to vector<2xf32>
    %167 = vector.shape_cast %166 : vector<2xf32> to vector<2x1xf32>
    %168 = vector.broadcast %167 : vector<2x1xf32> to vector<2x16xf32>
    %169 = arith.subf %165, %168 : vector<2x16xf32>
    %170 = math.exp %169 : vector<2x16xf32>
    %cst_64 = arith.constant dense<0.000000e+00> : vector<2xf32>
    %171 = vector.multi_reduction <add>, %170, %cst_64 [1] : vector<2x16xf32> to vector<2xf32>
    %172 = vector.shape_cast %171 : vector<2xf32> to vector<2x1xf32>
    %173 = arith.mulf %170, %156 : vector<2x16xf32>
    %174 = vector.shape_cast %173 : vector<2x16xf32> to vector<2x16x1xf32>
    %175 = vector.broadcast %174 : vector<2x16x1xf32> to vector<2x16x32xf32>
    %176 = arith.mulf %175, %7 : vector<2x16x32xf32>
    %cst_65 = arith.constant dense<0.000000e+00> : vector<2x32xf32>
    %177 = vector.multi_reduction <add>, %176, %cst_65 [1] : vector<2x16x32xf32> to vector<2x32xf32>
    %cst_66 = arith.constant dense<0.000000e+00> : vector<2xf32>
    %178 = vector.multi_reduction <add>, %173, %cst_66 [1] : vector<2x16xf32> to vector<2xf32>
    %179 = vector.shape_cast %178 : vector<2xf32> to vector<2x1xf32>
    %cst_67 = arith.constant 9.99999974E-6 : f32
    %180 = vector.broadcast %cst_67 : f32 to vector<2x1xf32>
    %181 = arith.mulf %180, %172 : vector<2x1xf32>
    %182 = arith.maximumf %179, %181 : vector<2x1xf32>
    %183 = tpu.reciprocal %182 {approx = true} : vector<2x1xf32> -> vector<2x1xf32>
    %184 = vector.broadcast %183 : vector<2x1xf32> to vector<2x32xf32>
    %185 = arith.mulf %177, %184 : vector<2x32xf32>
    %186 = tpu.concatenate %185, %145 in 1 : vector<2x32xf32>, vector<2x32xf32> -> vector<2x64xf32>
    %cst_68 = arith.constant dense<0.000000e+00> : vector<2x128xf32>
    %187 = tpu.matmul %186, %10, %cst_68 {dimension_numbers = #tpu.dot_dimension_numbers<[1], [0], [0], [1], [0, 0, 1, 1], [], []>} : vector<2x64xf32>, vector<64x128xf32>, vector<2x128xf32> -> vector<2x128xf32>
    %188 = vector.broadcast %11 : vector<1x128xf32> to vector<2x128xf32>
    %189 = arith.addf %187, %188 : vector<2x128xf32>
    %190 = vector.extract_strided_slice %189 {offsets = [0, 0], sizes = [2, 32], strides = [1, 1]} : vector<2x128xf32> to vector<2x32xf32>
    %191 = arith.negf %190 : vector<2x32xf32>
    %192 = math.exp %191 : vector<2x32xf32>
    %cst_69 = arith.constant 1.000000e+00 : f32
    %193 = vector.broadcast %cst_69 : f32 to vector<2x32xf32>
    %194 = arith.addf %193, %192 : vector<2x32xf32>
    %195 = arith.divf %193, %194 : vector<2x32xf32>
    %196 = vector.extract_strided_slice %189 {offsets = [0, 32], sizes = [2, 32], strides = [1, 1]} : vector<2x128xf32> to vector<2x32xf32>
    %197 = arith.negf %196 : vector<2x32xf32>
    %198 = math.exp %197 : vector<2x32xf32>
    %cst_70 = arith.constant 1.000000e+00 : f32
    %199 = vector.broadcast %cst_70 : f32 to vector<2x32xf32>
    %200 = arith.addf %199, %198 : vector<2x32xf32>
    %201 = arith.divf %199, %200 : vector<2x32xf32>
    %202 = vector.extract_strided_slice %189 {offsets = [0, 64], sizes = [2, 32], strides = [1, 1]} : vector<2x128xf32> to vector<2x32xf32>
    %203 = math.tanh %202 : vector<2x32xf32>
    %204 = vector.extract_strided_slice %189 {offsets = [0, 96], sizes = [2, 32], strides = [1, 1]} : vector<2x128xf32> to vector<2x32xf32>
    %205 = arith.negf %204 : vector<2x32xf32>
    %206 = math.exp %205 : vector<2x32xf32>
    %cst_71 = arith.constant 1.000000e+00 : f32
    %207 = vector.broadcast %cst_71 : f32 to vector<2x32xf32>
    %208 = arith.addf %207, %206 : vector<2x32xf32>
    %209 = arith.divf %207, %208 : vector<2x32xf32>
    %210 = arith.mulf %201, %143 : vector<2x32xf32>
    %211 = arith.mulf %195, %203 : vector<2x32xf32>
    %212 = arith.addf %210, %211 : vector<2x32xf32>
    %213 = math.tanh %212 : vector<2x32xf32>
    %214 = arith.mulf %209, %213 : vector<2x32xf32>
    %c0_72 = arith.constant 0 : index
    %215 = arith.index_cast %c2_i32 : i32 to index
    %c0_73 = arith.constant 0 : index
    %c0_74 = arith.constant 0 : index
    %216 = vector.load %arg10[%c0_72, %215, %c0_73, %c0_74] : memref<1x8x2x32xf32, #tpu.memory_space<vmem>>, vector<1x1x2x32xf32>
    %217 = vector.shape_cast %216 : vector<1x1x2x32xf32> to vector<2x32xf32>
    %218 = vector.shape_cast %214 : vector<2x32xf32> to vector<1x1x2x32xf32>
    tpu.vector_store %arg10[%c0_72, %215, %c0_73, %c0_74], %218 {strides = array<i32>} : memref<1x8x2x32xf32, #tpu.memory_space<vmem>>, vector<1x1x2x32xf32>,
    %c0_75 = arith.constant 0 : index
    %219 = arith.index_cast %c2_i32 : i32 to index
    %c0_76 = arith.constant 0 : index
    %c0_77 = arith.constant 0 : index
    %220 = vector.load %arg11[%c0_75, %219, %c0_76, %c0_77] : memref<1x8x2x32xf32, #tpu.memory_space<vmem>>, vector<1x1x2x32xf32>
    %221 = vector.shape_cast %220 : vector<1x1x2x32xf32> to vector<2x32xf32>
    %222 = vector.shape_cast %212 : vector<2x32xf32> to vector<1x1x2x32xf32>
    tpu.vector_store %arg11[%c0_75, %219, %c0_76, %c0_77], %222 {strides = array<i32>} : memref<1x8x2x32xf32, #tpu.memory_space<vmem>>, vector<1x1x2x32xf32>,
    %c3_i32 = arith.constant 3 : i32
    %c0_78 = arith.constant 0 : index
    %223 = arith.index_cast %c3_i32 : i32 to index
    %c0_79 = arith.constant 0 : index
    %c0_80 = arith.constant 0 : index
    %224 = vector.load %arg4[%c0_78, %223, %c0_79, %c0_80] : memref<1x8x2x16xf32, #tpu.memory_space<vmem>>, vector<1x1x2x16xf32>
    %225 = vector.shape_cast %224 : vector<1x1x2x16xf32> to vector<2x16xf32>
    %cst_81 = arith.constant dense<0.000000e+00> : vector<2x32xf32>
    %226 = tpu.matmul %214, %8, %cst_81 {dimension_numbers = #tpu.dot_dimension_numbers<[1], [0], [0], [1], [0, 0, 1, 1], [], []>} : vector<2x32xf32>, vector<32x32xf32>, vector<2x32xf32> -> vector<2x32xf32>
    %227 = vector.shape_cast %226 : vector<2x32xf32> to vector<2x1x32xf32>
    %228 = vector.broadcast %227 : vector<2x1x32xf32> to vector<2x16x32xf32>
    %229 = arith.addf %228, %5 : vector<2x16x32xf32>
    %230 = math.tanh %229 : vector<2x16x32xf32>
    %231 = vector.shape_cast %9 : vector<1x32xf32> to vector<1x1x32xf32>
    %232 = vector.broadcast %231 : vector<1x1x32xf32> to vector<2x16x32xf32>
    %233 = arith.mulf %230, %232 : vector<2x16x32xf32>
    %cst_82 = arith.constant dense<0.000000e+00> : vector<2x16xf32>
    %234 = vector.multi_reduction <add>, %233, %cst_82 [2] : vector<2x16x32xf32> to vector<2x16xf32>
    %cst_83 = arith.constant dense<0xFF800000> : vector<2xf32>
    %235 = vector.multi_reduction <maximumf>, %234, %cst_83 [1] : vector<2x16xf32> to vector<2xf32>
    %236 = vector.shape_cast %235 : vector<2xf32> to vector<2x1xf32>
    %237 = vector.broadcast %236 : vector<2x1xf32> to vector<2x16xf32>
    %238 = arith.subf %234, %237 : vector<2x16xf32>
    %239 = math.exp %238 : vector<2x16xf32>
    %cst_84 = arith.constant dense<0.000000e+00> : vector<2xf32>
    %240 = vector.multi_reduction <add>, %239, %cst_84 [1] : vector<2x16xf32> to vector<2xf32>
    %241 = vector.shape_cast %240 : vector<2xf32> to vector<2x1xf32>
    %242 = arith.mulf %239, %225 : vector<2x16xf32>
    %243 = vector.shape_cast %242 : vector<2x16xf32> to vector<2x16x1xf32>
    %244 = vector.broadcast %243 : vector<2x16x1xf32> to vector<2x16x32xf32>
    %245 = arith.mulf %244, %7 : vector<2x16x32xf32>
    %cst_85 = arith.constant dense<0.000000e+00> : vector<2x32xf32>
    %246 = vector.multi_reduction <add>, %245, %cst_85 [1] : vector<2x16x32xf32> to vector<2x32xf32>
    %cst_86 = arith.constant dense<0.000000e+00> : vector<2xf32>
    %247 = vector.multi_reduction <add>, %242, %cst_86 [1] : vector<2x16xf32> to vector<2xf32>
    %248 = vector.shape_cast %247 : vector<2xf32> to vector<2x1xf32>
    %cst_87 = arith.constant 9.99999974E-6 : f32
    %249 = vector.broadcast %cst_87 : f32 to vector<2x1xf32>
    %250 = arith.mulf %249, %241 : vector<2x1xf32>
    %251 = arith.maximumf %248, %250 : vector<2x1xf32>
    %252 = tpu.reciprocal %251 {approx = true} : vector<2x1xf32> -> vector<2x1xf32>
    %253 = vector.broadcast %252 : vector<2x1xf32> to vector<2x32xf32>
    %254 = arith.mulf %246, %253 : vector<2x32xf32>
    %255 = tpu.concatenate %254, %214 in 1 : vector<2x32xf32>, vector<2x32xf32> -> vector<2x64xf32>
    %cst_88 = arith.constant dense<0.000000e+00> : vector<2x128xf32>
    %256 = tpu.matmul %255, %10, %cst_88 {dimension_numbers = #tpu.dot_dimension_numbers<[1], [0], [0], [1], [0, 0, 1, 1], [], []>} : vector<2x64xf32>, vector<64x128xf32>, vector<2x128xf32> -> vector<2x128xf32>
    %257 = vector.broadcast %11 : vector<1x128xf32> to vector<2x128xf32>
    %258 = arith.addf %256, %257 : vector<2x128xf32>
    %259 = vector.extract_strided_slice %258 {offsets = [0, 0], sizes = [2, 32], strides = [1, 1]} : vector<2x128xf32> to vector<2x32xf32>
    %260 = arith.negf %259 : vector<2x32xf32>
    %261 = math.exp %260 : vector<2x32xf32>
    %cst_89 = arith.constant 1.000000e+00 : f32
    %262 = vector.broadcast %cst_89 : f32 to vector<2x32xf32>
    %263 = arith.addf %262, %261 : vector<2x32xf32>
    %264 = arith.divf %262, %263 : vector<2x32xf32>
    %265 = vector.extract_strided_slice %258 {offsets = [0, 32], sizes = [2, 32], strides = [1, 1]} : vector<2x128xf32> to vector<2x32xf32>
    %266 = arith.negf %265 : vector<2x32xf32>
    %267 = math.exp %266 : vector<2x32xf32>
    %cst_90 = arith.constant 1.000000e+00 : f32
    %268 = vector.broadcast %cst_90 : f32 to vector<2x32xf32>
    %269 = arith.addf %268, %267 : vector<2x32xf32>
    %270 = arith.divf %268, %269 : vector<2x32xf32>
    %271 = vector.extract_strided_slice %258 {offsets = [0, 64], sizes = [2, 32], strides = [1, 1]} : vector<2x128xf32> to vector<2x32xf32>
    %272 = math.tanh %271 : vector<2x32xf32>
    %273 = vector.extract_strided_slice %258 {offsets = [0, 96], sizes = [2, 32], strides = [1, 1]} : vector<2x128xf32> to vector<2x32xf32>
    %274 = arith.negf %273 : vector<2x32xf32>
    %275 = math.exp %274 : vector<2x32xf32>
    %cst_91 = arith.constant 1.000000e+00 : f32
    %276 = vector.broadcast %cst_91 : f32 to vector<2x32xf32>
    %277 = arith.addf %276, %275 : vector<2x32xf32>
    %278 = arith.divf %276, %277 : vector<2x32xf32>
    %279 = arith.mulf %270, %212 : vector<2x32xf32>
    %280 = arith.mulf %264, %272 : vector<2x32xf32>
    %281 = arith.addf %279, %280 : vector<2x32xf32>
    %282 = math.tanh %281 : vector<2x32xf32>
    %283 = arith.mulf %278, %282 : vector<2x32xf32>
    %c0_92 = arith.constant 0 : index
    %284 = arith.index_cast %c3_i32 : i32 to index
    %c0_93 = arith.constant 0 : index
    %c0_94 = arith.constant 0 : index
    %285 = vector.load %arg10[%c0_92, %284, %c0_93, %c0_94] : memref<1x8x2x32xf32, #tpu.memory_space<vmem>>, vector<1x1x2x32xf32>
    %286 = vector.shape_cast %285 : vector<1x1x2x32xf32> to vector<2x32xf32>
    %287 = vector.shape_cast %283 : vector<2x32xf32> to vector<1x1x2x32xf32>
    tpu.vector_store %arg10[%c0_92, %284, %c0_93, %c0_94], %287 {strides = array<i32>} : memref<1x8x2x32xf32, #tpu.memory_space<vmem>>, vector<1x1x2x32xf32>,
    %c0_95 = arith.constant 0 : index
    %288 = arith.index_cast %c3_i32 : i32 to index
    %c0_96 = arith.constant 0 : index
    %c0_97 = arith.constant 0 : index
    %289 = vector.load %arg11[%c0_95, %288, %c0_96, %c0_97] : memref<1x8x2x32xf32, #tpu.memory_space<vmem>>, vector<1x1x2x32xf32>
    %290 = vector.shape_cast %289 : vector<1x1x2x32xf32> to vector<2x32xf32>
    %291 = vector.shape_cast %281 : vector<2x32xf32> to vector<1x1x2x32xf32>
    tpu.vector_store %arg11[%c0_95, %288, %c0_96, %c0_97], %291 {strides = array<i32>} : memref<1x8x2x32xf32, #tpu.memory_space<vmem>>, vector<1x1x2x32xf32>,
    %c4_i32 = arith.constant 4 : i32
    %c0_98 = arith.constant 0 : index
    %292 = arith.index_cast %c4_i32 : i32 to index
    %c0_99 = arith.constant 0 : index
    %c0_100 = arith.constant 0 : index
    %293 = vector.load %arg4[%c0_98, %292, %c0_99, %c0_100] : memref<1x8x2x16xf32, #tpu.memory_space<vmem>>, vector<1x1x2x16xf32>
    %294 = vector.shape_cast %293 : vector<1x1x2x16xf32> to vector<2x16xf32>
    %cst_101 = arith.constant dense<0.000000e+00> : vector<2x32xf32>
    %295 = tpu.matmul %283, %8, %cst_101 {dimension_numbers = #tpu.dot_dimension_numbers<[1], [0], [0], [1], [0, 0, 1, 1], [], []>} : vector<2x32xf32>, vector<32x32xf32>, vector<2x32xf32> -> vector<2x32xf32>
    %296 = vector.shape_cast %295 : vector<2x32xf32> to vector<2x1x32xf32>
    %297 = vector.broadcast %296 : vector<2x1x32xf32> to vector<2x16x32xf32>
    %298 = arith.addf %297, %5 : vector<2x16x32xf32>
    %299 = math.tanh %298 : vector<2x16x32xf32>
    %300 = vector.shape_cast %9 : vector<1x32xf32> to vector<1x1x32xf32>
    %301 = vector.broadcast %300 : vector<1x1x32xf32> to vector<2x16x32xf32>
    %302 = arith.mulf %299, %301 : vector<2x16x32xf32>
    %cst_102 = arith.constant dense<0.000000e+00> : vector<2x16xf32>
    %303 = vector.multi_reduction <add>, %302, %cst_102 [2] : vector<2x16x32xf32> to vector<2x16xf32>
    %cst_103 = arith.constant dense<0xFF800000> : vector<2xf32>
    %304 = vector.multi_reduction <maximumf>, %303, %cst_103 [1] : vector<2x16xf32> to vector<2xf32>
    %305 = vector.shape_cast %304 : vector<2xf32> to vector<2x1xf32>
    %306 = vector.broadcast %305 : vector<2x1xf32> to vector<2x16xf32>
    %307 = arith.subf %303, %306 : vector<2x16xf32>
    %308 = math.exp %307 : vector<2x16xf32>
    %cst_104 = arith.constant dense<0.000000e+00> : vector<2xf32>
    %309 = vector.multi_reduction <add>, %308, %cst_104 [1] : vector<2x16xf32> to vector<2xf32>
    %310 = vector.shape_cast %309 : vector<2xf32> to vector<2x1xf32>
    %311 = arith.mulf %308, %294 : vector<2x16xf32>
    %312 = vector.shape_cast %311 : vector<2x16xf32> to vector<2x16x1xf32>
    %313 = vector.broadcast %312 : vector<2x16x1xf32> to vector<2x16x32xf32>
    %314 = arith.mulf %313, %7 : vector<2x16x32xf32>
    %cst_105 = arith.constant dense<0.000000e+00> : vector<2x32xf32>
    %315 = vector.multi_reduction <add>, %314, %cst_105 [1] : vector<2x16x32xf32> to vector<2x32xf32>
    %cst_106 = arith.constant dense<0.000000e+00> : vector<2xf32>
    %316 = vector.multi_reduction <add>, %311, %cst_106 [1] : vector<2x16xf32> to vector<2xf32>
    %317 = vector.shape_cast %316 : vector<2xf32> to vector<2x1xf32>
    %cst_107 = arith.constant 9.99999974E-6 : f32
    %318 = vector.broadcast %cst_107 : f32 to vector<2x1xf32>
    %319 = arith.mulf %318, %310 : vector<2x1xf32>
    %320 = arith.maximumf %317, %319 : vector<2x1xf32>
    %321 = tpu.reciprocal %320 {approx = true} : vector<2x1xf32> -> vector<2x1xf32>
    %322 = vector.broadcast %321 : vector<2x1xf32> to vector<2x32xf32>
    %323 = arith.mulf %315, %322 : vector<2x32xf32>
    %324 = tpu.concatenate %323, %283 in 1 : vector<2x32xf32>, vector<2x32xf32> -> vector<2x64xf32>
    %cst_108 = arith.constant dense<0.000000e+00> : vector<2x128xf32>
    %325 = tpu.matmul %324, %10, %cst_108 {dimension_numbers = #tpu.dot_dimension_numbers<[1], [0], [0], [1], [0, 0, 1, 1], [], []>} : vector<2x64xf32>, vector<64x128xf32>, vector<2x128xf32> -> vector<2x128xf32>
    %326 = vector.broadcast %11 : vector<1x128xf32> to vector<2x128xf32>
    %327 = arith.addf %325, %326 : vector<2x128xf32>
    %328 = vector.extract_strided_slice %327 {offsets = [0, 0], sizes = [2, 32], strides = [1, 1]} : vector<2x128xf32> to vector<2x32xf32>
    %329 = arith.negf %328 : vector<2x32xf32>
    %330 = math.exp %329 : vector<2x32xf32>
    %cst_109 = arith.constant 1.000000e+00 : f32
    %331 = vector.broadcast %cst_109 : f32 to vector<2x32xf32>
    %332 = arith.addf %331, %330 : vector<2x32xf32>
    %333 = arith.divf %331, %332 : vector<2x32xf32>
    %334 = vector.extract_strided_slice %327 {offsets = [0, 32], sizes = [2, 32], strides = [1, 1]} : vector<2x128xf32> to vector<2x32xf32>
    %335 = arith.negf %334 : vector<2x32xf32>
    %336 = math.exp %335 : vector<2x32xf32>
    %cst_110 = arith.constant 1.000000e+00 : f32
    %337 = vector.broadcast %cst_110 : f32 to vector<2x32xf32>
    %338 = arith.addf %337, %336 : vector<2x32xf32>
    %339 = arith.divf %337, %338 : vector<2x32xf32>
    %340 = vector.extract_strided_slice %327 {offsets = [0, 64], sizes = [2, 32], strides = [1, 1]} : vector<2x128xf32> to vector<2x32xf32>
    %341 = math.tanh %340 : vector<2x32xf32>
    %342 = vector.extract_strided_slice %327 {offsets = [0, 96], sizes = [2, 32], strides = [1, 1]} : vector<2x128xf32> to vector<2x32xf32>
    %343 = arith.negf %342 : vector<2x32xf32>
    %344 = math.exp %343 : vector<2x32xf32>
    %cst_111 = arith.constant 1.000000e+00 : f32
    %345 = vector.broadcast %cst_111 : f32 to vector<2x32xf32>
    %346 = arith.addf %345, %344 : vector<2x32xf32>
    %347 = arith.divf %345, %346 : vector<2x32xf32>
    %348 = arith.mulf %339, %281 : vector<2x32xf32>
    %349 = arith.mulf %333, %341 : vector<2x32xf32>
    %350 = arith.addf %348, %349 : vector<2x32xf32>
    %351 = math.tanh %350 : vector<2x32xf32>
    %352 = arith.mulf %347, %351 : vector<2x32xf32>
    %c0_112 = arith.constant 0 : index
    %353 = arith.index_cast %c4_i32 : i32 to index
    %c0_113 = arith.constant 0 : index
    %c0_114 = arith.constant 0 : index
    %354 = vector.load %arg10[%c0_112, %353, %c0_113, %c0_114] : memref<1x8x2x32xf32, #tpu.memory_space<vmem>>, vector<1x1x2x32xf32>
    %355 = vector.shape_cast %354 : vector<1x1x2x32xf32> to vector<2x32xf32>
    %356 = vector.shape_cast %352 : vector<2x32xf32> to vector<1x1x2x32xf32>
    tpu.vector_store %arg10[%c0_112, %353, %c0_113, %c0_114], %356 {strides = array<i32>} : memref<1x8x2x32xf32, #tpu.memory_space<vmem>>, vector<1x1x2x32xf32>,
    %c0_115 = arith.constant 0 : index
    %357 = arith.index_cast %c4_i32 : i32 to index
    %c0_116 = arith.constant 0 : index
    %c0_117 = arith.constant 0 : index
    %358 = vector.load %arg11[%c0_115, %357, %c0_116, %c0_117] : memref<1x8x2x32xf32, #tpu.memory_space<vmem>>, vector<1x1x2x32xf32>
    %359 = vector.shape_cast %358 : vector<1x1x2x32xf32> to vector<2x32xf32>
    %360 = vector.shape_cast %350 : vector<2x32xf32> to vector<1x1x2x32xf32>
    tpu.vector_store %arg11[%c0_115, %357, %c0_116, %c0_117], %360 {strides = array<i32>} : memref<1x8x2x32xf32, #tpu.memory_space<vmem>>, vector<1x1x2x32xf32>,
    %c5_i32 = arith.constant 5 : i32
    %c0_118 = arith.constant 0 : index
    %361 = arith.index_cast %c5_i32 : i32 to index
    %c0_119 = arith.constant 0 : index
    %c0_120 = arith.constant 0 : index
    %362 = vector.load %arg4[%c0_118, %361, %c0_119, %c0_120] : memref<1x8x2x16xf32, #tpu.memory_space<vmem>>, vector<1x1x2x16xf32>
    %363 = vector.shape_cast %362 : vector<1x1x2x16xf32> to vector<2x16xf32>
    %cst_121 = arith.constant dense<0.000000e+00> : vector<2x32xf32>
    %364 = tpu.matmul %352, %8, %cst_121 {dimension_numbers = #tpu.dot_dimension_numbers<[1], [0], [0], [1], [0, 0, 1, 1], [], []>} : vector<2x32xf32>, vector<32x32xf32>, vector<2x32xf32> -> vector<2x32xf32>
    %365 = vector.shape_cast %364 : vector<2x32xf32> to vector<2x1x32xf32>
    %366 = vector.broadcast %365 : vector<2x1x32xf32> to vector<2x16x32xf32>
    %367 = arith.addf %366, %5 : vector<2x16x32xf32>
    %368 = math.tanh %367 : vector<2x16x32xf32>
    %369 = vector.shape_cast %9 : vector<1x32xf32> to vector<1x1x32xf32>
    %370 = vector.broadcast %369 : vector<1x1x32xf32> to vector<2x16x32xf32>
    %371 = arith.mulf %368, %370 : vector<2x16x32xf32>
    %cst_122 = arith.constant dense<0.000000e+00> : vector<2x16xf32>
    %372 = vector.multi_reduction <add>, %371, %cst_122 [2] : vector<2x16x32xf32> to vector<2x16xf32>
    %cst_123 = arith.constant dense<0xFF800000> : vector<2xf32>
    %373 = vector.multi_reduction <maximumf>, %372, %cst_123 [1] : vector<2x16xf32> to vector<2xf32>
    %374 = vector.shape_cast %373 : vector<2xf32> to vector<2x1xf32>
    %375 = vector.broadcast %374 : vector<2x1xf32> to vector<2x16xf32>
    %376 = arith.subf %372, %375 : vector<2x16xf32>
    %377 = math.exp %376 : vector<2x16xf32>
    %cst_124 = arith.constant dense<0.000000e+00> : vector<2xf32>
    %378 = vector.multi_reduction <add>, %377, %cst_124 [1] : vector<2x16xf32> to vector<2xf32>
    %379 = vector.shape_cast %378 : vector<2xf32> to vector<2x1xf32>
    %380 = arith.mulf %377, %363 : vector<2x16xf32>
    %381 = vector.shape_cast %380 : vector<2x16xf32> to vector<2x16x1xf32>
    %382 = vector.broadcast %381 : vector<2x16x1xf32> to vector<2x16x32xf32>
    %383 = arith.mulf %382, %7 : vector<2x16x32xf32>
    %cst_125 = arith.constant dense<0.000000e+00> : vector<2x32xf32>
    %384 = vector.multi_reduction <add>, %383, %cst_125 [1] : vector<2x16x32xf32> to vector<2x32xf32>
    %cst_126 = arith.constant dense<0.000000e+00> : vector<2xf32>
    %385 = vector.multi_reduction <add>, %380, %cst_126 [1] : vector<2x16xf32> to vector<2xf32>
    %386 = vector.shape_cast %385 : vector<2xf32> to vector<2x1xf32>
    %cst_127 = arith.constant 9.99999974E-6 : f32
    %387 = vector.broadcast %cst_127 : f32 to vector<2x1xf32>
    %388 = arith.mulf %387, %379 : vector<2x1xf32>
    %389 = arith.maximumf %386, %388 : vector<2x1xf32>
    %390 = tpu.reciprocal %389 {approx = true} : vector<2x1xf32> -> vector<2x1xf32>
    %391 = vector.broadcast %390 : vector<2x1xf32> to vector<2x32xf32>
    %392 = arith.mulf %384, %391 : vector<2x32xf32>
    %393 = tpu.concatenate %392, %352 in 1 : vector<2x32xf32>, vector<2x32xf32> -> vector<2x64xf32>
    %cst_128 = arith.constant dense<0.000000e+00> : vector<2x128xf32>
    %394 = tpu.matmul %393, %10, %cst_128 {dimension_numbers = #tpu.dot_dimension_numbers<[1], [0], [0], [1], [0, 0, 1, 1], [], []>} : vector<2x64xf32>, vector<64x128xf32>, vector<2x128xf32> -> vector<2x128xf32>
    %395 = vector.broadcast %11 : vector<1x128xf32> to vector<2x128xf32>
    %396 = arith.addf %394, %395 : vector<2x128xf32>
    %397 = vector.extract_strided_slice %396 {offsets = [0, 0], sizes = [2, 32], strides = [1, 1]} : vector<2x128xf32> to vector<2x32xf32>
    %398 = arith.negf %397 : vector<2x32xf32>
    %399 = math.exp %398 : vector<2x32xf32>
    %cst_129 = arith.constant 1.000000e+00 : f32
    %400 = vector.broadcast %cst_129 : f32 to vector<2x32xf32>
    %401 = arith.addf %400, %399 : vector<2x32xf32>
    %402 = arith.divf %400, %401 : vector<2x32xf32>
    %403 = vector.extract_strided_slice %396 {offsets = [0, 32], sizes = [2, 32], strides = [1, 1]} : vector<2x128xf32> to vector<2x32xf32>
    %404 = arith.negf %403 : vector<2x32xf32>
    %405 = math.exp %404 : vector<2x32xf32>
    %cst_130 = arith.constant 1.000000e+00 : f32
    %406 = vector.broadcast %cst_130 : f32 to vector<2x32xf32>
    %407 = arith.addf %406, %405 : vector<2x32xf32>
    %408 = arith.divf %406, %407 : vector<2x32xf32>
    %409 = vector.extract_strided_slice %396 {offsets = [0, 64], sizes = [2, 32], strides = [1, 1]} : vector<2x128xf32> to vector<2x32xf32>
    %410 = math.tanh %409 : vector<2x32xf32>
    %411 = vector.extract_strided_slice %396 {offsets = [0, 96], sizes = [2, 32], strides = [1, 1]} : vector<2x128xf32> to vector<2x32xf32>
    %412 = arith.negf %411 : vector<2x32xf32>
    %413 = math.exp %412 : vector<2x32xf32>
    %cst_131 = arith.constant 1.000000e+00 : f32
    %414 = vector.broadcast %cst_131 : f32 to vector<2x32xf32>
    %415 = arith.addf %414, %413 : vector<2x32xf32>
    %416 = arith.divf %414, %415 : vector<2x32xf32>
    %417 = arith.mulf %408, %350 : vector<2x32xf32>
    %418 = arith.mulf %402, %410 : vector<2x32xf32>
    %419 = arith.addf %417, %418 : vector<2x32xf32>
    %420 = math.tanh %419 : vector<2x32xf32>
    %421 = arith.mulf %416, %420 : vector<2x32xf32>
    %c0_132 = arith.constant 0 : index
    %422 = arith.index_cast %c5_i32 : i32 to index
    %c0_133 = arith.constant 0 : index
    %c0_134 = arith.constant 0 : index
    %423 = vector.load %arg10[%c0_132, %422, %c0_133, %c0_134] : memref<1x8x2x32xf32, #tpu.memory_space<vmem>>, vector<1x1x2x32xf32>
    %424 = vector.shape_cast %423 : vector<1x1x2x32xf32> to vector<2x32xf32>
    %425 = vector.shape_cast %421 : vector<2x32xf32> to vector<1x1x2x32xf32>
    tpu.vector_store %arg10[%c0_132, %422, %c0_133, %c0_134], %425 {strides = array<i32>} : memref<1x8x2x32xf32, #tpu.memory_space<vmem>>, vector<1x1x2x32xf32>,
    %c0_135 = arith.constant 0 : index
    %426 = arith.index_cast %c5_i32 : i32 to index
    %c0_136 = arith.constant 0 : index
    %c0_137 = arith.constant 0 : index
    %427 = vector.load %arg11[%c0_135, %426, %c0_136, %c0_137] : memref<1x8x2x32xf32, #tpu.memory_space<vmem>>, vector<1x1x2x32xf32>
    %428 = vector.shape_cast %427 : vector<1x1x2x32xf32> to vector<2x32xf32>
    %429 = vector.shape_cast %419 : vector<2x32xf32> to vector<1x1x2x32xf32>
    tpu.vector_store %arg11[%c0_135, %426, %c0_136, %c0_137], %429 {strides = array<i32>} : memref<1x8x2x32xf32, #tpu.memory_space<vmem>>, vector<1x1x2x32xf32>,
    %c6_i32 = arith.constant 6 : i32
    %c0_138 = arith.constant 0 : index
    %430 = arith.index_cast %c6_i32 : i32 to index
    %c0_139 = arith.constant 0 : index
    %c0_140 = arith.constant 0 : index
    %431 = vector.load %arg4[%c0_138, %430, %c0_139, %c0_140] : memref<1x8x2x16xf32, #tpu.memory_space<vmem>>, vector<1x1x2x16xf32>
    %432 = vector.shape_cast %431 : vector<1x1x2x16xf32> to vector<2x16xf32>
    %cst_141 = arith.constant dense<0.000000e+00> : vector<2x32xf32>
    %433 = tpu.matmul %421, %8, %cst_141 {dimension_numbers = #tpu.dot_dimension_numbers<[1], [0], [0], [1], [0, 0, 1, 1], [], []>} : vector<2x32xf32>, vector<32x32xf32>, vector<2x32xf32> -> vector<2x32xf32>
    %434 = vector.shape_cast %433 : vector<2x32xf32> to vector<2x1x32xf32>
    %435 = vector.broadcast %434 : vector<2x1x32xf32> to vector<2x16x32xf32>
    %436 = arith.addf %435, %5 : vector<2x16x32xf32>
    %437 = math.tanh %436 : vector<2x16x32xf32>
    %438 = vector.shape_cast %9 : vector<1x32xf32> to vector<1x1x32xf32>
    %439 = vector.broadcast %438 : vector<1x1x32xf32> to vector<2x16x32xf32>
    %440 = arith.mulf %437, %439 : vector<2x16x32xf32>
    %cst_142 = arith.constant dense<0.000000e+00> : vector<2x16xf32>
    %441 = vector.multi_reduction <add>, %440, %cst_142 [2] : vector<2x16x32xf32> to vector<2x16xf32>
    %cst_143 = arith.constant dense<0xFF800000> : vector<2xf32>
    %442 = vector.multi_reduction <maximumf>, %441, %cst_143 [1] : vector<2x16xf32> to vector<2xf32>
    %443 = vector.shape_cast %442 : vector<2xf32> to vector<2x1xf32>
    %444 = vector.broadcast %443 : vector<2x1xf32> to vector<2x16xf32>
    %445 = arith.subf %441, %444 : vector<2x16xf32>
    %446 = math.exp %445 : vector<2x16xf32>
    %cst_144 = arith.constant dense<0.000000e+00> : vector<2xf32>
    %447 = vector.multi_reduction <add>, %446, %cst_144 [1] : vector<2x16xf32> to vector<2xf32>
    %448 = vector.shape_cast %447 : vector<2xf32> to vector<2x1xf32>
    %449 = arith.mulf %446, %432 : vector<2x16xf32>
    %450 = vector.shape_cast %449 : vector<2x16xf32> to vector<2x16x1xf32>
    %451 = vector.broadcast %450 : vector<2x16x1xf32> to vector<2x16x32xf32>
    %452 = arith.mulf %451, %7 : vector<2x16x32xf32>
    %cst_145 = arith.constant dense<0.000000e+00> : vector<2x32xf32>
    %453 = vector.multi_reduction <add>, %452, %cst_145 [1] : vector<2x16x32xf32> to vector<2x32xf32>
    %cst_146 = arith.constant dense<0.000000e+00> : vector<2xf32>
    %454 = vector.multi_reduction <add>, %449, %cst_146 [1] : vector<2x16xf32> to vector<2xf32>
    %455 = vector.shape_cast %454 : vector<2xf32> to vector<2x1xf32>
    %cst_147 = arith.constant 9.99999974E-6 : f32
    %456 = vector.broadcast %cst_147 : f32 to vector<2x1xf32>
    %457 = arith.mulf %456, %448 : vector<2x1xf32>
    %458 = arith.maximumf %455, %457 : vector<2x1xf32>
    %459 = tpu.reciprocal %458 {approx = true} : vector<2x1xf32> -> vector<2x1xf32>
    %460 = vector.broadcast %459 : vector<2x1xf32> to vector<2x32xf32>
    %461 = arith.mulf %453, %460 : vector<2x32xf32>
    %462 = tpu.concatenate %461, %421 in 1 : vector<2x32xf32>, vector<2x32xf32> -> vector<2x64xf32>
    %cst_148 = arith.constant dense<0.000000e+00> : vector<2x128xf32>
    %463 = tpu.matmul %462, %10, %cst_148 {dimension_numbers = #tpu.dot_dimension_numbers<[1], [0], [0], [1], [0, 0, 1, 1], [], []>} : vector<2x64xf32>, vector<64x128xf32>, vector<2x128xf32> -> vector<2x128xf32>
    %464 = vector.broadcast %11 : vector<1x128xf32> to vector<2x128xf32>
    %465 = arith.addf %463, %464 : vector<2x128xf32>
    %466 = vector.extract_strided_slice %465 {offsets = [0, 0], sizes = [2, 32], strides = [1, 1]} : vector<2x128xf32> to vector<2x32xf32>
    %467 = arith.negf %466 : vector<2x32xf32>
    %468 = math.exp %467 : vector<2x32xf32>
    %cst_149 = arith.constant 1.000000e+00 : f32
    %469 = vector.broadcast %cst_149 : f32 to vector<2x32xf32>
    %470 = arith.addf %469, %468 : vector<2x32xf32>
    %471 = arith.divf %469, %470 : vector<2x32xf32>
    %472 = vector.extract_strided_slice %465 {offsets = [0, 32], sizes = [2, 32], strides = [1, 1]} : vector<2x128xf32> to vector<2x32xf32>
    %473 = arith.negf %472 : vector<2x32xf32>
    %474 = math.exp %473 : vector<2x32xf32>
    %cst_150 = arith.constant 1.000000e+00 : f32
    %475 = vector.broadcast %cst_150 : f32 to vector<2x32xf32>
    %476 = arith.addf %475, %474 : vector<2x32xf32>
    %477 = arith.divf %475, %476 : vector<2x32xf32>
    %478 = vector.extract_strided_slice %465 {offsets = [0, 64], sizes = [2, 32], strides = [1, 1]} : vector<2x128xf32> to vector<2x32xf32>
    %479 = math.tanh %478 : vector<2x32xf32>
    %480 = vector.extract_strided_slice %465 {offsets = [0, 96], sizes = [2, 32], strides = [1, 1]} : vector<2x128xf32> to vector<2x32xf32>
    %481 = arith.negf %480 : vector<2x32xf32>
    %482 = math.exp %481 : vector<2x32xf32>
    %cst_151 = arith.constant 1.000000e+00 : f32
    %483 = vector.broadcast %cst_151 : f32 to vector<2x32xf32>
    %484 = arith.addf %483, %482 : vector<2x32xf32>
    %485 = arith.divf %483, %484 : vector<2x32xf32>
    %486 = arith.mulf %477, %419 : vector<2x32xf32>
    %487 = arith.mulf %471, %479 : vector<2x32xf32>
    %488 = arith.addf %486, %487 : vector<2x32xf32>
    %489 = math.tanh %488 : vector<2x32xf32>
    %490 = arith.mulf %485, %489 : vector<2x32xf32>
    %c0_152 = arith.constant 0 : index
    %491 = arith.index_cast %c6_i32 : i32 to index
    %c0_153 = arith.constant 0 : index
    %c0_154 = arith.constant 0 : index
    %492 = vector.load %arg10[%c0_152, %491, %c0_153, %c0_154] : memref<1x8x2x32xf32, #tpu.memory_space<vmem>>, vector<1x1x2x32xf32>
    %493 = vector.shape_cast %492 : vector<1x1x2x32xf32> to vector<2x32xf32>
    %494 = vector.shape_cast %490 : vector<2x32xf32> to vector<1x1x2x32xf32>
    tpu.vector_store %arg10[%c0_152, %491, %c0_153, %c0_154], %494 {strides = array<i32>} : memref<1x8x2x32xf32, #tpu.memory_space<vmem>>, vector<1x1x2x32xf32>,
    %c0_155 = arith.constant 0 : index
    %495 = arith.index_cast %c6_i32 : i32 to index
    %c0_156 = arith.constant 0 : index
    %c0_157 = arith.constant 0 : index
    %496 = vector.load %arg11[%c0_155, %495, %c0_156, %c0_157] : memref<1x8x2x32xf32, #tpu.memory_space<vmem>>, vector<1x1x2x32xf32>
    %497 = vector.shape_cast %496 : vector<1x1x2x32xf32> to vector<2x32xf32>
    %498 = vector.shape_cast %488 : vector<2x32xf32> to vector<1x1x2x32xf32>
    tpu.vector_store %arg11[%c0_155, %495, %c0_156, %c0_157], %498 {strides = array<i32>} : memref<1x8x2x32xf32, #tpu.memory_space<vmem>>, vector<1x1x2x32xf32>,
    %c7_i32 = arith.constant 7 : i32
    %c0_158 = arith.constant 0 : index
    %499 = arith.index_cast %c7_i32 : i32 to index
    %c0_159 = arith.constant 0 : index
    %c0_160 = arith.constant 0 : index
    %500 = vector.load %arg4[%c0_158, %499, %c0_159, %c0_160] : memref<1x8x2x16xf32, #tpu.memory_space<vmem>>, vector<1x1x2x16xf32>
    %501 = vector.shape_cast %500 : vector<1x1x2x16xf32> to vector<2x16xf32>
    %cst_161 = arith.constant dense<0.000000e+00> : vector<2x32xf32>
    %502 = tpu.matmul %490, %8, %cst_161 {dimension_numbers = #tpu.dot_dimension_numbers<[1], [0], [0], [1], [0, 0, 1, 1], [], []>} : vector<2x32xf32>, vector<32x32xf32>, vector<2x32xf32> -> vector<2x32xf32>
    %503 = vector.shape_cast %502 : vector<2x32xf32> to vector<2x1x32xf32>
    %504 = vector.broadcast %503 : vector<2x1x32xf32> to vector<2x16x32xf32>
    %505 = arith.addf %504, %5 : vector<2x16x32xf32>
    %506 = math.tanh %505 : vector<2x16x32xf32>
    %507 = vector.shape_cast %9 : vector<1x32xf32> to vector<1x1x32xf32>
    %508 = vector.broadcast %507 : vector<1x1x32xf32> to vector<2x16x32xf32>
    %509 = arith.mulf %506, %508 : vector<2x16x32xf32>
    %cst_162 = arith.constant dense<0.000000e+00> : vector<2x16xf32>
    %510 = vector.multi_reduction <add>, %509, %cst_162 [2] : vector<2x16x32xf32> to vector<2x16xf32>
    %cst_163 = arith.constant dense<0xFF800000> : vector<2xf32>
    %511 = vector.multi_reduction <maximumf>, %510, %cst_163 [1] : vector<2x16xf32> to vector<2xf32>
    %512 = vector.shape_cast %511 : vector<2xf32> to vector<2x1xf32>
    %513 = vector.broadcast %512 : vector<2x1xf32> to vector<2x16xf32>
    %514 = arith.subf %510, %513 : vector<2x16xf32>
    %515 = math.exp %514 : vector<2x16xf32>
    %cst_164 = arith.constant dense<0.000000e+00> : vector<2xf32>
    %516 = vector.multi_reduction <add>, %515, %cst_164 [1] : vector<2x16xf32> to vector<2xf32>
    %517 = vector.shape_cast %516 : vector<2xf32> to vector<2x1xf32>
    %518 = arith.mulf %515, %501 : vector<2x16xf32>
    %519 = vector.shape_cast %518 : vector<2x16xf32> to vector<2x16x1xf32>
    %520 = vector.broadcast %519 : vector<2x16x1xf32> to vector<2x16x32xf32>
    %521 = arith.mulf %520, %7 : vector<2x16x32xf32>
    %cst_165 = arith.constant dense<0.000000e+00> : vector<2x32xf32>
    %522 = vector.multi_reduction <add>, %521, %cst_165 [1] : vector<2x16x32xf32> to vector<2x32xf32>
    %cst_166 = arith.constant dense<0.000000e+00> : vector<2xf32>
    %523 = vector.multi_reduction <add>, %518, %cst_166 [1] : vector<2x16xf32> to vector<2xf32>
    %524 = vector.shape_cast %523 : vector<2xf32> to vector<2x1xf32>
    %cst_167 = arith.constant 9.99999974E-6 : f32
    %525 = vector.broadcast %cst_167 : f32 to vector<2x1xf32>
    %526 = arith.mulf %525, %517 : vector<2x1xf32>
    %527 = arith.maximumf %524, %526 : vector<2x1xf32>
    %528 = tpu.reciprocal %527 {approx = true} : vector<2x1xf32> -> vector<2x1xf32>
    %529 = vector.broadcast %528 : vector<2x1xf32> to vector<2x32xf32>
    %530 = arith.mulf %522, %529 : vector<2x32xf32>
    %531 = tpu.concatenate %530, %490 in 1 : vector<2x32xf32>, vector<2x32xf32> -> vector<2x64xf32>
    %cst_168 = arith.constant dense<0.000000e+00> : vector<2x128xf32>
    %532 = tpu.matmul %531, %10, %cst_168 {dimension_numbers = #tpu.dot_dimension_numbers<[1], [0], [0], [1], [0, 0, 1, 1], [], []>} : vector<2x64xf32>, vector<64x128xf32>, vector<2x128xf32> -> vector<2x128xf32>
    %533 = vector.broadcast %11 : vector<1x128xf32> to vector<2x128xf32>
    %534 = arith.addf %532, %533 : vector<2x128xf32>
    %535 = vector.extract_strided_slice %534 {offsets = [0, 0], sizes = [2, 32], strides = [1, 1]} : vector<2x128xf32> to vector<2x32xf32>
    %536 = arith.negf %535 : vector<2x32xf32>
    %537 = math.exp %536 : vector<2x32xf32>
    %cst_169 = arith.constant 1.000000e+00 : f32
    %538 = vector.broadcast %cst_169 : f32 to vector<2x32xf32>
    %539 = arith.addf %538, %537 : vector<2x32xf32>
    %540 = arith.divf %538, %539 : vector<2x32xf32>
    %541 = vector.extract_strided_slice %534 {offsets = [0, 32], sizes = [2, 32], strides = [1, 1]} : vector<2x128xf32> to vector<2x32xf32>
    %542 = arith.negf %541 : vector<2x32xf32>
    %543 = math.exp %542 : vector<2x32xf32>
    %cst_170 = arith.constant 1.000000e+00 : f32
    %544 = vector.broadcast %cst_170 : f32 to vector<2x32xf32>
    %545 = arith.addf %544, %543 : vector<2x32xf32>
    %546 = arith.divf %544, %545 : vector<2x32xf32>
    %547 = vector.extract_strided_slice %534 {offsets = [0, 64], sizes = [2, 32], strides = [1, 1]} : vector<2x128xf32> to vector<2x32xf32>
    %548 = math.tanh %547 : vector<2x32xf32>
    %549 = vector.extract_strided_slice %534 {offsets = [0, 96], sizes = [2, 32], strides = [1, 1]} : vector<2x128xf32> to vector<2x32xf32>
    %550 = arith.negf %549 : vector<2x32xf32>
    %551 = math.exp %550 : vector<2x32xf32>
    %cst_171 = arith.constant 1.000000e+00 : f32
    %552 = vector.broadcast %cst_171 : f32 to vector<2x32xf32>
    %553 = arith.addf %552, %551 : vector<2x32xf32>
    %554 = arith.divf %552, %553 : vector<2x32xf32>
    %555 = arith.mulf %546, %488 : vector<2x32xf32>
    %556 = arith.mulf %540, %548 : vector<2x32xf32>
    %557 = arith.addf %555, %556 : vector<2x32xf32>
    %558 = math.tanh %557 : vector<2x32xf32>
    %559 = arith.mulf %554, %558 : vector<2x32xf32>
    %c0_172 = arith.constant 0 : index
    %560 = arith.index_cast %c7_i32 : i32 to index
    %c0_173 = arith.constant 0 : index
    %c0_174 = arith.constant 0 : index
    %561 = vector.load %arg10[%c0_172, %560, %c0_173, %c0_174] : memref<1x8x2x32xf32, #tpu.memory_space<vmem>>, vector<1x1x2x32xf32>
    %562 = vector.shape_cast %561 : vector<1x1x2x32xf32> to vector<2x32xf32>
    %563 = vector.shape_cast %559 : vector<2x32xf32> to vector<1x1x2x32xf32>
    tpu.vector_store %arg10[%c0_172, %560, %c0_173, %c0_174], %563 {strides = array<i32>} : memref<1x8x2x32xf32, #tpu.memory_space<vmem>>, vector<1x1x2x32xf32>,
    %c0_175 = arith.constant 0 : index
    %564 = arith.index_cast %c7_i32 : i32 to index
    %c0_176 = arith.constant 0 : index
    %c0_177 = arith.constant 0 : index
    %565 = vector.load %arg11[%c0_175, %564, %c0_176, %c0_177] : memref<1x8x2x32xf32, #tpu.memory_space<vmem>>, vector<1x1x2x32xf32>
    %566 = vector.shape_cast %565 : vector<1x1x2x32xf32> to vector<2x32xf32>
    %567 = vector.shape_cast %557 : vector<2x32xf32> to vector<1x1x2x32xf32>
    tpu.vector_store %arg11[%c0_175, %564, %c0_176, %c0_177], %567 {strides = array<i32>} : memref<1x8x2x32xf32, #tpu.memory_space<vmem>>, vector<1x1x2x32xf32>,
    %c8_i32 = arith.constant 8 : i32
    return
  }
  func.func @transform_0(%arg0: i32) -> (i32, i32, i32) {
    %c0_i32 = arith.constant 0 : i32
    %c0_i32_0 = arith.constant 0 : i32
    %c0_i32_1 = arith.constant 0 : i32
    return %arg0, %c0_i32, %c0_i32_0 : i32, i32, i32
  }
  func.func @transform_1(%arg0: i32) -> (i32, i32, i32) {
    %c0_i32 = arith.constant 0 : i32
    %c0_i32_0 = arith.constant 0 : i32
    %c0_i32_1 = arith.constant 0 : i32
    return %arg0, %c0_i32, %c0_i32_0 : i32, i32, i32
  }
  func.func @transform_2(%arg0: i32) -> (i32, i32, i32) {
    %c0_i32 = arith.constant 0 : i32
    %c0_i32_0 = arith.constant 0 : i32
    %c0_i32_1 = arith.constant 0 : i32
    return %arg0, %c0_i32, %c0_i32_0 : i32, i32, i32
  }
  func.func @transform_3(%arg0: i32) -> (i32, i32, i32, i32) {
    %c0_i32 = arith.constant 0 : i32
    %c0_i32_0 = arith.constant 0 : i32
    %c0_i32_1 = arith.constant 0 : i32
    %c0_i32_2 = arith.constant 0 : i32
    return %arg0, %c0_i32, %c0_i32_0, %c0_i32_1 : i32, i32, i32, i32
  }
  func.func @transform_4(%arg0: i32) -> (i32, i32) {
    %c0_i32 = arith.constant 0 : i32
    %c0_i32_0 = arith.constant 0 : i32
    %c0_i32_1 = arith.constant 0 : i32
    return %c0_i32, %c0_i32_0 : i32, i32
  }
  func.func @transform_5(%arg0: i32) -> (i32, i32) {
    %c0_i32 = arith.constant 0 : i32
    %c0_i32_0 = arith.constant 0 : i32
    %c0_i32_1 = arith.constant 0 : i32
    return %c0_i32, %c0_i32_0 : i32, i32
  }
  func.func @transform_6(%arg0: i32) -> (i32, i32) {
    %c0_i32 = arith.constant 0 : i32
    %c0_i32_0 = arith.constant 0 : i32
    %c0_i32_1 = arith.constant 0 : i32
    return %c0_i32, %c0_i32_0 : i32, i32
  }
  func.func @transform_7(%arg0: i32) -> (i32, i32) {
    %c0_i32 = arith.constant 0 : i32
    %c0_i32_0 = arith.constant 0 : i32
    %c0_i32_1 = arith.constant 0 : i32
    return %c0_i32, %c0_i32_0 : i32, i32
  }
  func.func @transform_8(%arg0: i32) -> (i32, i32) {
    %c0_i32 = arith.constant 0 : i32
    %c0_i32_0 = arith.constant 0 : i32
    %c0_i32_1 = arith.constant 0 : i32
    return %c0_i32, %c0_i32_0 : i32, i32
  }
  func.func @transform_9(%arg0: i32) -> (i32, i32, i32, i32) {
    %c0_i32 = arith.constant 0 : i32
    %c0_i32_0 = arith.constant 0 : i32
    %c0_i32_1 = arith.constant 0 : i32
    %c0_i32_2 = arith.constant 0 : i32
    return %arg0, %c0_i32, %c0_i32_0, %c0_i32_1 : i32, i32, i32, i32
  }
  func.func @transform_10(%arg0: i32) -> (i32, i32, i32, i32) {
    %c0_i32 = arith.constant 0 : i32
    %c0_i32_0 = arith.constant 0 : i32
    %c0_i32_1 = arith.constant 0 : i32
    %c0_i32_2 = arith.constant 0 : i32
    return %arg0, %c0_i32, %c0_i32_0, %c0_i32_1 : i32, i32, i32, i32
  }
}

</mosaic_0001>

<bundles_post_ra>
// kernel: tpu_custom_call.1
= control target key start
LH: loop header
LB: loop body
LE: loop exit
PB: predicated region body
PF: predicated region fallthrough
CT: control target
= control target key end

     0   :  { %s7021_s0 = inlined_call_operand.hbm [shape: f32[2,2,32], index: 0, kind: input, shape index: {}]   ;;  %s7022_s1 = inlined_call_operand.hbm [shape: f32[2,2,32], index: 1, kind: input, shape index: {}]   ;;  %s7023_s2 = inlined_call_operand.hbm [shape: f32[2,32,32], index: 2, kind: input, shape index: {}]   ;;  %s7024_s3 = inlined_call_operand.hbm [shape: f32[2,8,2,16], index: 3, kind: input, shape index: {}]   ;;  %s7025_s4 = inlined_call_operand.hbm [shape: f32[32,32], index: 4, kind: input, shape index: {}]   ;;  %s7026_s5 = inlined_call_operand.hbm [shape: f32[32,64], index: 5, kind: input, shape index: {}]   ;;  %s7027_s6 = inlined_call_operand.vmem [shape: f32[1,32], index: 6, kind: input, shape index: {}]   ;;  %s7028_s7 = inlined_call_operand.hbm [shape: f32[64,128], index: 7, kind: input, shape index: {}]   ;;  %s7029_s8 = inlined_call_operand.vmem [shape: f32[1,128], index: 8, kind: input, shape index: {}]   ;;  %s7030_s9 = inlined_call_operand.hbm [shape: f32[2,8,2,32], index: 9, kind: output, shape index: {0}]   ;;  %s7031_s10 = inlined_call_operand.hbm [shape: f32[2,8,2,32], index: 10, kind: output, shape index: {1}]  }
   0x1   :  { %7053 = sst [smem:[#allocation29_spill]] %s7022_s1 }
   0x2   :  { %7054 = sst [smem:[#allocation30_spill]] %s7025_s4 }
   0x3   :  { %7055 = sst [smem:[#allocation31_spill]] %s7026_s5 }
   0x4   :  { %7056 = sst [smem:[#allocation32_spill]] %s7028_s7 }
   0x5   :  { %7057 = sst [smem:[#allocation33_spill]] %s7030_s9 }
   0x6   :  { %7058 = sst [smem:[#allocation34_spill]] %s7031_s10 }
   0x7   :  { %16 = vsyncpa [#allocation3], 0 }
   0x8   :  { %18 = vsyncpa [#allocation3 + $0x1], 0 }
   0x9   :  { %19 = vsyncpa [#allocation6], 0 }
   0xa   :  { %21 = vsyncpa [#allocation6 + $0x1], 0 }
   0xb   :  { %22 = vsyncpa [#allocation9], 0 }
   0xc   :  { %24 = vsyncpa [#allocation9 + $0x1], 0 }
   0xd   :  { %25 = vsyncpa [#allocation12], 0 }
   0xe   :  { %26 = vsyncpa [#allocation4], 0 }
   0xf   :  { %28 = vsyncpa [#allocation4 + $0x1], 0 }
  0x10   :  { %29 = vsyncpa [#allocation16], 0 }
  0x11   :  { %31 = vsyncpa [#allocation16 + $0x1], 0  ;;  %s5670_s13 = smov 0   ;;  %s5672_s14 = smov 0  }
  0x12   :  { %s5674_s15 = smov 0   ;;  %s5676_s16 = smov 0  }
  0x13 LB: > { %7059 = sst [smem:[#allocation24_spill]] %s5580_s13  ;;  %s5691_s17 = sadd.s32 4294967295, %s5592_s16   ;;  %s5592_s16 = sphi %s5676_s16, %s7095_s16   ;;  %s5588_s15 = sphi %s5674_s15, %s7097_s15   ;;  %s5584_s14 = sphi %s5672_s14, %s7099_s14   ;;  %s5580_s13 = sphi %s5670_s13, %s7098_s13  }
  0x14   : > { %7060 = sst [smem:[#allocation25_spill]] %s5588_s15  ;;  %s4482_s18 = sadd.s32 4294967294, %s5592_s16  }
  0x15   : > { %p57_p0 = scmp.ne.s32.totalorder %s5584_s14, %s5580_s13  ;;  %p7041_p1 = scmp.eq.s32.totalorder %s5691_s17, 0 }
  0x16   : > { %p264_p2 = scmp.eq.s32.totalorder %s5691_s17, 1  ;;  %p270_p3 = scmp.eq.s32.totalorder %s4482_s18, 1 }
  0x17   : > { %p5700_p4 = por %p7041_p1, %p57_p0  ;;  %p4483_p5 = scmp.ge.s32.totalorder %s5592_s16, 1 }
  0x18   : > { %p5705_p6 = por %p270_p3, %p57_p0  ;;  %p303_p7 = scmp.lt.s32.totalorder %s5592_s16, 3 }
  0x19   : > { %s7061_s19 = scalar_select %p5700_p4, 1, 0 }
  0x1a   : > { %s7062_s20 = scalar_select %p5705_p6, 1, 0 }
  0x1b   : > { %p5710_p8 = pnand %p4483_p5, %p303_p7  ;;  %s5594_s22 = smov [#allocation10]  }
  0x1c   : > { %7063 = sst [smem:[#allocation26_spill]] %s7062_s20  ;;  %s315_s23 = sshll.u32 %s5594_s22, 4  ;;  %s316_s23 = int_to_ptr.vmem [resolvable:$true] %s315_s23 }
  0x1d   : > { %s7064_s21 = scalar_select %p5710_p8, 1, 0 }
  0x1e   : > { %p4969_p9 = pneg %p5710_p8  ;;  %s5595_s25 = smov [#allocation11]  }
  0x1f   : > { %s328_s26 = sshll.u32 %s5595_s25, 4  ;;  %s5303_s27 = scalar_lea.vmem %s316_s23, 512  ;;  %s329_s26 = int_to_ptr.vmem [resolvable:$true] %s328_s26 }
  0x20   : > { %p5719_p11 = pnand %p4969_p9, %p7041_p1  ;;  %p5304_p13 = scmp.ne.s32.totalorder %s316_s23, %s5303_s27 }
  0x21   : > { %p5311_p5 = scmp.lt.s32.totalorder %s316_s23, %s316_s23  ;;  %p5312_p7 = scmp.lt.s32.totalorder %s5303_s27, %s5303_s27 }
  0x22   : > { %s7065_s24 = scalar_select %p5719_p11, 1, 0 }
  0x23   : > { %p7042_p12 = pneg %p5719_p11  ;;  %p5313_p10 = por %p5312_p7, %p5311_p5 }
  0x25   : > { %p5306_p0 = pnand %p5304_p13, %p7042_p12 }
  0x27   : > { %p5307_p3 = pneg %p5306_p0 }
  0x29   : > { %p5314_p9 = pnand %p5313_p10, %p5307_p3 }
  0x2b   : > { %5317 = shalt.err (!%p5314_p9)
}
  0x2c   : > { %s7032_s28 = smov 128   ;;  %s7034_s29 = smov 8  }
  0x2d   : > { %s7066_s4 = sld [smem:[#allocation30_spill]]  ;;  %s5329_s12 = scalar_lea.vmem %s329_s26, 512 }
  0x2e   : > { %p5330_p13 = scmp.ne.s32.totalorder %s329_s26, %s5329_s12  ;;  %p5337_p10 = scmp.lt.s32.totalorder %s329_s26, %s329_s26 }
  0x2f   : > { %p5338_p3 = scmp.lt.s32.totalorder %s5329_s12, %s5329_s12 }
  0x30   : > { %p5332_p0 = pnand %p5330_p13, %p7042_p12 }
  0x31   : > { %p5339_p7 = por %p5338_p3, %p5337_p10 }
  0x32   : > { %p5333_p5 = pneg %p5332_p0 }
  0x33   : > { %4972 = dma.hbm_to_vmem [thread:$0]  (!%p5719_p11), %s7066_s4, 512, %s316_s23, [#allocation9], %s7032_s28, %s7032_s28, %s7034_s29  }
  0x34   : > { %p5340_p9 = pnand %p5339_p7, %p5333_p5 }
  0x36   : > { %5343 = shalt.err (!%p5340_p9)
}
  0x37   : > { %s7067_s5 = sld [smem:[#allocation31_spill]]  ;;  %s5748_s23 = sadd.s32 1, %s5592_s16  }
  0x38   : > { %7068 = sst [smem:[#allocation27_spill]] %s5748_s23  ;;  %s44_s25 = sadd.s32 1, %s5588_s15 }
  0x39   : > { %s41_s27 = ssub.s32 %s5592_s16, %s5748_s23  ;;  %p51_p13 = scmp.ne.s32.totalorder %s5588_s15, %s5584_s14 }
  0x3a   : > { %p42_p0 = scmp.eq.s32.totalorder %s41_s27, 0  ;;  %p52_p5 = scmp.eq.s32.totalorder %s5592_s16, 0 }
  0x3b   : > { %p5758_p10 = por %p264_p2, %p51_p13  ;;  %p5002_p3 = scmp.lt.s32.totalorder %s5592_s16, 2 }
  0x3c   : > { %s5764_s11 = scalar_select %p42_p0, %s5588_s15, %s44_s25  }
  0x3d   : > { %4975 = dma.hbm_to_vmem [thread:$0]  (!%p5719_p11), %s7067_s5, 512, %s329_s26, [#allocation12], %s7032_s28, %s7032_s28, %s7034_s29  }
  0x3e   : > { %s7069_s30 = scalar_select %p5758_p10, 1, 0 }
  0x3f   : > { %7070 = sst [smem:[#allocation28_spill]] %s5764_s11  ;;  %p53_p7 = por %p52_p5, %p51_p13 }
  0x40   : > { %s5767_s26 = sand.u32 1, %s5588_s15   ;;  %s7040_s18 = sshll.u32 %s5592_s16, 5 }
  0x41   : > { %s7039_s12 = sshll.u32 %s5767_s26, 1  ;;  %p5771_p9 = pnand %p5002_p3, %p53_p7 }
  0x42   : > { %s7043_s27 = sand.u32 1, %s5592_s16   ;;  %s7072_s1 = sld [smem:[#allocation29_spill]] }
  0x43   : > { %s383_s25 = scalar_lea.vmem [#allocation5], %s7039_s12  ;;  %s5787_s11 = scalar_lea.sflag [#allocation6], %s7043_s27 }
  0x44   : > { %s390_s5 = sshll.u32 %s383_s25, 4  ;;  %p5793_p13 = pneg %p5771_p9  ;;  %s391_s5 = int_to_ptr.vmem [resolvable:$true] %s390_s5 }
  0x48   : > { %s5781_s4 = scalar_lea.hbm %s7072_s1, %s7040_s18  ;;  %s5349_s12 = scalar_lea.hbm %s7072_s1, 64 }
  0x49   : > { %s5344_s15 = scalar_lea.hbm %s5781_s4, 32  ;;  %p5350_p3 = scmp.lt.s32.totalorder %s5781_s4, %s7072_s1 }
  0x4a   : > { %p5345_p2 = scmp.ne.s32.totalorder %s5781_s4, %s5344_s15  ;;  %p5351_p7 = scmp.lt.s32.totalorder %s5349_s12, %s5344_s15 }
  0x4c   : > { %p5347_p0 = pnand %p5793_p13, %p5345_p2  ;;  %p5352_p1 = por %p5351_p7, %p5350_p3 }
  0x4e   : > { %p5348_p5 = pneg %p5347_p0 }
  0x50   : > { %p5353_p12 = pnand %p5352_p1, %p5348_p5 }
  0x52   : > { %5356 = shalt.err (!%p5353_p12)
}
  0x53   : > { %s5357_s27 = scalar_lea.vmem %s391_s5, 32  ;;  %s5598_s20 = smov [#allocation5]  }
  0x54   : > { %p5358_p6 = scmp.ne.s32.totalorder %s391_s5, %s5357_s27  ;;  %s5362_s13 = sshll.u32 %s5598_s20, 4  ;;  %s5363_s13 = int_to_ptr.vmem [resolvable:$false] %s5362_s13 }
  0x55   : > { %s5364_s9 = scalar_lea.vmem %s5363_s13, 64  ;;  %p5365_p2 = scmp.lt.s32.totalorder %s391_s5, %s5363_s13 }
  0x56   : > { %p5360_p10 = pnand %p5358_p6, %p5793_p13  ;;  %p5366_p0 = scmp.lt.s32.totalorder %s5364_s9, %s5357_s27 }
  0x58   : > { %p5361_p4 = pneg %p5360_p10  ;;  %p5367_p8 = por %p5366_p0, %p5365_p2 }
  0x5a   : > { %p5368_p11 = pnand %p5367_p8, %p5361_p4 }
  0x5c   : > { %5371 = shalt.err (!%p5368_p11)
}
  0x5d   : > { %4985 = dma.hbm_to_vmem [thread:$0]  (!%p5771_p9), %s5781_s4, 32, %s391_s5, %s5787_s11  }
  0x5e   : > { %s5599_s15 = smov [#allocation13]   ;;  %p7074_p6 = scmp.ne.s32.totalorder %s7065_s24, 0 }
  0x5f   : > { %s344_s12 = sshll.u32 %s5599_s15, 4  ;;  %s345_s12 = int_to_ptr.vmem [resolvable:$true] %s344_s12 }
  0x60   : > { %s5383_s18 = scalar_lea.vmem %s345_s12, 1024  ;;  %p7075_p12 = pneg %p7074_p6 }
  0x61   : > { %p5384_p1 = scmp.ne.s32.totalorder %s345_s12, %s5383_s18  ;;  %p5391_p3 = scmp.lt.s32.totalorder %s345_s12, %s345_s12 }
  0x62   : > { %p5392_p7 = scmp.lt.s32.totalorder %s5383_s18, %s5383_s18 }
  0x63   : > { %p5386_p10 = pnand %p5384_p1, %p7075_p12 }
  0x64   : > { %p5393_p2 = por %p5392_p7, %p5391_p3 }
  0x65   : > { %p5387_p5 = pneg %p5386_p10 }
  0x67   : > { %p5394_p4 = pnand %p5393_p2, %p5387_p5 }
  0x69   : > { %5397 = shalt.err (!%p5394_p4)
}
  0x6a   : > { %s7076_s9 = smov 8   ;;  %s7077_s13 = smov 128  }
  0x6b   : > { %s7078_s7 = sld [smem:[#allocation32_spill]]  ;;  %s7079_s20 = sshll.u32 %s5592_s16, 5 }
  0x6c   : > { %s5828_s29 = scalar_lea.hbm %s7021_s0, %s7079_s20  ;;  %s7080_s25 = sshll.u32 %s5767_s26, 1 }
  0x6d   : > { %s365_s24 = scalar_lea.vmem [#allocation2], %s7080_s25  ;;  %s4492_s18 = sshll.u32 %s5767_s26, 5 }
  0x6e   : > { %s372_s15 = sshll.u32 %s365_s24, 4  ;;  %s362_s4 = scalar_lea.sflag [#allocation3], %s5767_s26  ;;  %s373_s15 = int_to_ptr.vmem [resolvable:$true] %s372_s15 }
  0x6f   : > { %s5398_s5 = scalar_lea.hbm %s5828_s29, 32  ;;  %s5403_s27 = scalar_lea.hbm %s7021_s0, 64 }
  0x70   : > { %p5399_p8 = scmp.ne.s32.totalorder %s5828_s29, %s5398_s5  ;;  %p5404_p1 = scmp.lt.s32.totalorder %s5828_s29, %s7021_s0 }
  0x71   : > { %4978 = dma.hbm_to_vmem [thread:$0]  (!%p7074_p6), %s7078_s7, 1024, %s345_s12, [#allocation12], %s7077_s13, %s7077_s13, %s7076_s9  }
  0x72   : > { %p5401_p11 = pnand %p5399_p8, %p5793_p13  ;;  %p5405_p6 = scmp.lt.s32.totalorder %s5403_s27, %s5398_s5 }
  0x74   : > { %p5402_p0 = pneg %p5401_p11  ;;  %p5406_p12 = por %p5405_p6, %p5404_p1 }
  0x76   : > { %p5407_p10 = pnand %p5406_p12, %p5402_p0 }
  0x78   : > { %5410 = shalt.err (!%p5407_p10)
}
  0x79   : > { %s5411_s25 = scalar_lea.vmem %s373_s15, 32  ;;  %s5600_s24 = smov [#allocation2]  }
  0x7a   : > { %p5412_p5 = scmp.ne.s32.totalorder %s373_s15, %s5411_s25  ;;  %s5416_s7 = sshll.u32 %s5600_s24, 4  ;;  %s5417_s7 = int_to_ptr.vmem [resolvable:$false] %s5416_s7 }
  0x7b   : > { %s5418_s10 = scalar_lea.vmem %s5417_s7, 64  ;;  %p5419_p2 = scmp.lt.s32.totalorder %s373_s15, %s5417_s7 }
  0x7c   : > { %p5414_p3 = pnand %p5412_p5, %p5793_p13  ;;  %p5420_p4 = scmp.lt.s32.totalorder %s5418_s10, %s5411_s25 }
  0x7e   : > { %p5415_p7 = pneg %p5414_p3  ;;  %p5421_p8 = por %p5420_p4, %p5419_p2 }
  0x80   : > { %p5422_p11 = pnand %p5421_p8, %p5415_p7 }
  0x82   : > { %5425 = shalt.err (!%p5422_p11)
}
  0x83   : > { %4982 = dma.hbm_to_vmem [thread:$0]  (!%p5771_p9), %s5828_s29, 32, %s373_s15, %s362_s4  }
  0x84   : > { %s4567_s1 = sshll.u32 %s5592_s16, 9  ;;  %s401_s7 = scalar_lea.vmem [#allocation7], %s4492_s18 }
  0x85   : > { %s5854_s27 = scalar_lea.hbm %s7023_s2, %s4567_s1  ;;  %s408_s10 = sshll.u32 %s401_s7, 4  ;;  %s5856_s10 = int_to_ptr.vmem [resolvable:$true] %s408_s10 }
  0x86   : > { %s4495_s20 = sshll.u32 %s5767_s26, 4  ;;  %s5426_s28 = scalar_lea.hbm %s5854_s27, 512 }
  0x87   : > { %p5427_p0 = scmp.ne.s32.totalorder %s5854_s27, %s5426_s28  ;;  %s5431_s4 = scalar_lea.hbm %s7023_s2, 1024 }
  0x88   : > { %p5432_p12 = scmp.lt.s32.totalorder %s5854_s27, %s7023_s2  ;;  %p5433_p10 = scmp.lt.s32.totalorder %s5431_s4, %s5426_s28 }
  0x89   : > { %p5429_p1 = pnand %p5427_p0, %p5793_p13 }
  0x8a   : > { %p5434_p5 = por %p5433_p10, %p5432_p12 }
  0x8b   : > { %p5430_p6 = pneg %p5429_p1 }
  0x8d   : > { %p5435_p3 = pnand %p5434_p5, %p5430_p6 }
  0x8f   : > { %5438 = shalt.err (!%p5435_p3)
}
  0x90   : > { %s5439_s18 = scalar_lea.vmem %s5856_s10, 512  ;;  %s5601_s1 = smov [#allocation7]  }
  0x91   : > { %p5440_p7 = scmp.ne.s32.totalorder %s5856_s10, %s5439_s18  ;;  %s5444_s5 = sshll.u32 %s5601_s1, 4  ;;  %s5445_s5 = int_to_ptr.vmem [resolvable:$false] %s5444_s5 }
  0x92   : > { %s5446_s12 = scalar_lea.vmem %s5445_s5, 1024  ;;  %p5447_p8 = scmp.lt.s32.totalorder %s5856_s10, %s5445_s5 }
  0x93   : > { %p5442_p2 = pnand %p5440_p7, %p5793_p13  ;;  %p5448_p11 = scmp.lt.s32.totalorder %s5446_s12, %s5439_s18 }
  0x95   : > { %p5443_p4 = pneg %p5442_p2  ;;  %p5449_p0 = por %p5448_p11, %p5447_p8 }
  0x97   : > { %p5450_p1 = pnand %p5449_p0, %p5443_p4 }
  0x99   : > { %5453 = shalt.err (!%p5450_p1)
}
  0x9a   : > { %4988 = dma.hbm_to_vmem [thread:$0]  (!%p5771_p9), %s5854_s27, 512, %s5856_s10, %s5787_s11, %s7077_s13, %s7077_s13, %s7076_s9  }
  0x9b   : > { %s4568_s7 = sshll.u32 %s5592_s16, 8  ;;  %s422_s4 = scalar_lea.vmem [#allocation8], %s4495_s20 }
  0x9c   : > { %s5887_s15 = scalar_lea.hbm %s7024_s3, %s4568_s7  ;;  %s429_s25 = sshll.u32 %s422_s4, 4  ;;  %s5891_s25 = int_to_ptr.vmem [resolvable:$true] %s429_s25 }
  0x9d   : > { %s7081_s24 = sand.u32 1, %s5592_s16   ;;  %s5454_s1 = scalar_lea.hbm %s5887_s15, 256 }
  0x9e   : > { %s5895_s18 = scalar_lea.sflag [#allocation9], %s7081_s24  ;;  %p5455_p6 = scmp.ne.s32.totalorder %s5887_s15, %s5454_s1 }
  0x9f   : > { %s5459_s13 = scalar_lea.hbm %s7024_s3, 512  ;;  %p5460_p5 = scmp.lt.s32.totalorder %s5887_s15, %s7024_s3 }
  0xa0   : > { %p5457_p12 = pnand %p5455_p6, %p5793_p13  ;;  %p5461_p3 = scmp.lt.s32.totalorder %s5459_s13, %s5454_s1 }
  0xa2   : > { %p5458_p10 = pneg %p5457_p12  ;;  %p5462_p7 = por %p5461_p3, %p5460_p5 }
  0xa4   : > { %p5463_p2 = pnand %p5462_p7, %p5458_p10 }
  0xa6   : > { %5466 = shalt.err (!%p5463_p2)
}
  0xa7   : > { %s5467_s10 = scalar_lea.vmem %s5891_s25, 256  ;;  %s5602_s20 = smov [#allocation8]  }
  0xa8   : > { %p5468_p4 = scmp.ne.s32.totalorder %s5891_s25, %s5467_s10  ;;  %s5472_s5 = sshll.u32 %s5602_s20, 4  ;;  %s5473_s5 = int_to_ptr.vmem [resolvable:$false] %s5472_s5 }
  0xa9   : > { %s5474_s12 = scalar_lea.vmem %s5473_s5, 512  ;;  %p5475_p0 = scmp.lt.s32.totalorder %s5891_s25, %s5473_s5 }
  0xaa   : > { %p5470_p8 = pnand %p5468_p4, %p5793_p13  ;;  %p5476_p1 = scmp.lt.s32.totalorder %s5474_s12, %s5467_s10 }
  0xac   : > { %p5471_p11 = pneg %p5470_p8  ;;  %p5477_p6 = por %p5476_p1, %p5475_p0 }
  0xae   : > { %p5478_p12 = pnand %p5477_p6, %p5471_p11 }
  0xb0   : > { %5481 = shalt.err (!%p5478_p12)
}
  0xb1   : > { %s5603_s7 = smov 32   ;;  %s5604_s28 = smov 2  }
  0xb2   : > { %4991 = dma.hbm_to_vmem [thread:$0]  (!%p5771_p9), %s5887_s15, 256, %s5891_s25, %s5895_s18, %s5603_s7, %s5603_s7, %s5604_s28  }
  0xb3   : > { %p7082_p13 = scmp.ne.s32.totalorder %s7064_s21, 0 }
  0xb4   : > { %s5921_s23 = sand.u32 (!%p7082_p13), 1, %s5584_s14   ;;  %p7083_p10 = scmp.ne.s32.totalorder (!%p7082_p13), %s7061_s19, 0 }
  0xb5   : > { %441 = sbr.rel (%p7082_p13) target bundleno = 13309 (0x33fd), region = 56  ;;  %s4499_s29 = sshll.u32 (!%p7082_p13), %s5921_s23, 1 }
  0xb6   : > { %s444_s4 = scalar_lea.sflag (!%p7082_p13), [#allocation3], %s5921_s23  ;;  %s5925_s24 = scalar_lea.vmem (!%p7082_p13), [#allocation2], %s4499_s29 }
  0xba   : > { %5551 = dma.done.wait (%p7083_p10), %s444_s4, 32  }
  0xbb   : > { %5553 = vsyncadd (%p7083_p10), %s444_s4, 4294967264  ;;  %s452_s22 = sand.u32 1, %s5691_s17   ;;  %s5932_s15 = scalar_lea.vmem [#allocation5], %s4499_s29 }
  0xbc   : > { %s453_s21 = scalar_lea.sflag [#allocation6], %s452_s22 }
  0xbd   : > { %5555 = dma.done.wait (%p7083_p10), %s453_s21, 544  }
  0xbe   : > { %5557 = vsyncadd (%p7083_p10), %s453_s21, 4294966752  ;;  %s4501_s25 = sshll.u32 %s5921_s23, 5  ;;  %s5940_s18 = sshll.u32 %s5921_s23, 4 }
  0xbf   : > { %s5942_s1 = scalar_lea.vmem [#allocation7], %s4501_s25  ;;  %s471_s11 = scalar_lea.sflag [#allocation9], %s452_s22 }
  0xc0   : > { %s5945_s9 = scalar_lea.vmem [#allocation8], %s5940_s18 }
  0xc1   : > { %5559 = dma.done.wait (%p7083_p10), %s471_s11, 256  }
  0xc2   : > { %5561 = vsyncadd (%p7083_p10), %s471_s11, 4294967040  ;;  %p7084_p9 = scmp.eq.s32.totalorder %s5691_s17, 0 }
  0xc4   : > { %5563 = dma.done.wait (%p7084_p9), [#allocation9], 512   ;;  %p7085_p5 = pmov %p7084_p9 }
  0xc6   : > { %5565 = vsyncadd (%p7085_p5), [#allocation9], 4294966784  ;;  %p7086_p3 = pmov %p7085_p5 }
  0xc8   : > { %5567 = dma.done.wait (%p7086_p3), [#allocation12], 1536   ;;  %p7087_p7 = pmov %p7086_p3 }
  0xc9   : > { %v5605_v0 = vmov 0.0   ;;  %vm5606_vm0 = vmmov 0   ;;  %v550_v1 = vld [vmem:[#allocation11 + $0x18] sm:$0xff]  ;;  %v549_v3 = vld [vmem:[#allocation11 + $0x10] sm:$0xff]  ;;  %v548_v5 = vld [vmem:[#allocation11 + $0x8] sm:$0xff]  ;;  %vm551_vm1 = vcmask 261120   ;;  %v743_v16 = vlaneseq }
  0xca   : > { %5569 = vsyncadd (%p7087_p7), [#allocation12], 4294965760  ;;  %4705 = vmatprep.subr.mxu1 %v5605_v0  ;;  %4713 = vmatprep.mubr.msk.f32.mxu1 %vm5606_vm0, %v5605_v0  ;;  %v5962_v2 = vld [vmem:[#allocation10 + $0x18] sm:$0xff]  ;;  %v5965_v4 = vld [vmem:[#allocation10 + $0x10] sm:$0xff]  ;;  %v5607_v14 = vmov 1966171168  }
  0xcb   : > { %4691 = vmatprep.subr.mxu0 %v550_v1  ;;  %4706 = vmatpush3.msra.mxu1 %v5962_v2  ;;  %v5968_v6 = vld [vmem:[#allocation10 + $0x8] sm:$0xff]  ;;  %v547_v7 = vld [vmem:[#allocation11] sm:$0xff]  ;;  %v5978_v10 = vld [vmem:[%s5925_s24] sm:$0x3]  ;;  %v741_v15 = vunpack.c.l.s4 %v5607_v14  ;;  %v744_v18 = vshrl.u32 %v743_v16, 7  ;;  %v807_v54 = vand.u32 127, %v743_v16 }
  0xcc   : > { %4692 = vmatpush3.msra.mxu0 %v550_v1  ;;  %4707 = vmatprep.subr.mxu1 %v5605_v0  ;;  %v5972_v8 = vld [vmem:[#allocation10] sm:$0xff]  ;;  %v544_v11 = vld [vmem:[%s5942_s1 + $0x8] sm:$0xff]  ;;  %v545_v12 = vld [vmem:[%s5942_s1 + $0x10] sm:$0xff]  ;;  %vm817_vm2 = vcmask 130112   ;;  %vm828_vm3 = vcmask 1041409   ;;  %vm831_vm4 = vcmask 123904  }
  0xcd   : > { %4693 = vmatprep.subr.mxu0 %v549_v3  ;;  %4708 = vmatpush3.msra.mxu1 %v5965_v4  ;;  %v543_v9 = vld [vmem:[%s5942_s1] sm:$0xff]  ;;  %v546_v13 = vld [vmem:[%s5942_s1 + $0x18] sm:$0xff]  ;;  %v742_v17 = vunpack.c.0.s8 %v741_v15  ;;  %v6009_v23 = vsub.s32 0, %v744_v18  ;;  %v6039_v51 = vsub.s32 1, %v744_v18  ;;  %v812_v55 = vadd.s32 4294967288, %v807_v54  ;;  %s5609_s26 = smov 32  }
  0xce   : > { %4694 = vmatpush3.msra.mxu0 %v549_v3  ;;  %4709 = vmatprep.subr.mxu1 %v5605_v0  ;;  %v6028_v37 = vld [vmem:[%s7027_s6] ss:$0 sm:$0xff]  ;;  %v665_v50 = vld [vmem:[%s5945_s9] sm:$0x3]  ;;  %v6045_v59 = vsub.s32 %v807_v54, %v744_v18  ;;  %vm952_vm5 = vcmask 523520   ;;  %s5610_s27 = smov 96  }
  0xcf   : > { %4695 = vmatprep.subr.mxu0 %v548_v5  ;;  %4710 = vmatpush3.msra.mxu1 %v5968_v6  ;;  %v6004_v19 = vsub.s32 %v742_v17, %v744_v18  ;;  %v901_v52 = vrot.slane %v665_v50, %v6009_v23  ;;  %v912_v53 = vrot.slane %v665_v50, %v6039_v51  ;;  %vm1020_vm6 = vcmask 523264   ;;  %s5611_s5 = smov 64   ;;  %s6148_s12 = scalar_lea.vmem [#allocation14], %s5940_s18 }
  0xd0   : > { %4696 = vmatpush3.msra.mxu0 %v548_v5  ;;  %4711 = vmatprep.subr.mxu1 %v5605_v0  ;;  %v6043_v57 = vsub.s32 %v812_v55, %v744_v18  ;;  %vm1126_vm7 = vcmask 254976   ;;  %s6893_s25 = scalar_lea.vmem [#allocation15], %s5940_s18  ;;  %s4569_s1 = sshll.u32 %s5691_s17, 8 }
  0xd1   : > { %4697 = vmatprep.subr.mxu0 %v547_v7  ;;  %4712 = vmatpush3.msra.mxu1 %v5972_v8  ;;  %s4283_s18 = sshll.u32 %s6893_s25, 4  ;;  %s7088_s19 = sld [smem:[#allocation34_spill]]  ;;  %s6929_s18 = int_to_ptr.vmem [resolvable:$true] %s4283_s18 }
  0xd2   : > { %4698 = vmatpush3.msra.mxu0 %v547_v7  ;;  %4699 = vmatprep.mubr.msk.f32.mxu0 %vm551_vm1, %v543_v9  ;;  %s5482_s10 = scalar_lea.vmem %s6929_s18, 256  ;;  %p7089_p4 = scmp.ne.s32.totalorder %s7069_s30, 0 }
  0xd3   : > { %4714 = vmatmul.mubr.msk.f32.vlgmr.msra.gmra.mxu1 %vm551_vm1, %v5978_v10  ;;  %4700 = vmatmul.mubr.msk.f32.vlgmr.msra.gmra.mxu0 %vm551_vm1, %v544_v11  ;;  %p5483_p2 = scmp.ne.s32.totalorder %s6929_s18, %s5482_s10  ;;  %s5612_s20 = smov [#allocation15]  }
  0xd4   : > { %4702 = vmatprep.mubr.msk.f32.mxu0 %vm551_vm1, %v545_v12  ;;  %4716 = vmatprep.subr.mxu0 %v5605_v0  ;;  %v5608_v12 = vmov 0  }
  0xd5   : > { %4735 = vmatprep.subr.mxu1 %v5605_v0  ;;  %4743 = vmatprep.mubr.msk.f32.mxu1 %vm5606_vm0, %v5605_v0  ;;  %p5484_p8 = pnand %p5483_p2, %p7089_p4 }
  0xd6   : > { %4736 = vmatpush3.msra.mxu1 %v5962_v2  ;;  %5055 = vset.pattern.permute.xlu0 %v5608_v12 }
  0xd7   : > { %4703 = vmatmul.mubr.msk.f32.gmra.mxu0 %vm551_vm1, %v546_v13  ;;  %4737 = vmatprep.subr.mxu1 %v5605_v0  ;;  %s6937_s13 = scalar_lea.hbm %s7088_s19, %s4569_s1  ;;  %p5485_p11 = pneg %p5484_p8 }
  0xd8   : > { %4732 = vmatprep.mubr.msk.f32.mxu0 %vm5606_vm0, %v5605_v0  ;;  %4738 = vmatpush3.msra.mxu1 %v5965_v4 }
  0xd9   : > { %4739 = vmatprep.subr.mxu1 %v5605_v0  ;;  %5054 = vset.pattern.permute.xlu1 %v5608_v12  ;;  %v6075_v12 = vld [vmem:[#allocation13 + $0x38] sm:$0xff] }
  0xda   : > { %4740 = vmatpush3.msra.mxu1 %v5968_v6  ;;  %4717 = vmatpush3.msra.mxu0 %v6075_v12 }
  0xdb   : > { %4741 = vmatprep.subr.mxu1 %v5605_v0  ;;  %4718 = vmatprep.subr.mxu0 %v5605_v0 }
  0xdc   : > { %4742 = vmatpush3.msra.mxu1 %v5972_v8 }
  0xdd   : > { %4746 = vmatprep.subr.mxu1 %v5605_v0 }
 0x193   : > { %v735_v20 = vpop.f32.mrf.mxu1  ;;  %v6006_v21 = vpop.f32.mrf.mxu0 }
 0x194   : > { %v746_v22 = vrot.slane %v735_v20, %v6004_v19 }
 0x195   : > { %v4715_v24 = vpop.f32.mrf.mxu1  ;;  %v6011_v25 = vpop.f32.mrf.mxu0 }
 0x196   : > { %v747_v26 = vcombine.high %v746_v22, %v746_v22  ;;  %v754_v27 = vrot.slane %v746_v22, %v6004_v19 }
 0x197   : > { %v6014_v28 = vpop.f32.mrf.mxu0 }
 0x198   : > { %v761_v29 = vrot.slane %v747_v26, %v6004_v19  ;;  %v765_v30 = vrot.slane %v754_v27, %v6009_v23 }
 0x199   : > { %v6018_v31 = vpop.f32.mrf.mxu0 }
 0x19a   : > { %v769_v32 = vrot.slane %v761_v29, %v6009_v23  ;;  %v772_v33 = vadd.f32 %v765_v30, %v6011_v25  ;;  %v773_v34 = vadd.f32 %v6006_v21, %v765_v30 }
 0x19c   : > { %5056 = vtanh.f32 %v772_v33  ;;  %v774_v35 = vadd.f32 %v769_v32, %v6018_v31  ;;  %v775_v36 = vadd.f32 %v6014_v28, %v769_v32 }
 0x19d   : > { %5058 = vtanh.f32 %v773_v34 }
 0x19e   : > { %5060 = vtanh.f32 %v774_v35 }
 0x19f   : > { %5062 = vtanh.f32 %v775_v36 }
 0x1a9   : > { %v5057_v38 = vpop.eup %5056 }
 0x1aa   : > { %v5059_v39 = vpop.eup %5058  ;;  %v786_v40 = vmul.f32 %v5057_v38, %v6028_v37 }
 0x1ab   : > { %v5061_v41 = vpop.eup %5060  ;;  %v787_v45 = vmul.f32 %v5059_v39, %v6028_v37 }
 0x1ac   : > { %v5063_v42 = vpop.eup %5062  ;;  %v790_v43 = vsel %vm551_vm1, %v786_v40, 0.0  ;;  %v788_v44 = vmul.f32 %v5061_v41, %v6028_v37 }
 0x1ad   : > { %791 = vadd.xlane.f32.xlu0 %v790_v43  ;;  %v789_v47 = vmul.f32 %v5063_v42, %v6028_v37  ;;  %v793_v48 = vsel %vm551_vm1, %v787_v45, 0.0 }
 0x1ae   : > { %v796_v46 = vsel %vm551_vm1, %v788_v44, 0.0 }
 0x1af   : > { %797 = vadd.xlane.f32.xlu1 %v796_v46  ;;  %v799_v49 = vsel %vm551_vm1, %v789_v47, 0.0 }
 0x1b1   : > { %794 = vadd.xlane.f32.xlu0 %v793_v48 }
 0x1b3   : > { %800 = vadd.xlane.f32.xlu1 %v799_v49 }
 0x1c4   : > { %903 = vbcast.lane.b32.xlu1 %v901_v52, 256 }
 0x1c8   : > { %914 = vbcast.lane.b32.xlu1 %v912_v53, 256 }
 0x1cc   : > { %918 = vbcast.lane.b32.xlu1 %v912_v53, 264 }
 0x236   : > { %v792_v56 = vpop.xlane.xlu0 %791 }
 0x237   : > { %v811_v63 = vrot.slane %v792_v56, %v6045_v59 }
 0x238   : > { %v798_v58 = vpop.xlane.xlu1 %797 }
 0x239   : > { %v822_v1 = vrot.slane %v798_v58, %v6045_v59 }
 0x23a   : > { %v795_v60 = vpop.xlane.xlu0 %794 }
 0x23b   : > { %v816_v61 = vrot.slane %v795_v60, %v6043_v57 }
 0x23c   : > { %v801_v62 = vpop.xlane.xlu1 %800 }
 0x23d   : > { %v826_v3 = vrot.slane %v801_v62, %v6043_v57  ;;  %v818_v5 = vsel %vm817_vm2, %v816_v61, %v811_v63 }
 0x23f   : > { %v827_v7 = vsel %vm817_vm2, %v826_v3, %v822_v1 }
 0x240   : > { %v829_v9 = vsel %vm828_vm3, %v827_v7, %v818_v5  ;;  %v904_v30 = vpop.permute.xlu1 %903 }
 0x241   : > { %v832_v11 = vsel %vm831_vm4, %v829_v9, -inf }
 0x242   : > { %833 = vmax.xlane.f32.xlu0 %v832_v11 }
 0x244   : > { %v915_v35 = vpop.permute.xlu1 %914 }
 0x248   : > { %v919_v41 = vpop.permute.xlu1 %918 }
 0x258   : > { %907 = vbcast.lane.b32.xlu0 %v901_v52, 264 }
 0x2cb   : > { %v834_v13 = vpop.xlane.xlu0 %833 }
 0x2cc   : > { %v839_v14 = vrot.slane %v834_v13, %v6009_v23  ;;  %v843_v15 = vrot.slane %v834_v13, %v6039_v51  ;;  %v6077_v13 = vld [vmem:[#allocation13 + $0x30] sm:$0xff] }
 0x2cd   : > { %4719 = vmatpush3.msra.mxu0 %v6077_v13 }
 0x2ce   : > { %v846_v16 = vsub.f32 %v792_v56, %v839_v14  ;;  %v847_v17 = vsub.f32 %v795_v60, %v839_v14  ;;  %v848_v18 = vsub.f32 %v798_v58, %v843_v15  ;;  %v849_v24 = vsub.f32 %v801_v62, %v843_v15  ;;  %v6081_v14 = vld [vmem:[#allocation13 + $0x28] sm:$0xff]  ;;  %4720 = vmatprep.subr.mxu0 %v5605_v0  ;;  %v6085_v15 = vld [vmem:[#allocation13 + $0x20] sm:$0xff] }
 0x2cf   : > { %v908_v39 = vpop.permute.xlu0 %907  ;;  %4721 = vmatpush3.msra.mxu0 %v6081_v14 }
 0x2d0   : > { %v850_v20 = vmul.f32 1.442695, %v846_v16  ;;  %v852_v22 = vmul.f32 1.442695, %v847_v17  ;;  %v854_v26 = vmul.f32 1.442695, %v848_v18  ;;  %4722 = vmatprep.subr.mxu0 %v5605_v0 }
 0x2d1   : > { %v856_v27 = vmul.f32 1.442695, %v849_v24  ;;  %4723 = vmatpush3.msra.mxu0 %v6085_v15  ;;  %v6093_v16 = vld [vmem:[#allocation13 + $0x10] sm:$0xff]  ;;  %v6097_v17 = vld [vmem:[#allocation13 + $0x8] sm:$0xff] }
 0x2d2   : > { %5064 = vpow2.f32 %v850_v20  ;;  %4724 = vmatprep.subr.mxu0 %v5605_v0 }
 0x2d3   : > { %5066 = vpow2.f32 %v852_v22 }
 0x2d4   : > { %5068 = vpow2.f32 %v854_v26 }
 0x2d5   : > { %5070 = vpow2.f32 %v856_v27 }
 0x2df   : > { %v5065_v29 = vpop.eup %5064 }
 0x2e0   : > { %v5067_v32 = vpop.eup %5066  ;;  %863 = vperm.xlu1 %5054, %v5065_v29   ;;  %v924_v34 = vmul.f32 %v5065_v29, %v904_v30 }
 0x2e1   : > { %866 = vperm.xlu0 %5055, %v5067_v32   ;;  %v5069_v33 = vpop.eup %5068  ;;  %v925_v40 = vmul.f32 %v5067_v32, %v908_v39 }
 0x2e2   : > { %v5071_v36 = vpop.eup %5070  ;;  %v926_v38 = vmul.f32 %v5069_v33, %v915_v35 }
 0x2e3   : > { %v927_v42 = vmul.f32 %v5071_v36, %v919_v41 }
 0x2e4   : > { %869 = vperm.xlu1 %5054, %v5069_v33  }
 0x2e5   : > { %930 = vperm.xlu0 %5055, %v924_v34  }
 0x2e8   : > { %872 = vperm.xlu1 %5054, %v5071_v36  }
 0x2e9   : > { %940 = vperm.xlu0 %5055, %v926_v38  }
 0x2ec   : > { %935 = vperm.xlu1 %5054, %v925_v40  }
 0x2f0   : > { %945 = vperm.xlu1 %5054, %v927_v42  }
 0x35b   : > { %v864_v43 = vpop.permute.xlu1 %863 }
 0x35c   : > { %v867_v44 = vpop.permute.xlu0 %866  ;;  %v877_v47 = vrot.slane %v864_v43, %v6045_v59 }
 0x35d   : > { %v881_v46 = vrot.slane %v867_v44, %v6043_v57 }
 0x35f   : > { %v870_v45 = vpop.permute.xlu1 %869  ;;  %v882_v53 = vsel %vm817_vm2, %v881_v46, %v877_v47  ;;  %v6111_v47 = vld [vmem:[#allocation13] sm:$0xff] }
 0x360   : > { %v931_v48 = vpop.permute.xlu0 %930  ;;  %v886_v50 = vrot.slane %v870_v45, %v6045_v59 }
 0x361   : > { %v974_v63 = vrot.slane %v931_v48, %v6045_v59  ;;  %v948_v24 = vmul.f32 %v931_v48, %v6011_v25  ;;  %v664_v48 = vld [vmem:[%s5932_s15] sm:$0x3] }
 0x363   : > { %v873_v49 = vpop.permute.xlu1 %872  ;;  %v953_v32 = vsel %vm952_vm5, %v948_v24, 0.0 }
 0x364   : > { %v890_v52 = vrot.slane %v873_v49, %v6043_v57  ;;  %v941_v60 = vpop.permute.xlu0 %940 }
 0x365   : > { %v983_v1 = vrot.slane %v941_v60, %v6045_v59  ;;  %v950_v20 = vmul.f32 %v941_v60, %v6018_v31 }
 0x366   : > { %v891_v54 = vsel %vm817_vm2, %v890_v52, %v886_v50 }
 0x367   : > { %v936_v55 = vpop.permute.xlu1 %935  ;;  %v892_v56 = vsel %vm828_vm3, %v891_v54, %v882_v53  ;;  %v962_v27 = vsel %vm952_vm5, %v950_v20, 0.0 }
 0x368   : > { %v894_v58 = vsel %vm831_vm4, %v892_v56, 0.0  ;;  %v978_v61 = vrot.slane %v936_v55, %v6043_v57  ;;  %v949_v22 = vmul.f32 %v6006_v21, %v936_v55 }
 0x369   : > { %895 = vadd.xlane.f32.xlu0 %v894_v58 }
 0x36a   : > { %v979_v5 = vsel %vm817_vm2, %v978_v61, %v974_v63  ;;  %v954_v29 = vsel %vm952_vm5, %v949_v22, 0.0 }
 0x36b   : > { %v946_v62 = vpop.permute.xlu1 %945  ;;  %v955_v33 = vadd.f32 %v954_v29, %v953_v32 }
 0x36c   : > { %v987_v3 = vrot.slane %v946_v62, %v6043_v57  ;;  %v951_v18 = vmul.f32 %v6014_v28, %v946_v62 }
 0x36d   : > { %v956_v36 = vrot.slane %v955_v33, 4 }
 0x36e   : > { %v988_v7 = vsel %vm817_vm2, %v987_v3, %v983_v1  ;;  %v963_v26 = vsel %vm952_vm5, %v951_v18, 0.0  ;;  %v6134_v3 = vld [vmem:[%s7029_s8] ss:$0 sm:$0xff] }
 0x36f   : > { %v989_v9 = vsel %vm828_vm3, %v988_v7, %v979_v5  ;;  %v964_v30 = vadd.f32 %v963_v26, %v962_v27  ;;  %v957_v42 = vadd.f32 %v956_v36, %v955_v33 }
 0x370   : > { %v991_v11 = vsel %vm831_vm4, %v989_v9, 0.0 }
 0x371   : > { %992 = vadd.xlane.f32.xlu1 %v991_v11  ;;  %v965_v35 = vrot.slane %v964_v30, 4  ;;  %v958_v44 = vrot.slane %v957_v42, 2 }
 0x373   : > { %v966_v40 = vadd.f32 %v965_v35, %v964_v30  ;;  %v959_v46 = vadd.f32 %v958_v44, %v957_v42 }
 0x375   : > { %v967_v43 = vrot.slane %v966_v40, 2  ;;  %v960_v50 = vrot.slane %v959_v46, 1 }
 0x377   : > { %v968_v45 = vadd.f32 %v967_v43, %v966_v40  ;;  %v961_v55 = vadd.f32 %v960_v50, %v959_v46 }
 0x379   : > { %v969_v49 = vrot.slane %v968_v45, 1 }
 0x37b   : > { %v970_v53 = vadd.f32 %v969_v49, %v968_v45 }
 0x382   : > { %1010 = vrot.lane.b32.xlu1 %v5978_v10, %s5609_s26  ;;  %v6089_v10 = vld [vmem:[#allocation13 + $0x18] sm:$0xff] }
 0x383   : > { %4725 = vmatpush3.msra.mxu0 %v6089_v10 }
 0x384   : > { %4726 = vmatprep.subr.mxu0 %v5605_v0 }
 0x385   : > { %4727 = vmatpush3.msra.mxu0 %v6093_v16 }
 0x386   : > { %4728 = vmatprep.subr.mxu0 %v5605_v0  ;;  %1102 = vrot.lane.b32.xlu1 %v664_v48, %s5609_s26 }
 0x387   : > { %4729 = vmatpush3.msra.mxu0 %v6097_v17 }
 0x388   : > { %4730 = vmatprep.subr.mxu0 %v5605_v0 }
 0x389   : > { %4731 = vmatpush3.msra.mxu0 %v6111_v47 }
 0x38a   : > { %4765 = vmatprep.subr.mxu0 %v5605_v0 }
 0x3f2   : > { %v896_v34 = vpop.xlane.xlu0 %895 }
 0x3f3   : > { %v994_v38 = vmul.f32 1e-05, %v896_v34 }
 0x3fa   : > { %v993_v39 = vpop.xlane.xlu1 %992 }
 0x3fb   : > { %v995_v41 = vmax.f32 %v993_v39, %v994_v38 }
 0x3fd   : > { %5072 = vrcp.f32 %v995_v41 }
 0x3fe   : > { %v1011_v62 = vpop.permute.xlu1 %1010 }
 0x402   : > { %v1103_v29 = vpop.permute.xlu1 %1102 }
 0x40a   : > { %v5073_v52 = vpop.eup %5072 }
 0x40b   : > { %v998_v54 = vrot.slane %v5073_v52, 1  ;;  %v1001_v58 = vmul.f32 %v5073_v52, %v961_v55 }
 0x40d   : > { %v1002_v56 = vmul.f32 %v998_v54, %v970_v53 }
 0x40f   : > { %v1005_v60 = vrot.slane %v1002_v56, 7 }
 0x411   : > { %v1006_v61 = vsel %vm828_vm3, %v1005_v60, %v1001_v58 }
 0x412   : > { %1007 = vrot.lane.b32.xlu0 %v1006_v61, %s5610_s27 }
 0x484   : > { %v1008_v63 = vpop.permute.xlu0 %1007 }
 0x485   : > { %v1013_v1 = vsel %vm551_vm1, %v1008_v63, %v1011_v62 }
 0x486   : > { %4733 = vmatmul.mubr.msk.f32.vlgmr.msra.gmra.mxu0 %vm1020_vm6, %v1013_v1 }
 0x487   : > { %4766 = vmatpush3.msra.mxu0 %v5962_v2  ;;  %4773 = vmatprep.mubr.msk.f32.mxu0 %vm5606_vm0, %v5605_v0 }
 0x488   : > { %4767 = vmatprep.subr.mxu0 %v5605_v0 }
 0x489   : > { %4768 = vmatpush3.msra.mxu0 %v5965_v4 }
 0x48a   : > { %4769 = vmatprep.subr.mxu0 %v5605_v0 }
 0x48b   : > { %4770 = vmatpush3.msra.mxu0 %v5968_v6 }
 0x48c   : > { %4771 = vmatprep.subr.mxu0 %v5605_v0 }
 0x48d   : > { %4772 = vmatpush3.msra.mxu0 %v5972_v8 }
 0x48e   : > { %4776 = vmatprep.subr.mxu0 %v5605_v0 }
 0x546   : > { %v1090_v5 = vpop.f32.mrf.mxu0 }
 0x547   : > { %v1091_v7 = vadd.f32 %v6134_v3, %v1090_v5 }
 0x548   : > { %v4734_v9 = vpop.f32.mrf.mxu0 }
 0x549   : > { %5074 = vtanh.f32 %v1091_v7  ;;  %v4516_v18 = vmul.f32 -1.442695, %v1091_v7  ;;  %v4517_v9 = vld [vmem:[%s5945_s9 + $0x2] sm:$0x3] }
 0x54b   : > { %5076 = vpow2.f32 %v4516_v18  ;;  %v1368_v18 = vrot.slane %v4517_v9, %v6039_v51 }
 0x556   : > { %v5075_v11 = vpop.eup %5074 }
 0x557   : > { %1107 = vrot.lane.b32.xlu0 %v5075_v11, %s5611_s5  ;;  %v1357_v11 = vrot.slane %v4517_v9, %v6009_v23 }
 0x558   : > { %v5077_v20 = vpop.eup %5076 }
 0x559   : > { %v1097_v22 = vadd.f32 1.0, %v5077_v20 }
 0x55b   : > { %5078 = vrcp.f32 %v1097_v22 }
 0x568   : > { %v5079_v24 = vpop.eup %5078 }
 0x569   : > { %v1105_v30 = vmul.f32 %v5079_v24, %v1103_v29 }
 0x5c9   : > { %v1108_v26 = vpop.permute.xlu0 %1107 }
 0x5ca   : > { %v1110_v27 = vmul.f32 %v5079_v24, %v1108_v26 }
 0x5cc   : > { %1112 = vrot.lane.b32.xlu0 %v1110_v27, %s5609_s26 }
 0x63e   : > { %v1113_v32 = vpop.permute.xlu0 %1112 }
 0x63f   : > { %v6139_v33 = vadd.f32 %v1113_v32, %v1105_v30 }
 0x641   : > { %5080 = vtanh.f32 %v6139_v33 }
 0x64e   : > { %v5081_v34 = vpop.eup %5080 }
 0x64f   : > { %1118 = vrot.lane.b32.xlu1 %v5081_v34, %s5611_s5 }
 0x6c1   : > { %v1119_v35 = vpop.permute.xlu1 %1118 }
 0x6c2   : > { %v6143_v36 = vmul.f32 %v5079_v24, %v1119_v35 }
 0x6c4   : > { %1123 = vrot.lane.b32.xlu0 %v6143_v36, %s5609_s26 }
 0x736   : > { %v1124_v38 = vpop.permute.xlu0 %1123 }
 0x737   : > { %1127 = vst.msk [vmem:[%s6148_s12] sm:$0x3] %vm1126_vm7, %v1124_v38  ;;  %4744 = vmatmul.mubr.msk.f32.vlgmr.msra.gmra.mxu1 %vm551_vm1, %v1124_v38 }
 0x738   : > { %4747 = vmatpush3.msra.mxu1 %v6075_v12  ;;  %4762 = vmatprep.mubr.msk.f32.mxu1 %vm5606_vm0, %v5605_v0 }
 0x739   : > { %4748 = vmatprep.subr.mxu1 %v5605_v0 }
 0x73a   : > { %4749 = vmatpush3.msra.mxu1 %v6077_v13 }
 0x73b   : > { %4750 = vmatprep.subr.mxu1 %v5605_v0 }
 0x73c   : > { %4751 = vmatpush3.msra.mxu1 %v6081_v14 }
 0x73d   : > { %4752 = vmatprep.subr.mxu1 %v5605_v0 }
 0x73e   : > { %4753 = vmatpush3.msra.mxu1 %v6085_v15 }
 0x73f   : > { %4754 = vmatprep.subr.mxu1 %v5605_v0 }
 0x740   : > { %4755 = vmatpush3.msra.mxu1 %v6089_v10 }
 0x741   : > { %4756 = vmatprep.subr.mxu1 %v5605_v0 }
 0x742   : > { %4757 = vmatpush3.msra.mxu1 %v6093_v16 }
 0x743   : > { %4758 = vmatprep.subr.mxu1 %v5605_v0 }
 0x744   : > { %4759 = vmatpush3.msra.mxu1 %v6097_v17 }
 0x745   : > { %4760 = vmatprep.subr.mxu1 %v5605_v0 }
 0x746   : > { %4761 = vmatpush3.msra.mxu1 %v6111_v47 }
 0x747   : > { %4795 = vmatprep.subr.mxu1 %v5605_v0 }
 0x7f7   : > { %v1203_v39 = vpop.f32.mrf.mxu1 }
 0x7f8   : > { %v1214_v40 = vrot.slane %v1203_v39, %v6004_v19 }
 0x7f9   : > { %v4745_v41 = vpop.f32.mrf.mxu1 }
 0x7fa   : > { %v1215_v42 = vcombine.high %v1214_v40, %v1214_v40  ;;  %v1222_v43 = vrot.slane %v1214_v40, %v6004_v19 }
 0x7fc   : > { %v1229_v44 = vrot.slane %v1215_v42, %v6004_v19  ;;  %v1233_v45 = vrot.slane %v1222_v43, %v6009_v23 }
 0x7fe   : > { %v1237_v46 = vrot.slane %v1229_v44, %v6009_v23  ;;  %v1240_v48 = vadd.f32 %v1233_v45, %v6011_v25  ;;  %v1241_v49 = vadd.f32 %v6006_v21, %v1233_v45 }
 0x800   : > { %v1242_v50 = vadd.f32 %v1237_v46, %v6018_v31  ;;  %5082 = vtanh.f32 %v1240_v48  ;;  %v1243_v52 = vadd.f32 %v6014_v28, %v1237_v46 }
 0x801   : > { %5084 = vtanh.f32 %v1241_v49 }
 0x802   : > { %5086 = vtanh.f32 %v1242_v50 }
 0x803   : > { %5088 = vtanh.f32 %v1243_v52 }
 0x80d   : > { %v5083_v53 = vpop.eup %5082 }
 0x80e   : > { %v5085_v54 = vpop.eup %5084  ;;  %v1248_v55 = vmul.f32 %v5083_v53, %v6028_v37 }
 0x80f   : > { %v5087_v56 = vpop.eup %5086  ;;  %v1249_v58 = vmul.f32 %v5085_v54, %v6028_v37 }
 0x810   : > { %v1252_v60 = vsel %vm551_vm1, %v1248_v55, 0.0  ;;  %v1250_v62 = vmul.f32 %v5087_v56, %v6028_v37  ;;  %v5089_v63 = vpop.eup %5088 }
 0x811   : > { %v1255_v61 = vsel %vm551_vm1, %v1249_v58, 0.0  ;;  %1253 = vadd.xlane.f32.xlu1 %v1252_v60  ;;  %v1251_v5 = vmul.f32 %v5089_v63, %v6028_v37 }
 0x812   : > { %1256 = vadd.xlane.f32.xlu0 %v1255_v61  ;;  %v1258_v1 = vsel %vm551_vm1, %v1250_v62, 0.0 }
 0x813   : > { %v1261_v7 = vsel %vm551_vm1, %v1251_v5, 0.0 }
 0x816   : > { %1259 = vadd.xlane.f32.xlu0 %v1258_v1 }
 0x81a   : > { %1262 = vadd.xlane.f32.xlu0 %v1261_v7 }
 0x822   : > { %1363 = vbcast.lane.b32.xlu1 %v1357_v11, 264 }
 0x826   : > { %1370 = vbcast.lane.b32.xlu1 %v1368_v18, 256 }
 0x830   : > { %1359 = vbcast.lane.b32.xlu0 %v1357_v11, 256 }
 0x89a   : > { %v1254_v22 = vpop.xlane.xlu1 %1253 }
 0x89b   : > { %v1257_v20 = vpop.xlane.xlu0 %1256  ;;  %v1271_v27 = vrot.slane %v1254_v22, %v6045_v59 }
 0x89c   : > { %v1275_v26 = vrot.slane %v1257_v20, %v6043_v57 }
 0x89e   : > { %v1276_v34 = vsel %vm817_vm2, %v1275_v26, %v1271_v27  ;;  %v1364_v40 = vpop.permute.xlu1 %1363 }
 0x89f   : > { %v1260_v24 = vpop.xlane.xlu0 %1259 }
 0x8a0   : > { %v1280_v30 = vrot.slane %v1260_v24, %v6045_v59 }
 0x8a2   : > { %v1371_v41 = vpop.permute.xlu1 %1370 }
 0x8a3   : > { %v1263_v29 = vpop.xlane.xlu0 %1262 }
 0x8a4   : > { %v1284_v32 = vrot.slane %v1263_v29, %v6043_v57 }
 0x8a6   : > { %v1285_v35 = vsel %vm817_vm2, %v1284_v32, %v1280_v30 }
 0x8a7   : > { %v1286_v38 = vsel %vm828_vm3, %v1285_v35, %v1276_v34  ;;  %v1360_v60 = vpop.permute.xlu0 %1359 }
 0x8a8   : > { %v1288_v39 = vsel %vm831_vm4, %v1286_v38, -inf }
 0x8a9   : > { %1289 = vmax.xlane.f32.xlu1 %v1288_v39 }
 0x8ba   : > { %1374 = vbcast.lane.b32.xlu1 %v1368_v18, 264 }
 0x932   : > { %v1290_v42 = vpop.xlane.xlu1 %1289 }
 0x933   : > { %v1295_v43 = vrot.slane %v1290_v42, %v6009_v23  ;;  %v1299_v44 = vrot.slane %v1290_v42, %v6039_v51 }
 0x935   : > { %v1302_v45 = vsub.f32 %v1254_v22, %v1295_v43  ;;  %v1303_v46 = vsub.f32 %v1257_v20, %v1295_v43  ;;  %v1304_v48 = vsub.f32 %v1260_v24, %v1299_v44  ;;  %v1305_v49 = vsub.f32 %v1263_v29, %v1299_v44 }
 0x936   : > { %v1375_v1 = vpop.permute.xlu1 %1374 }
 0x937   : > { %v1306_v50 = vmul.f32 1.442695, %v1302_v45  ;;  %v1308_v52 = vmul.f32 1.442695, %v1303_v46  ;;  %v1310_v53 = vmul.f32 1.442695, %v1304_v48 }
 0x938   : > { %v1312_v54 = vmul.f32 1.442695, %v1305_v49 }
 0x939   : > { %5090 = vpow2.f32 %v1306_v50 }
 0x93a   : > { %5092 = vpow2.f32 %v1308_v52 }
 0x93b   : > { %5094 = vpow2.f32 %v1310_v53 }
 0x93c   : > { %5096 = vpow2.f32 %v1312_v54 }
 0x946   : > { %v5091_v55 = vpop.eup %5090 }
 0x947   : > { %v5093_v56 = vpop.eup %5092  ;;  %1319 = vperm.xlu0 %5055, %v5091_v55   ;;  %v1380_v62 = vmul.f32 %v5091_v55, %v1360_v60 }
 0x948   : > { %1322 = vperm.xlu1 %5054, %v5093_v56   ;;  %v5095_v58 = vpop.eup %5094  ;;  %v1381_v63 = vmul.f32 %v5093_v56, %v1364_v40 }
 0x949   : > { %v5097_v61 = vpop.eup %5096  ;;  %v1382_v5 = vmul.f32 %v5095_v58, %v1371_v41 }
 0x94a   : > { %v1383_v7 = vmul.f32 %v5097_v61, %v1375_v1 }
 0x94b   : > { %1325 = vperm.xlu0 %5055, %v5095_v58  }
 0x94c   : > { %1328 = vperm.xlu1 %5054, %v5097_v61  }
 0x94f   : > { %1386 = vperm.xlu0 %5055, %v1380_v62  }
 0x950   : > { %1391 = vperm.xlu1 %5054, %v1381_v63  }
 0x953   : > { %1396 = vperm.xlu0 %5055, %v1382_v5  }
 0x954   : > { %1401 = vperm.xlu1 %5054, %v1383_v7  }
 0x9c2   : > { %v1320_v9 = vpop.permute.xlu0 %1319 }
 0x9c3   : > { %v1323_v11 = vpop.permute.xlu1 %1322  ;;  %v1333_v20 = vrot.slane %v1320_v9, %v6045_v59 }
 0x9c4   : > { %v1337_v18 = vrot.slane %v1323_v11, %v6043_v57 }
 0x9c6   : > { %v1326_v22 = vpop.permute.xlu0 %1325  ;;  %v1338_v30 = vsel %vm817_vm2, %v1337_v18, %v1333_v20 }
 0x9c7   : > { %v1329_v24 = vpop.permute.xlu1 %1328  ;;  %v1342_v26 = vrot.slane %v1326_v22, %v6045_v59 }
 0x9c8   : > { %v1346_v27 = vrot.slane %v1329_v24, %v6043_v57 }
 0x9ca   : > { %v1387_v29 = vpop.permute.xlu0 %1386  ;;  %v1347_v32 = vsel %vm817_vm2, %v1346_v27, %v1342_v26 }
 0x9cb   : > { %v1392_v34 = vpop.permute.xlu1 %1391  ;;  %v1348_v35 = vsel %vm828_vm3, %v1347_v32, %v1338_v30  ;;  %v1429_v40 = vrot.slane %v1387_v29, %v6045_v59  ;;  %v1404_v54 = vmul.f32 %v1387_v29, %v6011_v25 }
 0x9cc   : > { %v1350_v38 = vsel %vm831_vm4, %v1348_v35, 0.0  ;;  %v1433_v39 = vrot.slane %v1392_v34, %v6043_v57  ;;  %v1405_v53 = vmul.f32 %v6006_v21, %v1392_v34 }
 0x9cd   : > { %1351 = vadd.xlane.f32.xlu0 %v1350_v38  ;;  %v1408_v60 = vsel %vm952_vm5, %v1404_v54, 0.0 }
 0x9ce   : > { %v1397_v41 = vpop.permute.xlu0 %1396  ;;  %v1434_v45 = vsel %vm817_vm2, %v1433_v39, %v1429_v40  ;;  %v1409_v58 = vsel %vm952_vm5, %v1405_v53, 0.0 }
 0x9cf   : > { %v1402_v42 = vpop.permute.xlu1 %1401  ;;  %v1438_v43 = vrot.slane %v1397_v41, %v6045_v59  ;;  %v1406_v52 = vmul.f32 %v1397_v41, %v6018_v31  ;;  %v1410_v62 = vadd.f32 %v1409_v58, %v1408_v60 }
 0x9d0   : > { %v1442_v44 = vrot.slane %v1402_v42, %v6043_v57  ;;  %v1407_v50 = vmul.f32 %v6014_v28, %v1402_v42 }
 0x9d1   : > { %v1417_v56 = vsel %vm952_vm5, %v1406_v52, 0.0  ;;  %v1411_v1 = vrot.slane %v1410_v62, 4 }
 0x9d2   : > { %v1443_v46 = vsel %vm817_vm2, %v1442_v44, %v1438_v43  ;;  %v1418_v55 = vsel %vm952_vm5, %v1407_v50, 0.0 }
 0x9d3   : > { %v1444_v48 = vsel %vm828_vm3, %v1443_v46, %v1434_v45  ;;  %v1419_v61 = vadd.f32 %v1418_v55, %v1417_v56  ;;  %v1412_v18 = vadd.f32 %v1411_v1, %v1410_v62 }
 0x9d4   : > { %v1446_v49 = vsel %vm831_vm4, %v1444_v48, 0.0 }
 0x9d5   : > { %1447 = vadd.xlane.f32.xlu1 %v1446_v49  ;;  %v1413_v22 = vrot.slane %v1412_v18, 2 }
 0x9d7   : > { %v1414_v26 = vadd.f32 %v1413_v22, %v1412_v18 }
 0x9d9   : > { %v1415_v29 = vrot.slane %v1414_v26, 1 }
 0x9db   : > { %v1416_v35 = vadd.f32 %v1415_v29, %v1414_v26 }
 0x9e6   : > { %1465 = vrot.lane.b32.xlu1 %v6143_v36, %s5611_s5  ;;  %v1420_v36 = vrot.slane %v1419_v61, 4 }
 0x9e8   : > { %v1421_v9 = vadd.f32 %v1420_v36, %v1419_v61 }
 0x9ea   : > { %v1422_v20 = vrot.slane %v1421_v9, 2 }
 0x9ec   : > { %v1423_v24 = vadd.f32 %v1422_v20, %v1421_v9 }
 0x9ee   : > { %v1424_v27 = vrot.slane %v1423_v24, 1 }
 0x9f0   : > { %v1425_v32 = vadd.f32 %v1424_v27, %v1423_v24 }
 0xa56   : > { %v1352_v63 = vpop.xlane.xlu0 %1351 }
 0xa57   : > { %v1449_v5 = vmul.f32 1e-05, %v1352_v63 }
 0xa5e   : > { %v1448_v7 = vpop.xlane.xlu1 %1447 }
 0xa5f   : > { %v1450_v11 = vmax.f32 %v1448_v7, %v1449_v5 }
 0xa61   : > { %5098 = vrcp.f32 %v1450_v11 }
 0xa62   : > { %v1466_v42 = vpop.permute.xlu1 %1465 }
 0xa6e   : > { %v5099_v30 = vpop.eup %5098 }
 0xa6f   : > { %v1453_v34 = vrot.slane %v5099_v30, 1  ;;  %v1456_v39 = vmul.f32 %v5099_v30, %v1416_v35 }
 0xa71   : > { %v1457_v38 = vmul.f32 %v1453_v34, %v1425_v32  ;;  %v4523_v34 = vld [vmem:[%s5945_s9 + $0x4] sm:$0x3] }
 0xa72   : > { %v1802_v35 = vrot.slane %v4523_v34, %v6009_v23 }
 0xa73   : > { %v1460_v40 = vrot.slane %v1457_v38, 7  ;;  %v1813_v38 = vrot.slane %v4523_v34, %v6039_v51 }
 0xa75   : > { %v1461_v41 = vsel %vm828_vm3, %v1460_v40, %v1456_v39 }
 0xa76   : > { %1462 = vrot.lane.b32.xlu0 %v1461_v41, %s5610_s27 }
 0xae8   : > { %v1463_v43 = vpop.permute.xlu0 %1462 }
 0xae9   : > { %v1468_v44 = vsel %vm551_vm1, %v1463_v43, %v1466_v42 }
 0xaea   : > { %4763 = vmatmul.mubr.msk.f32.vlgmr.msra.gmra.mxu1 %vm1020_vm6, %v1468_v44 }
 0xaeb   : > { %4796 = vmatpush3.msra.mxu1 %v5962_v2  ;;  %4803 = vmatprep.mubr.msk.f32.mxu1 %vm5606_vm0, %v5605_v0 }
 0xaec   : > { %4797 = vmatprep.subr.mxu1 %v5605_v0 }
 0xaed   : > { %4798 = vmatpush3.msra.mxu1 %v5965_v4 }
 0xaee   : > { %4799 = vmatprep.subr.mxu1 %v5605_v0 }
 0xaef   : > { %4800 = vmatpush3.msra.mxu1 %v5968_v6 }
 0xaf0   : > { %4801 = vmatprep.subr.mxu1 %v5605_v0 }
 0xaf1   : > { %4802 = vmatpush3.msra.mxu1 %v5972_v8 }
 0xaf2   : > { %4806 = vmatprep.subr.mxu1 %v5605_v0 }
 0xbaa   : > { %v1538_v45 = vpop.f32.mrf.mxu1 }
 0xbab   : > { %v1539_v2 = vadd.f32 %v6134_v3, %v1538_v45 }
 0xbac   : > { %v4764_v46 = vpop.f32.mrf.mxu1 }
 0xbad   : > { %5100 = vtanh.f32 %v1539_v2  ;;  %v4520_v49 = vmul.f32 -1.442695, %v1539_v2 }
 0xbaf   : > { %5102 = vpow2.f32 %v4520_v49 }
 0xbba   : > { %v5101_v48 = vpop.eup %5100 }
 0xbbb   : > { %1551 = vrot.lane.b32.xlu0 %v5101_v48, %s5611_s5 }
 0xbbc   : > { %v5103_v4 = vpop.eup %5102 }
 0xbbd   : > { %v1545_v50 = vadd.f32 1.0, %v5103_v4 }
 0xbbf   : > { %5104 = vrcp.f32 %v1545_v50 }
 0xbcc   : > { %v5105_v6 = vpop.eup %5104 }
 0xbcd   : > { %v1549_v8 = vmul.f32 %v5105_v6, %v6139_v33 }
 0xc2d   : > { %v1552_v52 = vpop.permute.xlu0 %1551 }
 0xc2e   : > { %v1554_v53 = vmul.f32 %v5105_v6, %v1552_v52 }
 0xc30   : > { %1556 = vrot.lane.b32.xlu1 %v1554_v53, %s5609_s26 }
 0xca2   : > { %v1557_v54 = vpop.permute.xlu1 %1556 }
 0xca3   : > { %v6245_v55 = vadd.f32 %v1557_v54, %v1549_v8 }
 0xca5   : > { %5106 = vtanh.f32 %v6245_v55 }
 0xcb2   : > { %v5107_v56 = vpop.eup %5106 }
 0xcb3   : > { %1562 = vrot.lane.b32.xlu0 %v5107_v56, %s5611_s5 }
 0xd25   : > { %v1563_v58 = vpop.permute.xlu0 %1562 }
 0xd26   : > { %v6249_v60 = vmul.f32 %v5105_v6, %v1563_v58 }
 0xd28   : > { %1567 = vrot.lane.b32.xlu1 %v6249_v60, %s5609_s26 }
 0xd9a   : > { %v1568_v61 = vpop.permute.xlu1 %1567 }
 0xd9b   : > { %4521 = vst.msk [vmem:[%s6148_s12 + $0x2] sm:$0x3] %vm1126_vm7, %v1568_v61  ;;  %4774 = vmatmul.mubr.msk.f32.vlgmr.msra.gmra.mxu0 %vm551_vm1, %v1568_v61 }
 0xd9c   : > { %4777 = vmatpush3.msra.mxu0 %v6075_v12  ;;  %4792 = vmatprep.mubr.msk.f32.mxu0 %vm5606_vm0, %v5605_v0 }
 0xd9d   : > { %4778 = vmatprep.subr.mxu0 %v5605_v0 }
 0xd9e   : > { %4779 = vmatpush3.msra.mxu0 %v6077_v13 }
 0xd9f   : > { %4780 = vmatprep.subr.mxu0 %v5605_v0 }
 0xda0   : > { %4781 = vmatpush3.msra.mxu0 %v6081_v14 }
 0xda1   : > { %4782 = vmatprep.subr.mxu0 %v5605_v0 }
 0xda2   : > { %4783 = vmatpush3.msra.mxu0 %v6085_v15 }
 0xda3   : > { %4784 = vmatprep.subr.mxu0 %v5605_v0 }
 0xda4   : > { %4785 = vmatpush3.msra.mxu0 %v6089_v10 }
 0xda5   : > { %4786 = vmatprep.subr.mxu0 %v5605_v0 }
 0xda6   : > { %4787 = vmatpush3.msra.mxu0 %v6093_v16 }
 0xda7   : > { %4788 = vmatprep.subr.mxu0 %v5605_v0 }
 0xda8   : > { %4789 = vmatpush3.msra.mxu0 %v6097_v17 }
 0xda9   : > { %4790 = vmatprep.subr.mxu0 %v5605_v0 }
 0xdaa   : > { %4791 = vmatpush3.msra.mxu0 %v6111_v47 }
 0xdab   : > { %4825 = vmatprep.subr.mxu0 %v5605_v0 }
 0xe5b   : > { %v1648_v12 = vpop.f32.mrf.mxu0 }
 0xe5c   : > { %v1659_v13 = vrot.slane %v1648_v12, %v6004_v19 }
 0xe5d   : > { %v4775_v14 = vpop.f32.mrf.mxu0 }
 0xe5e   : > { %v1660_v15 = vcombine.high %v1659_v13, %v1659_v13  ;;  %v1667_v10 = vrot.slane %v1659_v13, %v6004_v19 }
 0xe60   : > { %v1674_v62 = vrot.slane %v1660_v15, %v6004_v19  ;;  %v1678_v16 = vrot.slane %v1667_v10, %v6009_v23 }
 0xe62   : > { %v1682_v63 = vrot.slane %v1674_v62, %v6009_v23  ;;  %v1685_v17 = vadd.f32 %v1678_v16, %v6011_v25  ;;  %v1686_v36 = vadd.f32 %v6006_v21, %v1678_v16 }
 0xe64   : > { %v1687_v1 = vadd.f32 %v1682_v63, %v6018_v31  ;;  %v1688_v5 = vadd.f32 %v6014_v28, %v1682_v63  ;;  %5108 = vtanh.f32 %v1685_v17 }
 0xe65   : > { %5110 = vtanh.f32 %v1686_v36 }
 0xe66   : > { %5112 = vtanh.f32 %v1687_v1 }
 0xe67   : > { %5114 = vtanh.f32 %v1688_v5 }
 0xe71   : > { %v5109_v7 = vpop.eup %5108 }
 0xe72   : > { %v5111_v9 = vpop.eup %5110  ;;  %v1693_v11 = vmul.f32 %v5109_v7, %v6028_v37 }
 0xe73   : > { %v5113_v18 = vpop.eup %5112  ;;  %v1694_v20 = vmul.f32 %v5111_v9, %v6028_v37 }
 0xe74   : > { %v1697_v22 = vsel %vm551_vm1, %v1693_v11, 0.0  ;;  %v1695_v24 = vmul.f32 %v5113_v18, %v6028_v37  ;;  %v5115_v26 = vpop.eup %5114 }
 0xe75   : > { %v1700_v27 = vsel %vm551_vm1, %v1694_v20, 0.0  ;;  %1698 = vadd.xlane.f32.xlu0 %v1697_v22  ;;  %v1696_v30 = vmul.f32 %v5115_v26, %v6028_v37 }
 0xe76   : > { %1701 = vadd.xlane.f32.xlu1 %v1700_v27  ;;  %v1703_v29 = vsel %vm551_vm1, %v1695_v24, 0.0 }
 0xe77   : > { %v1706_v32 = vsel %vm551_vm1, %v1696_v30, 0.0 }
 0xe79   : > { %1704 = vadd.xlane.f32.xlu0 %v1703_v29 }
 0xe7d   : > { %1707 = vadd.xlane.f32.xlu0 %v1706_v32 }
 0xe87   : > { %1804 = vbcast.lane.b32.xlu1 %v1802_v35, 256 }
 0xe8b   : > { %1815 = vbcast.lane.b32.xlu1 %v1813_v38, 256 }
 0xe8f   : > { %1819 = vbcast.lane.b32.xlu1 %v1813_v38, 264 }
 0xefe   : > { %v1699_v39 = vpop.xlane.xlu0 %1698 }
 0xeff   : > { %v1702_v40 = vpop.xlane.xlu1 %1701  ;;  %v1716_v43 = vrot.slane %v1699_v39, %v6045_v59 }
 0xf00   : > { %v1720_v42 = vrot.slane %v1702_v40, %v6043_v57 }
 0xf02   : > { %v1705_v41 = vpop.xlane.xlu0 %1704  ;;  %v1721_v2 = vsel %vm817_vm2, %v1720_v42, %v1716_v43 }
 0xf03   : > { %v1725_v44 = vrot.slane %v1705_v41, %v6045_v59  ;;  %v1805_v13 = vpop.permute.xlu1 %1804 }
 0xf06   : > { %v1708_v37 = vpop.xlane.xlu0 %1707 }
 0xf07   : > { %v1729_v45 = vrot.slane %v1708_v37, %v6043_v57  ;;  %v1816_v10 = vpop.permute.xlu1 %1815 }
 0xf09   : > { %v1730_v46 = vsel %vm817_vm2, %v1729_v45, %v1725_v44 }
 0xf0a   : > { %v1731_v48 = vsel %vm828_vm3, %v1730_v46, %v1721_v2 }
 0xf0b   : > { %v1733_v49 = vsel %vm831_vm4, %v1731_v48, -inf  ;;  %v1820_v1 = vpop.permute.xlu1 %1819 }
 0xf0c   : > { %1734 = vmax.xlane.f32.xlu0 %v1733_v49 }
 0xf22   : > { %1808 = vbcast.lane.b32.xlu0 %v1802_v35, 264 }
 0xf95   : > { %v1735_v4 = vpop.xlane.xlu0 %1734 }
 0xf96   : > { %v1740_v50 = vrot.slane %v1735_v4, %v6009_v23  ;;  %v1744_v6 = vrot.slane %v1735_v4, %v6039_v51 }
 0xf98   : > { %v1747_v52 = vsub.f32 %v1699_v39, %v1740_v50  ;;  %v1748_v53 = vsub.f32 %v1702_v40, %v1740_v50  ;;  %v1749_v8 = vsub.f32 %v1705_v41, %v1744_v6  ;;  %v1750_v54 = vsub.f32 %v1708_v37, %v1744_v6 }
 0xf99   : > { %v1809_v63 = vpop.permute.xlu0 %1808 }
 0xf9a   : > { %v1751_v56 = vmul.f32 1.442695, %v1747_v52  ;;  %v1753_v58 = vmul.f32 1.442695, %v1748_v53  ;;  %v1755_v61 = vmul.f32 1.442695, %v1749_v8 }
 0xf9b   : > { %v1757_v12 = vmul.f32 1.442695, %v1750_v54 }
 0xf9c   : > { %5116 = vpow2.f32 %v1751_v56 }
 0xf9d   : > { %5118 = vpow2.f32 %v1753_v58 }
 0xf9e   : > { %5120 = vpow2.f32 %v1755_v61 }
 0xf9f   : > { %5122 = vpow2.f32 %v1757_v12 }
 0xfa9   : > { %v5117_v14 = vpop.eup %5116 }
 0xfaa   : > { %v5119_v15 = vpop.eup %5118  ;;  %1764 = vperm.xlu1 %5054, %v5117_v14   ;;  %v1825_v17 = vmul.f32 %v5117_v14, %v1805_v13 }
 0xfab   : > { %1767 = vperm.xlu0 %5055, %v5119_v15   ;;  %v5121_v62 = vpop.eup %5120  ;;  %v1826_v36 = vmul.f32 %v5119_v15, %v1809_v63 }
 0xfac   : > { %v5123_v16 = vpop.eup %5122  ;;  %v1827_v5 = vmul.f32 %v5121_v62, %v1816_v10 }
 0xfad   : > { %v1828_v7 = vmul.f32 %v5123_v16, %v1820_v1 }
 0xfae   : > { %1770 = vperm.xlu1 %5054, %v5121_v62  }
 0xfaf   : > { %1773 = vperm.xlu0 %5055, %v5123_v16  }
 0xfb2   : > { %1831 = vperm.xlu1 %5054, %v1825_v17  }
 0xfb3   : > { %1836 = vperm.xlu0 %5055, %v1826_v36  }
 0xfb6   : > { %1841 = vperm.xlu1 %5054, %v1827_v5  }
 0xfb7   : > { %1846 = vperm.xlu0 %5055, %v1828_v7  }
0x1025   : > { %v1765_v9 = vpop.permute.xlu1 %1764 }
0x1026   : > { %v1768_v11 = vpop.permute.xlu0 %1767  ;;  %v1778_v18 = vrot.slane %v1765_v9, %v6045_v59 }
0x1027   : > { %v1782_v20 = vrot.slane %v1768_v11, %v6043_v57 }
0x1029   : > { %v1771_v22 = vpop.permute.xlu1 %1770  ;;  %v1783_v30 = vsel %vm817_vm2, %v1782_v20, %v1778_v18 }
0x102a   : > { %v1787_v24 = vrot.slane %v1771_v22, %v6045_v59  ;;  %v1774_v26 = vpop.permute.xlu0 %1773 }
0x102b   : > { %v1791_v27 = vrot.slane %v1774_v26, %v6043_v57 }
0x102d   : > { %v1832_v29 = vpop.permute.xlu1 %1831  ;;  %v1792_v32 = vsel %vm817_vm2, %v1791_v27, %v1787_v24 }
0x102e   : > { %v1837_v34 = vpop.permute.xlu0 %1836  ;;  %v1793_v35 = vsel %vm828_vm3, %v1792_v32, %v1783_v30  ;;  %v1874_v39 = vrot.slane %v1832_v29, %v6045_v59  ;;  %v1849_v4 = vmul.f32 %v1832_v29, %v6011_v25  ;;  %v6334_v30 = vld [vmem:[#allocation10 + $0x18] sm:$0xff]  ;;  %v6340_v32 = vld [vmem:[#allocation10 + $0x10] sm:$0xff] }
0x102f   : > { %v1795_v38 = vsel %vm831_vm4, %v1793_v35, 0.0  ;;  %v1878_v40 = vrot.slane %v1837_v34, %v6043_v57  ;;  %v1850_v50 = vmul.f32 %v6006_v21, %v1837_v34  ;;  %v6344_v34 = vld [vmem:[#allocation10 + $0x8] sm:$0xff]  ;;  %v6348_v35 = vld [vmem:[#allocation10] sm:$0xff] }
0x1030   : > { %1796 = vadd.xlane.f32.xlu1 %v1795_v38  ;;  %v1853_v53 = vsel %vm952_vm5, %v1849_v4, 0.0 }
0x1031   : > { %v1842_v41 = vpop.permute.xlu1 %1841  ;;  %v1879_v44 = vsel %vm817_vm2, %v1878_v40, %v1874_v39  ;;  %v1854_v8 = vsel %vm952_vm5, %v1850_v50, 0.0 }
0x1032   : > { %v1883_v42 = vrot.slane %v1842_v41, %v6045_v59  ;;  %v1847_v43 = vpop.permute.xlu0 %1846  ;;  %v1851_v48 = vmul.f32 %v1842_v41, %v6018_v31  ;;  %v1855_v56 = vadd.f32 %v1854_v8, %v1853_v53  ;;  %v6373_v53 = vld [vmem:[#allocation13 + $0x30] sm:$0xff]  ;;  %v6377_v8 = vld [vmem:[#allocation13 + $0x28] sm:$0xff] }
0x1033   : > { %v1887_v37 = vrot.slane %v1847_v43, %v6043_v57  ;;  %v1852_v49 = vmul.f32 %v6014_v28, %v1847_v43 }
0x1034   : > { %v1862_v6 = vsel %vm952_vm5, %v1851_v48, 0.0  ;;  %v1856_v61 = vrot.slane %v1855_v56, 4 }
0x1035   : > { %v1888_v45 = vsel %vm817_vm2, %v1887_v37, %v1883_v42  ;;  %v1863_v52 = vsel %vm952_vm5, %v1852_v49, 0.0 }
0x1036   : > { %v1889_v2 = vsel %vm828_vm3, %v1888_v45, %v1879_v44  ;;  %v1864_v54 = vadd.f32 %v1863_v52, %v1862_v6  ;;  %v1857_v10 = vadd.f32 %v1856_v61, %v1855_v56  ;;  %v6367_v52 = vld [vmem:[#allocation13 + $0x38] sm:$0xff] }
0x1037   : > { %v1891_v46 = vsel %vm831_vm4, %v1889_v2, 0.0  ;;  %v6385_v56 = vld [vmem:[#allocation13 + $0x18] sm:$0xff] }
0x1038   : > { %1892 = vadd.xlane.f32.xlu0 %v1891_v46  ;;  %v1858_v16 = vrot.slane %v1857_v10, 2 }
0x103a   : > { %v1859_v17 = vadd.f32 %v1858_v16, %v1857_v10 }
0x103c   : > { %v1860_v1 = vrot.slane %v1859_v17, 1 }
0x103e   : > { %v1861_v11 = vadd.f32 %v1860_v1, %v1859_v17 }
0x1041   : > { %1910 = vrot.lane.b32.xlu1 %v6249_v60, %s5611_s5  ;;  %v1865_v60 = vrot.slane %v1864_v54, 4 }
0x1043   : > { %v1866_v14 = vadd.f32 %v1865_v60, %v1864_v54  ;;  %v6381_v54 = vld [vmem:[#allocation13 + $0x20] sm:$0xff]  ;;  %v6393_v60 = vld [vmem:[#allocation13 + $0x8] sm:$0xff] }
0x1045   : > { %v1867_v62 = vrot.slane %v1866_v14, 2 }
0x1047   : > { %v1868_v63 = vadd.f32 %v1867_v62, %v1866_v14 }
0x1049   : > { %v1869_v36 = vrot.slane %v1868_v63, 1 }
0x104b   : > { %v1870_v7 = vadd.f32 %v1869_v36, %v1868_v63 }
0x10b9   : > { %v1797_v58 = vpop.xlane.xlu1 %1796 }
0x10ba   : > { %v1894_v12 = vmul.f32 1e-05, %v1797_v58  ;;  %v6389_v58 = vld [vmem:[#allocation13 + $0x10] sm:$0xff] }
0x10bd   : > { %v1911_v26 = vpop.permute.xlu1 %1910 }
0x10c1   : > { %v1893_v13 = vpop.xlane.xlu0 %1892 }
0x10c2   : > { %v1895_v15 = vmax.f32 %v1893_v13, %v1894_v12 }
0x10c4   : > { %5124 = vrcp.f32 %v1895_v15 }
0x10d1   : > { %v5125_v5 = vpop.eup %5124 }
0x10d2   : > { %v1898_v9 = vrot.slane %v5125_v5, 1  ;;  %v1901_v20 = vmul.f32 %v5125_v5, %v1861_v11 }
0x10d4   : > { %v1902_v18 = vmul.f32 %v1898_v9, %v1870_v7  ;;  %v6411_v7 = vld [vmem:[%s7027_s6] ss:$0 sm:$0xff] }
0x10d6   : > { %v1905_v22 = vrot.slane %v1902_v18, 7 }
0x10d8   : > { %v1906_v24 = vsel %vm828_vm3, %v1905_v22, %v1901_v20 }
0x10d9   : > { %1907 = vrot.lane.b32.xlu0 %v1906_v24, %s5610_s27 }
0x114b   : > { %v1908_v27 = vpop.permute.xlu0 %1907 }
0x114c   : > { %v1913_v29 = vsel %vm551_vm1, %v1908_v27, %v1911_v26 }
0x114d   : > { %4793 = vmatmul.mubr.msk.f32.vlgmr.msra.gmra.mxu0 %vm1020_vm6, %v1913_v29 }
0x114e   : > { %4826 = vmatpush3.msra.mxu0 %v6334_v30  ;;  %4833 = vmatprep.mubr.msk.f32.mxu0 %vm5606_vm0, %v5605_v0 }
0x114f   : > { %4827 = vmatprep.subr.mxu0 %v5605_v0 }
0x1150   : > { %4828 = vmatpush3.msra.mxu0 %v6340_v32 }
0x1151   : > { %4829 = vmatprep.subr.mxu0 %v5605_v0 }
0x1152   : > { %4830 = vmatpush3.msra.mxu0 %v6344_v34 }
0x1153   : > { %4831 = vmatprep.subr.mxu0 %v5605_v0 }
0x1154   : > { %4832 = vmatpush3.msra.mxu0 %v6348_v35 }
0x1155   : > { %4836 = vmatprep.subr.mxu0 %v5605_v0 }
0x120d   : > { %v1983_v38 = vpop.f32.mrf.mxu0 }
0x120e   : > { %v1984_v39 = vadd.f32 %v6134_v3, %v1983_v38 }
0x120f   : > { %v4794_v40 = vpop.f32.mrf.mxu0 }
0x1210   : > { %5126 = vtanh.f32 %v1984_v39  ;;  %v4526_v42 = vmul.f32 -1.442695, %v1984_v39  ;;  %v4529_v39 = vld [vmem:[%s5945_s9 + $0x6] sm:$0x3] }
0x1211   : > { %v2247_v40 = vrot.slane %v4529_v39, %v6009_v23 }
0x1212   : > { %5128 = vpow2.f32 %v4526_v42 }
0x121d   : > { %v5127_v41 = vpop.eup %5126 }
0x121e   : > { %1996 = vrot.lane.b32.xlu1 %v5127_v41, %s5611_s5  ;;  %v2258_v41 = vrot.slane %v4529_v39, %v6039_v51 }
0x121f   : > { %v5129_v43 = vpop.eup %5128 }
0x1220   : > { %v1990_v37 = vadd.f32 1.0, %v5129_v43 }
0x1222   : > { %5130 = vrcp.f32 %v1990_v37 }
0x122f   : > { %v5131_v44 = vpop.eup %5130 }
0x1230   : > { %v1994_v46 = vmul.f32 %v5131_v44, %v6245_v55 }
0x1290   : > { %v1997_v45 = vpop.permute.xlu1 %1996 }
0x1291   : > { %v1999_v2 = vmul.f32 %v5131_v44, %v1997_v45 }
0x1293   : > { %2001 = vrot.lane.b32.xlu0 %v1999_v2, %s5609_s26 }
0x1305   : > { %v2002_v48 = vpop.permute.xlu0 %2001 }
0x1306   : > { %v6356_v3 = vadd.f32 %v2002_v48, %v1994_v46 }
0x1308   : > { %5132 = vtanh.f32 %v6356_v3 }
0x1315   : > { %v5133_v49 = vpop.eup %5132 }
0x1316   : > { %2007 = vrot.lane.b32.xlu1 %v5133_v49, %s5611_s5 }
0x1388   : > { %v2008_v4 = vpop.permute.xlu1 %2007 }
0x1389   : > { %v6360_v50 = vmul.f32 %v5131_v44, %v2008_v4 }
0x138b   : > { %2012 = vrot.lane.b32.xlu0 %v6360_v50, %s5609_s26 }
0x13fd   : > { %v2013_v6 = vpop.permute.xlu0 %2012 }
0x13fe   : > { %4527 = vst.msk [vmem:[%s6148_s12 + $0x4] sm:$0x3] %vm1126_vm7, %v2013_v6  ;;  %4804 = vmatmul.mubr.msk.f32.vlgmr.msra.gmra.mxu1 %vm551_vm1, %v2013_v6 }
0x13ff   : > { %4807 = vmatpush3.msra.mxu1 %v6367_v52  ;;  %4822 = vmatprep.mubr.msk.f32.mxu1 %vm5606_vm0, %v5605_v0 }
0x1400   : > { %4808 = vmatprep.subr.mxu1 %v5605_v0 }
0x1401   : > { %4809 = vmatpush3.msra.mxu1 %v6373_v53 }
0x1402   : > { %4810 = vmatprep.subr.mxu1 %v5605_v0 }
0x1403   : > { %4811 = vmatpush3.msra.mxu1 %v6377_v8 }
0x1404   : > { %4812 = vmatprep.subr.mxu1 %v5605_v0 }
0x1405   : > { %4813 = vmatpush3.msra.mxu1 %v6381_v54 }
0x1406   : > { %4814 = vmatprep.subr.mxu1 %v5605_v0 }
0x1407   : > { %4815 = vmatpush3.msra.mxu1 %v6385_v56 }
0x1408   : > { %4816 = vmatprep.subr.mxu1 %v5605_v0 }
0x1409   : > { %4817 = vmatpush3.msra.mxu1 %v6389_v58 }
0x140a   : > { %4818 = vmatprep.subr.mxu1 %v5605_v0 }
0x140b   : > { %4819 = vmatpush3.msra.mxu1 %v6393_v60 }
0x140c   : > { %4820 = vmatprep.subr.mxu1 %v5605_v0 }
0x140d   : > { %4821 = vmatpush3.msra.mxu1 %v6111_v47 }
0x140e   : > { %4855 = vmatprep.subr.mxu1 %v5605_v0 }
0x14be   : > { %v2093_v61 = vpop.f32.mrf.mxu1 }
0x14bf   : > { %v2104_v12 = vrot.slane %v2093_v61, %v6004_v19 }
0x14c0   : > { %v4805_v13 = vpop.f32.mrf.mxu1 }
0x14c1   : > { %v2105_v14 = vcombine.high %v2104_v12, %v2104_v12  ;;  %v2112_v15 = vrot.slane %v2104_v12, %v6004_v19 }
0x14c3   : > { %v2119_v10 = vrot.slane %v2105_v14, %v6004_v19  ;;  %v2123_v62 = vrot.slane %v2112_v15, %v6009_v23 }
0x14c5   : > { %v2127_v16 = vrot.slane %v2119_v10, %v6009_v23  ;;  %v2130_v63 = vadd.f32 %v2123_v62, %v6011_v25  ;;  %v2131_v17 = vadd.f32 %v6006_v21, %v2123_v62 }
0x14c7   : > { %v2132_v47 = vadd.f32 %v2127_v16, %v6018_v31  ;;  %5134 = vtanh.f32 %v2130_v63  ;;  %v2133_v36 = vadd.f32 %v6014_v28, %v2127_v16 }
0x14c8   : > { %5136 = vtanh.f32 %v2131_v17 }
0x14c9   : > { %5138 = vtanh.f32 %v2132_v47 }
0x14ca   : > { %5140 = vtanh.f32 %v2133_v36 }
0x14d4   : > { %v5135_v1 = vpop.eup %5134 }
0x14d5   : > { %v5137_v5 = vpop.eup %5136  ;;  %v2138_v9 = vmul.f32 %v6411_v7, %v5135_v1 }
0x14d6   : > { %v5139_v11 = vpop.eup %5138  ;;  %v2139_v18 = vmul.f32 %v6411_v7, %v5137_v5 }
0x14d7   : > { %v2142_v20 = vsel %vm551_vm1, %v2138_v9, 0.0  ;;  %v2140_v24 = vmul.f32 %v6411_v7, %v5139_v11  ;;  %v5141_v26 = vpop.eup %5140 }
0x14d8   : > { %v2145_v22 = vsel %vm551_vm1, %v2139_v18, 0.0  ;;  %2143 = vadd.xlane.f32.xlu1 %v2142_v20  ;;  %v2141_v29 = vmul.f32 %v6411_v7, %v5141_v26 }
0x14d9   : > { %2146 = vadd.xlane.f32.xlu0 %v2145_v22  ;;  %v2148_v27 = vsel %vm551_vm1, %v2140_v24, 0.0 }
0x14da   : > { %v2151_v38 = vsel %vm551_vm1, %v2141_v29, 0.0 }
0x14dd   : > { %2149 = vadd.xlane.f32.xlu0 %v2148_v27 }
0x14e1   : > { %2152 = vadd.xlane.f32.xlu0 %v2151_v38 }
0x14e9   : > { %2253 = vbcast.lane.b32.xlu1 %v2247_v40, 264 }
0x14ed   : > { %2260 = vbcast.lane.b32.xlu1 %v2258_v41, 256 }
0x14f7   : > { %2249 = vbcast.lane.b32.xlu0 %v2247_v40, 256 }
0x1561   : > { %v2144_v43 = vpop.xlane.xlu1 %2143 }
0x1562   : > { %v2147_v42 = vpop.xlane.xlu0 %2146  ;;  %v2161_v45 = vrot.slane %v2144_v43, %v6045_v59 }
0x1563   : > { %v2165_v44 = vrot.slane %v2147_v42, %v6043_v57 }
0x1565   : > { %v2166_v49 = vsel %vm817_vm2, %v2165_v44, %v2161_v45  ;;  %v2254_v12 = vpop.permute.xlu1 %2253 }
0x1566   : > { %v2150_v37 = vpop.xlane.xlu0 %2149 }
0x1567   : > { %v2170_v46 = vrot.slane %v2150_v37, %v6045_v59 }
0x1569   : > { %v2261_v13 = vpop.permute.xlu1 %2260 }
0x156a   : > { %v2153_v2 = vpop.xlane.xlu0 %2152 }
0x156b   : > { %v2174_v48 = vrot.slane %v2153_v2, %v6043_v57 }
0x156d   : > { %v2175_v4 = vsel %vm817_vm2, %v2174_v48, %v2170_v46 }
0x156e   : > { %v2176_v6 = vsel %vm828_vm3, %v2175_v4, %v2166_v49  ;;  %v2250_v20 = vpop.permute.xlu0 %2249 }
0x156f   : > { %v2178_v61 = vsel %vm831_vm4, %v2176_v6, -inf }
0x1570   : > { %2179 = vmax.xlane.f32.xlu1 %v2178_v61 }
0x1581   : > { %2264 = vbcast.lane.b32.xlu1 %v2258_v41, 264 }
0x15f9   : > { %v2180_v14 = vpop.xlane.xlu1 %2179 }
0x15fa   : > { %v2185_v15 = vrot.slane %v2180_v14, %v6009_v23  ;;  %v2189_v10 = vrot.slane %v2180_v14, %v6039_v51 }
0x15fc   : > { %v2192_v62 = vsub.f32 %v2144_v43, %v2185_v15  ;;  %v2193_v16 = vsub.f32 %v2147_v42, %v2185_v15  ;;  %v2194_v63 = vsub.f32 %v2150_v37, %v2189_v10  ;;  %v2195_v17 = vsub.f32 %v2153_v2, %v2189_v10 }
0x15fd   : > { %v2265_v27 = vpop.permute.xlu1 %2264 }
0x15fe   : > { %v2196_v47 = vmul.f32 1.442695, %v2192_v62  ;;  %v2198_v36 = vmul.f32 1.442695, %v2193_v16  ;;  %v2200_v1 = vmul.f32 1.442695, %v2194_v63 }
0x15ff   : > { %v2202_v5 = vmul.f32 1.442695, %v2195_v17 }
0x1600   : > { %5142 = vpow2.f32 %v2196_v47 }
0x1601   : > { %5144 = vpow2.f32 %v2198_v36 }
0x1602   : > { %5146 = vpow2.f32 %v2200_v1 }
0x1603   : > { %5148 = vpow2.f32 %v2202_v5 }
0x160d   : > { %v5143_v9 = vpop.eup %5142 }
0x160e   : > { %v5145_v11 = vpop.eup %5144  ;;  %2209 = vperm.xlu0 %5055, %v5143_v9   ;;  %v2270_v24 = vmul.f32 %v5143_v9, %v2250_v20 }
0x160f   : > { %2212 = vperm.xlu1 %5054, %v5145_v11   ;;  %v5147_v18 = vpop.eup %5146  ;;  %v2271_v26 = vmul.f32 %v5145_v11, %v2254_v12 }
0x1610   : > { %v5149_v22 = vpop.eup %5148  ;;  %v2272_v29 = vmul.f32 %v5147_v18, %v2261_v13 }
0x1611   : > { %v2273_v38 = vmul.f32 %v5149_v22, %v2265_v27 }
0x1612   : > { %2215 = vperm.xlu0 %5055, %v5147_v18  }
0x1613   : > { %2218 = vperm.xlu1 %5054, %v5149_v22  }
0x1616   : > { %2276 = vperm.xlu0 %5055, %v2270_v24  }
0x1617   : > { %2281 = vperm.xlu1 %5054, %v2271_v26  }
0x161a   : > { %2286 = vperm.xlu0 %5055, %v2272_v29  }
0x161b   : > { %2291 = vperm.xlu1 %5054, %v2273_v38  }
0x1689   : > { %v2210_v39 = vpop.permute.xlu0 %2209 }
0x168a   : > { %v2213_v40 = vpop.permute.xlu1 %2212  ;;  %v2223_v42 = vrot.slane %v2210_v39, %v6045_v59 }
0x168b   : > { %v2227_v41 = vrot.slane %v2213_v40, %v6043_v57 }
0x168d   : > { %v2216_v43 = vpop.permute.xlu0 %2215  ;;  %v2228_v46 = vsel %vm817_vm2, %v2227_v41, %v2223_v42 }
0x168e   : > { %v2219_v37 = vpop.permute.xlu1 %2218  ;;  %v2232_v44 = vrot.slane %v2216_v43, %v6045_v59 }
0x168f   : > { %v2236_v45 = vrot.slane %v2219_v37, %v6043_v57 }
0x1691   : > { %v2277_v2 = vpop.permute.xlu0 %2276  ;;  %v2237_v48 = vsel %vm817_vm2, %v2236_v45, %v2232_v44 }
0x1692   : > { %v2282_v49 = vpop.permute.xlu1 %2281  ;;  %v2238_v4 = vsel %vm828_vm3, %v2237_v48, %v2228_v46  ;;  %v2319_v12 = vrot.slane %v2277_v2, %v6045_v59  ;;  %v2294_v5 = vmul.f32 %v2277_v2, %v6011_v25 }
0x1693   : > { %v2240_v6 = vsel %vm831_vm4, %v2238_v4, 0.0  ;;  %v2323_v61 = vrot.slane %v2282_v49, %v6043_v57  ;;  %v2295_v1 = vmul.f32 %v6006_v21, %v2282_v49 }
0x1694   : > { %2241 = vadd.xlane.f32.xlu0 %v2240_v6  ;;  %v2298_v20 = vsel %vm952_vm5, %v2294_v5, 0.0 }
0x1695   : > { %v2287_v13 = vpop.permute.xlu0 %2286  ;;  %v2324_v62 = vsel %vm817_vm2, %v2323_v61, %v2319_v12  ;;  %v2299_v18 = vsel %vm952_vm5, %v2295_v1, 0.0 }
0x1696   : > { %v2292_v14 = vpop.permute.xlu1 %2291  ;;  %v2328_v15 = vrot.slane %v2287_v13, %v6045_v59  ;;  %v2296_v36 = vmul.f32 %v2287_v13, %v6018_v31  ;;  %v2300_v24 = vadd.f32 %v2299_v18, %v2298_v20 }
0x1697   : > { %v2332_v10 = vrot.slane %v2292_v14, %v6043_v57  ;;  %v2297_v47 = vmul.f32 %v6014_v28, %v2292_v14 }
0x1698   : > { %v2307_v11 = vsel %vm952_vm5, %v2296_v36, 0.0  ;;  %v2301_v27 = vrot.slane %v2300_v24, 4 }
0x1699   : > { %v2333_v16 = vsel %vm817_vm2, %v2332_v10, %v2328_v15  ;;  %v2308_v9 = vsel %vm952_vm5, %v2297_v47, 0.0 }
0x169a   : > { %v2334_v63 = vsel %vm828_vm3, %v2333_v16, %v2324_v62  ;;  %v2309_v22 = vadd.f32 %v2308_v9, %v2307_v11  ;;  %v2302_v41 = vadd.f32 %v2301_v27, %v2300_v24  ;;  %v6477_v16 = vld [vmem:[%s7029_s8] ss:$0 sm:$0xff] }
0x169b   : > { %v2336_v17 = vsel %vm831_vm4, %v2334_v63, 0.0 }
0x169c   : > { %2337 = vadd.xlane.f32.xlu1 %v2336_v17  ;;  %v2303_v43 = vrot.slane %v2302_v41, 2 }
0x169e   : > { %v2304_v44 = vadd.f32 %v2303_v43, %v2302_v41 }
0x16a0   : > { %v2305_v2 = vrot.slane %v2304_v44, 1 }
0x16a2   : > { %v2306_v4 = vadd.f32 %v2305_v2, %v2304_v44 }
0x16ad   : > { %2355 = vrot.lane.b32.xlu1 %v6360_v50, %s5611_s5  ;;  %v2310_v50 = vrot.slane %v2309_v22, 4 }
0x16af   : > { %v2311_v39 = vadd.f32 %v2310_v50, %v2309_v22 }
0x16b1   : > { %v2312_v42 = vrot.slane %v2311_v39, 2 }
0x16b3   : > { %v2313_v37 = vadd.f32 %v2312_v42, %v2311_v39 }
0x16b5   : > { %v2314_v45 = vrot.slane %v2313_v37, 1 }
0x16b7   : > { %v2315_v48 = vadd.f32 %v2314_v45, %v2313_v37 }
0x171d   : > { %v2242_v26 = vpop.xlane.xlu0 %2241 }
0x171e   : > { %v2339_v29 = vmul.f32 1e-05, %v2242_v26 }
0x1725   : > { %v2338_v38 = vpop.xlane.xlu1 %2337 }
0x1726   : > { %v2340_v40 = vmax.f32 %v2338_v38, %v2339_v29  ;;  %v6510_v38 = vld [vmem:[#allocation13] sm:$0xff] }
0x1728   : > { %5150 = vrcp.f32 %v2340_v40 }
0x1729   : > { %v2356_v14 = vpop.permute.xlu1 %2355 }
0x1735   : > { %v5151_v46 = vpop.eup %5150 }
0x1736   : > { %v2343_v49 = vrot.slane %v5151_v46, 1  ;;  %v2346_v61 = vmul.f32 %v5151_v46, %v2306_v4 }
0x1738   : > { %v2347_v6 = vmul.f32 %v2343_v49, %v2315_v48 }
0x173a   : > { %v2350_v12 = vrot.slane %v2347_v6, 7 }
0x173c   : > { %v2351_v13 = vsel %vm828_vm3, %v2350_v12, %v2346_v61 }
0x173d   : > { %2352 = vrot.lane.b32.xlu0 %v2351_v13, %s5610_s27 }
0x17af   : > { %v2353_v15 = vpop.permute.xlu0 %2352 }
0x17b0   : > { %v2358_v10 = vsel %vm551_vm1, %v2353_v15, %v2356_v14 }
0x17b1   : > { %4823 = vmatmul.mubr.msk.f32.vlgmr.msra.gmra.mxu1 %vm1020_vm6, %v2358_v10 }
0x17b2   : > { %4856 = vmatpush3.msra.mxu1 %v6334_v30  ;;  %4863 = vmatprep.mubr.msk.f32.mxu1 %vm5606_vm0, %v5605_v0 }
0x17b3   : > { %4857 = vmatprep.subr.mxu1 %v5605_v0 }
0x17b4   : > { %4858 = vmatpush3.msra.mxu1 %v6340_v32 }
0x17b5   : > { %4859 = vmatprep.subr.mxu1 %v5605_v0 }
0x17b6   : > { %4860 = vmatpush3.msra.mxu1 %v6344_v34 }
0x17b7   : > { %4861 = vmatprep.subr.mxu1 %v5605_v0 }
0x17b8   : > { %4862 = vmatpush3.msra.mxu1 %v6348_v35 }
0x17b9   : > { %4866 = vmatprep.subr.mxu1 %v5605_v0 }
0x1871   : > { %v2428_v62 = vpop.f32.mrf.mxu1 }
0x1872   : > { %v2429_v63 = vadd.f32 %v6477_v16, %v2428_v62 }
0x1873   : > { %v4824_v17 = vpop.f32.mrf.mxu1 }
0x1874   : > { %5152 = vtanh.f32 %v2429_v63  ;;  %v4532_v36 = vmul.f32 -1.442695, %v2429_v63 }
0x1876   : > { %5154 = vpow2.f32 %v4532_v36  ;;  %v4535_v36 = vld [vmem:[%s5945_s9 + $0x8] sm:$0x3] }
0x1881   : > { %v5153_v47 = vpop.eup %5152 }
0x1882   : > { %2441 = vrot.lane.b32.xlu0 %v5153_v47, %s5611_s5 }
0x1883   : > { %v5155_v1 = vpop.eup %5154 }
0x1884   : > { %v2435_v5 = vadd.f32 1.0, %v5155_v1  ;;  %v2692_v1 = vrot.slane %v4535_v36, %v6009_v23 }
0x1886   : > { %5156 = vrcp.f32 %v2435_v5  ;;  %v2703_v5 = vrot.slane %v4535_v36, %v6039_v51 }
0x1893   : > { %v5157_v9 = vpop.eup %5156 }
0x1894   : > { %v2439_v20 = vmul.f32 %v5157_v9, %v6356_v3 }
0x18f4   : > { %v2442_v11 = vpop.permute.xlu0 %2441 }
0x18f5   : > { %v2444_v18 = vmul.f32 %v5157_v9, %v2442_v11 }
0x18f7   : > { %2446 = vrot.lane.b32.xlu1 %v2444_v18, %s5609_s26 }
0x1969   : > { %v2447_v22 = vpop.permute.xlu1 %2446 }
0x196a   : > { %v6483_v24 = vadd.f32 %v2447_v22, %v2439_v20 }
0x196c   : > { %5158 = vtanh.f32 %v6483_v24 }
0x1979   : > { %v5159_v26 = vpop.eup %5158 }
0x197a   : > { %2452 = vrot.lane.b32.xlu0 %v5159_v26, %s5611_s5 }
0x19ec   : > { %v2453_v50 = vpop.permute.xlu0 %2452 }
0x19ed   : > { %v6487_v27 = vmul.f32 %v5157_v9, %v2453_v50 }
0x19ef   : > { %2457 = vrot.lane.b32.xlu1 %v6487_v27, %s5609_s26 }
0x1a61   : > { %v2458_v29 = vpop.permute.xlu1 %2457 }
0x1a62   : > { %4533 = vst.msk [vmem:[%s6148_s12 + $0x6] sm:$0x3] %vm1126_vm7, %v2458_v29  ;;  %4834 = vmatmul.mubr.msk.f32.vlgmr.msra.gmra.mxu0 %vm551_vm1, %v2458_v29 }
0x1a63   : > { %4837 = vmatpush3.msra.mxu0 %v6367_v52  ;;  %4852 = vmatprep.mubr.msk.f32.mxu0 %vm5606_vm0, %v5605_v0 }
0x1a64   : > { %4838 = vmatprep.subr.mxu0 %v5605_v0 }
0x1a65   : > { %4839 = vmatpush3.msra.mxu0 %v6373_v53 }
0x1a66   : > { %4840 = vmatprep.subr.mxu0 %v5605_v0 }
0x1a67   : > { %4841 = vmatpush3.msra.mxu0 %v6377_v8 }
0x1a68   : > { %4842 = vmatprep.subr.mxu0 %v5605_v0 }
0x1a69   : > { %4843 = vmatpush3.msra.mxu0 %v6381_v54 }
0x1a6a   : > { %4844 = vmatprep.subr.mxu0 %v5605_v0 }
0x1a6b   : > { %4845 = vmatpush3.msra.mxu0 %v6385_v56 }
0x1a6c   : > { %4846 = vmatprep.subr.mxu0 %v5605_v0 }
0x1a6d   : > { %4847 = vmatpush3.msra.mxu0 %v6389_v58 }
0x1a6e   : > { %4848 = vmatprep.subr.mxu0 %v5605_v0 }
0x1a6f   : > { %4849 = vmatpush3.msra.mxu0 %v6393_v60 }
0x1a70   : > { %4850 = vmatprep.subr.mxu0 %v5605_v0 }
0x1a71   : > { %4851 = vmatpush3.msra.mxu0 %v6510_v38 }
0x1a72   : > { %4885 = vmatprep.subr.mxu0 %v5605_v0 }
0x1b22   : > { %v2538_v39 = vpop.f32.mrf.mxu0 }
0x1b23   : > { %v2549_v40 = vrot.slane %v2538_v39, %v6004_v19 }
0x1b24   : > { %v4835_v41 = vpop.f32.mrf.mxu0 }
0x1b25   : > { %v2550_v42 = vcombine.high %v2549_v40, %v2549_v40  ;;  %v2557_v43 = vrot.slane %v2549_v40, %v6004_v19 }
0x1b27   : > { %v2564_v37 = vrot.slane %v2550_v42, %v6004_v19  ;;  %v2568_v44 = vrot.slane %v2557_v43, %v6009_v23 }
0x1b29   : > { %v2572_v45 = vrot.slane %v2564_v37, %v6009_v23  ;;  %v2575_v2 = vadd.f32 %v2568_v44, %v6011_v25  ;;  %v2576_v46 = vadd.f32 %v6006_v21, %v2568_v44 }
0x1b2b   : > { %v2577_v48 = vadd.f32 %v2572_v45, %v6018_v31  ;;  %v2578_v49 = vadd.f32 %v6014_v28, %v2572_v45  ;;  %5160 = vtanh.f32 %v2575_v2 }
0x1b2c   : > { %5162 = vtanh.f32 %v2576_v46 }
0x1b2d   : > { %5164 = vtanh.f32 %v2577_v48 }
0x1b2e   : > { %5166 = vtanh.f32 %v2578_v49 }
0x1b38   : > { %v5161_v4 = vpop.eup %5160 }
0x1b39   : > { %v5163_v6 = vpop.eup %5162  ;;  %v2583_v61 = vmul.f32 %v6411_v7, %v5161_v4 }
0x1b3a   : > { %v5165_v12 = vpop.eup %5164  ;;  %v2584_v13 = vmul.f32 %v6411_v7, %v5163_v6 }
0x1b3b   : > { %v2587_v14 = vsel %vm551_vm1, %v2583_v61, 0.0  ;;  %v2585_v15 = vmul.f32 %v6411_v7, %v5165_v12  ;;  %v5167_v10 = vpop.eup %5166 }
0x1b3c   : > { %v2590_v62 = vsel %vm551_vm1, %v2584_v13, 0.0  ;;  %2588 = vadd.xlane.f32.xlu0 %v2587_v14  ;;  %v2586_v17 = vmul.f32 %v6411_v7, %v5167_v10 }
0x1b3d   : > { %2591 = vadd.xlane.f32.xlu1 %v2590_v62  ;;  %v2593_v63 = vsel %vm551_vm1, %v2585_v15, 0.0 }
0x1b3e   : > { %v2596_v47 = vsel %vm551_vm1, %v2586_v17, 0.0 }
0x1b40   : > { %2594 = vadd.xlane.f32.xlu0 %v2593_v63 }
0x1b44   : > { %2597 = vadd.xlane.f32.xlu0 %v2596_v47 }
0x1b4e   : > { %2694 = vbcast.lane.b32.xlu1 %v2692_v1, 256 }
0x1b52   : > { %2705 = vbcast.lane.b32.xlu1 %v2703_v5, 256 }
0x1b56   : > { %2709 = vbcast.lane.b32.xlu1 %v2703_v5, 264 }
0x1bc5   : > { %v2589_v9 = vpop.xlane.xlu0 %2588 }
0x1bc6   : > { %v2592_v11 = vpop.xlane.xlu1 %2591  ;;  %v2606_v22 = vrot.slane %v2589_v9, %v6045_v59 }
0x1bc7   : > { %v2610_v20 = vrot.slane %v2592_v11, %v6043_v57 }
0x1bc9   : > { %v2595_v18 = vpop.xlane.xlu0 %2594  ;;  %v2611_v39 = vsel %vm817_vm2, %v2610_v20, %v2606_v22 }
0x1bca   : > { %v2615_v50 = vrot.slane %v2595_v18, %v6045_v59  ;;  %v2695_v12 = vpop.permute.xlu1 %2694 }
0x1bcd   : > { %v2598_v26 = vpop.xlane.xlu0 %2597 }
0x1bce   : > { %v2619_v29 = vrot.slane %v2598_v26, %v6043_v57  ;;  %v2706_v15 = vpop.permute.xlu1 %2705 }
0x1bd0   : > { %v2620_v40 = vsel %vm817_vm2, %v2619_v29, %v2615_v50 }
0x1bd1   : > { %v2621_v41 = vsel %vm828_vm3, %v2620_v40, %v2611_v39 }
0x1bd2   : > { %v2623_v42 = vsel %vm831_vm4, %v2621_v41, -inf  ;;  %v2710_v36 = vpop.permute.xlu1 %2709 }
0x1bd3   : > { %2624 = vmax.xlane.f32.xlu0 %v2623_v42 }
0x1be9   : > { %2698 = vbcast.lane.b32.xlu0 %v2692_v1, 264 }
0x1c5c   : > { %v2625_v43 = vpop.xlane.xlu0 %2624 }
0x1c5d   : > { %v2630_v37 = vrot.slane %v2625_v43, %v6009_v23  ;;  %v2634_v44 = vrot.slane %v2625_v43, %v6039_v51 }
0x1c5f   : > { %v2637_v45 = vsub.f32 %v2589_v9, %v2630_v37  ;;  %v2638_v2 = vsub.f32 %v2592_v11, %v2630_v37  ;;  %v2639_v46 = vsub.f32 %v2595_v18, %v2634_v44  ;;  %v2640_v48 = vsub.f32 %v2598_v26, %v2634_v44 }
0x1c60   : > { %v2699_v63 = vpop.permute.xlu0 %2698 }
0x1c61   : > { %v2641_v49 = vmul.f32 1.442695, %v2637_v45  ;;  %v2643_v4 = vmul.f32 1.442695, %v2638_v2  ;;  %v2645_v6 = vmul.f32 1.442695, %v2639_v46 }
0x1c62   : > { %v2647_v61 = vmul.f32 1.442695, %v2640_v48 }
0x1c63   : > { %5168 = vpow2.f32 %v2641_v49 }
0x1c64   : > { %5170 = vpow2.f32 %v2643_v4 }
0x1c65   : > { %5172 = vpow2.f32 %v2645_v6 }
0x1c66   : > { %5174 = vpow2.f32 %v2647_v61 }
0x1c70   : > { %v5169_v13 = vpop.eup %5168 }
0x1c71   : > { %v5171_v14 = vpop.eup %5170  ;;  %2654 = vperm.xlu1 %5054, %v5169_v13   ;;  %v2715_v17 = vmul.f32 %v5169_v13, %v2695_v12 }
0x1c72   : > { %2657 = vperm.xlu0 %5055, %v5171_v14   ;;  %v5173_v10 = vpop.eup %5172  ;;  %v2716_v47 = vmul.f32 %v5171_v14, %v2699_v63 }
0x1c73   : > { %v5175_v62 = vpop.eup %5174  ;;  %v2717_v1 = vmul.f32 %v5173_v10, %v2706_v15 }
0x1c74   : > { %v2718_v5 = vmul.f32 %v5175_v62, %v2710_v36 }
0x1c75   : > { %2660 = vperm.xlu1 %5054, %v5173_v10  }
0x1c76   : > { %2663 = vperm.xlu0 %5055, %v5175_v62  }
0x1c79   : > { %2721 = vperm.xlu1 %5054, %v2715_v17  }
0x1c7a   : > { %2726 = vperm.xlu0 %5055, %v2716_v47  }
0x1c7d   : > { %2731 = vperm.xlu1 %5054, %v2717_v1  }
0x1c7e   : > { %2736 = vperm.xlu0 %5055, %v2718_v5  }
0x1cec   : > { %v2655_v9 = vpop.permute.xlu1 %2654 }
0x1ced   : > { %v2658_v11 = vpop.permute.xlu0 %2657  ;;  %v2668_v18 = vrot.slane %v2655_v9, %v6045_v59 }
0x1cee   : > { %v2672_v20 = vrot.slane %v2658_v11, %v6043_v57 }
0x1cf0   : > { %v2661_v22 = vpop.permute.xlu1 %2660  ;;  %v2673_v40 = vsel %vm817_vm2, %v2672_v20, %v2668_v18 }
0x1cf1   : > { %v2677_v26 = vrot.slane %v2661_v22, %v6045_v59  ;;  %v2664_v50 = vpop.permute.xlu0 %2663 }
0x1cf2   : > { %v2681_v29 = vrot.slane %v2664_v50, %v6043_v57 }
0x1cf4   : > { %v2722_v39 = vpop.permute.xlu1 %2721  ;;  %v2682_v41 = vsel %vm817_vm2, %v2681_v29, %v2677_v26 }
0x1cf5   : > { %v2739_v42 = vmul.f32 %v2722_v39, %v6011_v25  ;;  %v2727_v43 = vpop.permute.xlu0 %2726  ;;  %v2683_v37 = vsel %vm828_vm3, %v2682_v41, %v2673_v40  ;;  %v2764_v46 = vrot.slane %v2722_v39, %v6045_v59 }
0x1cf6   : > { %v2740_v44 = vmul.f32 %v6006_v21, %v2727_v43  ;;  %v2685_v45 = vsel %vm831_vm4, %v2683_v37, 0.0  ;;  %v2768_v49 = vrot.slane %v2727_v43, %v6043_v57 }
0x1cf7   : > { %v2743_v2 = vsel %vm952_vm5, %v2739_v42, 0.0  ;;  %2686 = vadd.xlane.f32.xlu1 %v2685_v45 }
0x1cf8   : > { %v2744_v48 = vsel %vm952_vm5, %v2740_v44, 0.0  ;;  %v2732_v4 = vpop.permute.xlu1 %2731  ;;  %v2769_v14 = vsel %vm817_vm2, %v2768_v49, %v2764_v46 }
0x1cf9   : > { %v2745_v6 = vadd.f32 %v2744_v48, %v2743_v2  ;;  %v2773_v61 = vrot.slane %v2732_v4, %v6045_v59  ;;  %v2737_v12 = vpop.permute.xlu0 %2736  ;;  %v2741_v63 = vmul.f32 %v2732_v4, %v6018_v31 }
0x1cfa   : > { %v2777_v13 = vrot.slane %v2737_v12, %v6043_v57  ;;  %v2742_v17 = vmul.f32 %v6014_v28, %v2737_v12 }
0x1cfb   : > { %v2752_v47 = vsel %vm952_vm5, %v2741_v63, 0.0  ;;  %v2746_v11 = vrot.slane %v2745_v6, 4 }
0x1cfc   : > { %v2778_v15 = vsel %vm817_vm2, %v2777_v13, %v2773_v61  ;;  %v2753_v36 = vsel %vm952_vm5, %v2742_v17, 0.0 }
0x1cfd   : > { %v2779_v10 = vsel %vm828_vm3, %v2778_v15, %v2769_v14  ;;  %v2754_v1 = vadd.f32 %v2753_v36, %v2752_v47  ;;  %v2747_v50 = vadd.f32 %v2746_v11, %v2745_v6 }
0x1cfe   : > { %v2781_v62 = vsel %vm831_vm4, %v2779_v10, 0.0 }
0x1cff   : > { %2782 = vadd.xlane.f32.xlu0 %v2781_v62  ;;  %v2755_v9 = vrot.slane %v2754_v1, 4 }
0x1d01   : > { %v2756_v22 = vadd.f32 %v2755_v9, %v2754_v1 }
0x1d03   : > { %v2757_v29 = vrot.slane %v2756_v22, 2 }
0x1d05   : > { %v2758_v39 = vadd.f32 %v2757_v29, %v2756_v22 }
0x1d07   : > { %v2759_v41 = vrot.slane %v2758_v39, 1 }
0x1d08   : > { %2800 = vrot.lane.b32.xlu1 %v6487_v27, %s5611_s5  ;;  %v2748_v27 = vrot.slane %v2747_v50, 2 }
0x1d09   : > { %v2760_v37 = vadd.f32 %v2759_v41, %v2758_v39 }
0x1d0a   : > { %v2749_v40 = vadd.f32 %v2748_v27, %v2747_v50 }
0x1d0c   : > { %v2750_v42 = vrot.slane %v2749_v40, 1 }
0x1d0e   : > { %v2751_v45 = vadd.f32 %v2750_v42, %v2749_v40 }
0x1d80   : > { %v2687_v5 = vpop.xlane.xlu1 %2686 }
0x1d81   : > { %v2784_v18 = vmul.f32 1e-05, %v2687_v5 }
0x1d84   : > { %v2801_v4 = vpop.permute.xlu1 %2800 }
0x1d88   : > { %v2783_v20 = vpop.xlane.xlu0 %2782 }
0x1d89   : > { %v2785_v26 = vmax.f32 %v2783_v20, %v2784_v18 }
0x1d8b   : > { %5176 = vrcp.f32 %v2785_v26 }
0x1d98   : > { %v5177_v43 = vpop.eup %5176 }
0x1d99   : > { %v2788_v44 = vrot.slane %v5177_v43, 1  ;;  %v2791_v46 = vmul.f32 %v5177_v43, %v2751_v45 }
0x1d9b   : > { %v2792_v2 = vmul.f32 %v2788_v44, %v2760_v37 }
0x1d9d   : > { %v2795_v48 = vrot.slane %v2792_v2, 7 }
0x1d9f   : > { %v2796_v49 = vsel %vm828_vm3, %v2795_v48, %v2791_v46  ;;  %v4541_v46 = vld [vmem:[%s5945_s9 + $0xa] sm:$0x3] }
0x1da0   : > { %2797 = vrot.lane.b32.xlu0 %v2796_v49, %s5610_s27  ;;  %v3137_v48 = vrot.slane %v4541_v46, %v6009_v23  ;;  %v3148_v49 = vrot.slane %v4541_v46, %v6039_v51 }
0x1e12   : > { %v2798_v6 = vpop.permute.xlu0 %2797 }
0x1e13   : > { %v2803_v61 = vsel %vm551_vm1, %v2798_v6, %v2801_v4 }
0x1e14   : > { %4853 = vmatmul.mubr.msk.f32.vlgmr.msra.gmra.mxu0 %vm1020_vm6, %v2803_v61 }
0x1e15   : > { %4886 = vmatpush3.msra.mxu0 %v6334_v30  ;;  %4893 = vmatprep.mubr.msk.f32.mxu0 %vm5606_vm0, %v5605_v0 }
0x1e16   : > { %4887 = vmatprep.subr.mxu0 %v5605_v0 }
0x1e17   : > { %4888 = vmatpush3.msra.mxu0 %v6340_v32 }
0x1e18   : > { %4889 = vmatprep.subr.mxu0 %v5605_v0 }
0x1e19   : > { %4890 = vmatpush3.msra.mxu0 %v6344_v34 }
0x1e1a   : > { %4891 = vmatprep.subr.mxu0 %v5605_v0 }
0x1e1b   : > { %4892 = vmatpush3.msra.mxu0 %v6348_v35 }
0x1e1c   : > { %4896 = vmatprep.subr.mxu0 %v5605_v0 }
0x1ed4   : > { %v2873_v12 = vpop.f32.mrf.mxu0 }
0x1ed5   : > { %v2874_v30 = vadd.f32 %v6477_v16, %v2873_v12 }
0x1ed6   : > { %v4854_v13 = vpop.f32.mrf.mxu0 }
0x1ed7   : > { %5178 = vtanh.f32 %v2874_v30  ;;  %v4538_v15 = vmul.f32 -1.442695, %v2874_v30 }
0x1ed9   : > { %5180 = vpow2.f32 %v4538_v15 }
0x1ee4   : > { %v5179_v14 = vpop.eup %5178 }
0x1ee5   : > { %2886 = vrot.lane.b32.xlu1 %v5179_v14, %s5611_s5 }
0x1ee6   : > { %v5181_v32 = vpop.eup %5180 }
0x1ee7   : > { %v2880_v10 = vadd.f32 1.0, %v5181_v32 }
0x1ee9   : > { %5182 = vrcp.f32 %v2880_v10 }
0x1ef6   : > { %v5183_v34 = vpop.eup %5182 }
0x1ef7   : > { %v2884_v35 = vmul.f32 %v5183_v34, %v6483_v24 }
0x1f57   : > { %v2887_v62 = vpop.permute.xlu1 %2886 }
0x1f58   : > { %v2889_v63 = vmul.f32 %v5183_v34, %v2887_v62 }
0x1f5a   : > { %2891 = vrot.lane.b32.xlu0 %v2889_v63, %s5609_s26 }
0x1fcc   : > { %v2892_v17 = vpop.permute.xlu0 %2891 }
0x1fcd   : > { %v6588_v47 = vadd.f32 %v2892_v17, %v2884_v35 }
0x1fcf   : > { %5184 = vtanh.f32 %v6588_v47 }
0x1fdc   : > { %v5185_v36 = vpop.eup %5184 }
0x1fdd   : > { %2897 = vrot.lane.b32.xlu1 %v5185_v36, %s5611_s5 }
0x204f   : > { %v2898_v1 = vpop.permute.xlu1 %2897 }
0x2050   : > { %v6592_v5 = vmul.f32 %v5183_v34, %v2898_v1 }
0x2052   : > { %2902 = vrot.lane.b32.xlu0 %v6592_v5, %s5609_s26 }
0x20c4   : > { %v2903_v9 = vpop.permute.xlu0 %2902 }
0x20c5   : > { %4539 = vst.msk [vmem:[%s6148_s12 + $0x8] sm:$0x3] %vm1126_vm7, %v2903_v9  ;;  %4864 = vmatmul.mubr.msk.f32.vlgmr.msra.gmra.mxu1 %vm551_vm1, %v2903_v9 }
0x20c6   : > { %4867 = vmatpush3.msra.mxu1 %v6367_v52  ;;  %4882 = vmatprep.mubr.msk.f32.mxu1 %vm5606_vm0, %v5605_v0 }
0x20c7   : > { %4868 = vmatprep.subr.mxu1 %v5605_v0 }
0x20c8   : > { %4869 = vmatpush3.msra.mxu1 %v6373_v53 }
0x20c9   : > { %4870 = vmatprep.subr.mxu1 %v5605_v0 }
0x20ca   : > { %4871 = vmatpush3.msra.mxu1 %v6377_v8 }
0x20cb   : > { %4872 = vmatprep.subr.mxu1 %v5605_v0 }
0x20cc   : > { %4873 = vmatpush3.msra.mxu1 %v6381_v54 }
0x20cd   : > { %4874 = vmatprep.subr.mxu1 %v5605_v0 }
0x20ce   : > { %4875 = vmatpush3.msra.mxu1 %v6385_v56 }
0x20cf   : > { %4876 = vmatprep.subr.mxu1 %v5605_v0 }
0x20d0   : > { %4877 = vmatpush3.msra.mxu1 %v6389_v58 }
0x20d1   : > { %4878 = vmatprep.subr.mxu1 %v5605_v0 }
0x20d2   : > { %4879 = vmatpush3.msra.mxu1 %v6393_v60 }
0x20d3   : > { %4880 = vmatprep.subr.mxu1 %v5605_v0 }
0x20d4   : > { %4881 = vmatpush3.msra.mxu1 %v6510_v38 }
0x20d5   : > { %4915 = vmatprep.subr.mxu1 %v5605_v0 }
0x2185   : > { %v2983_v52 = vpop.f32.mrf.mxu1 }
0x2186   : > { %v2994_v53 = vrot.slane %v2983_v52, %v6004_v19 }
0x2187   : > { %v4865_v8 = vpop.f32.mrf.mxu1 }
0x2188   : > { %v2995_v54 = vcombine.high %v2994_v53, %v2994_v53  ;;  %v3002_v56 = vrot.slane %v2994_v53, %v6004_v19 }
0x218a   : > { %v3009_v11 = vrot.slane %v2995_v54, %v6004_v19  ;;  %v3013_v58 = vrot.slane %v3002_v56, %v6009_v23 }
0x218c   : > { %v3017_v18 = vrot.slane %v3009_v11, %v6009_v23  ;;  %v3020_v60 = vadd.f32 %v3013_v58, %v6011_v25  ;;  %v3021_v20 = vadd.f32 %v6006_v21, %v3013_v58 }
0x218e   : > { %v3022_v22 = vadd.f32 %v3017_v18, %v6018_v31  ;;  %5186 = vtanh.f32 %v3020_v60  ;;  %v3023_v26 = vadd.f32 %v6014_v28, %v3017_v18 }
0x218f   : > { %5188 = vtanh.f32 %v3021_v20 }
0x2190   : > { %5190 = vtanh.f32 %v3022_v22 }
0x2191   : > { %5192 = vtanh.f32 %v3023_v26 }
0x219b   : > { %v5187_v50 = vpop.eup %5186 }
0x219c   : > { %v5189_v29 = vpop.eup %5188  ;;  %v3028_v27 = vmul.f32 %v6411_v7, %v5187_v50 }
0x219d   : > { %v5191_v39 = vpop.eup %5190  ;;  %v3029_v40 = vmul.f32 %v6411_v7, %v5189_v29 }
0x219e   : > { %v3032_v41 = vsel %vm551_vm1, %v3028_v27, 0.0  ;;  %v3030_v43 = vmul.f32 %v6411_v7, %v5191_v39  ;;  %v5193_v37 = vpop.eup %5192 }
0x219f   : > { %v3035_v42 = vsel %vm551_vm1, %v3029_v40, 0.0  ;;  %3033 = vadd.xlane.f32.xlu1 %v3032_v41  ;;  %v3031_v45 = vmul.f32 %v6411_v7, %v5193_v37 }
0x21a0   : > { %3036 = vadd.xlane.f32.xlu0 %v3035_v42  ;;  %v3038_v44 = vsel %vm551_vm1, %v3030_v43, 0.0 }
0x21a1   : > { %v3041_v2 = vsel %vm551_vm1, %v3031_v45, 0.0 }
0x21a4   : > { %3039 = vadd.xlane.f32.xlu0 %v3038_v44 }
0x21a8   : > { %3042 = vadd.xlane.f32.xlu0 %v3041_v2 }
0x21b0   : > { %3143 = vbcast.lane.b32.xlu1 %v3137_v48, 264 }
0x21b4   : > { %3150 = vbcast.lane.b32.xlu1 %v3148_v49, 256 }
0x21be   : > { %3139 = vbcast.lane.b32.xlu0 %v3137_v48, 256 }
0x2228   : > { %v3034_v6 = vpop.xlane.xlu1 %3033 }
0x2229   : > { %v3037_v4 = vpop.xlane.xlu0 %3036  ;;  %v3051_v30 = vrot.slane %v3034_v6, %v6045_v59 }
0x222a   : > { %v3055_v12 = vrot.slane %v3037_v4, %v6043_v57 }
0x222c   : > { %v3056_v15 = vsel %vm817_vm2, %v3055_v12, %v3051_v30  ;;  %v3144_v62 = vpop.permute.xlu1 %3143 }
0x222d   : > { %v3040_v61 = vpop.xlane.xlu0 %3039 }
0x222e   : > { %v3060_v13 = vrot.slane %v3040_v61, %v6045_v59 }
0x2230   : > { %v3151_v63 = vpop.permute.xlu1 %3150 }
0x2231   : > { %v3043_v7 = vpop.xlane.xlu0 %3042 }
0x2232   : > { %v3064_v14 = vrot.slane %v3043_v7, %v6043_v57 }
0x2234   : > { %v3065_v32 = vsel %vm817_vm2, %v3064_v14, %v3060_v13 }
0x2235   : > { %v3066_v10 = vsel %vm828_vm3, %v3065_v32, %v3056_v15  ;;  %v3140_v20 = vpop.permute.xlu0 %3139 }
0x2236   : > { %v3068_v34 = vsel %vm831_vm4, %v3066_v10, -inf }
0x2237   : > { %3069 = vmax.xlane.f32.xlu1 %v3068_v34 }
0x2248   : > { %3154 = vbcast.lane.b32.xlu1 %v3148_v49, 264 }
0x22c0   : > { %v3070_v35 = vpop.xlane.xlu1 %3069 }
0x22c1   : > { %v3075_v17 = vrot.slane %v3070_v35, %v6009_v23  ;;  %v3079_v36 = vrot.slane %v3070_v35, %v6039_v51 }
0x22c3   : > { %v3082_v1 = vsub.f32 %v3034_v6, %v3075_v17  ;;  %v3083_v9 = vsub.f32 %v3037_v4, %v3075_v17  ;;  %v3084_v52 = vsub.f32 %v3040_v61, %v3079_v36  ;;  %v3085_v53 = vsub.f32 %v3043_v7, %v3079_v36 }
0x22c4   : > { %v3155_v29 = vpop.permute.xlu1 %3154 }
0x22c5   : > { %v3086_v8 = vmul.f32 1.442695, %v3082_v1  ;;  %v3088_v54 = vmul.f32 1.442695, %v3083_v9  ;;  %v3090_v56 = vmul.f32 1.442695, %v3084_v52 }
0x22c6   : > { %v3092_v11 = vmul.f32 1.442695, %v3085_v53 }
0x22c7   : > { %5194 = vpow2.f32 %v3086_v8 }
0x22c8   : > { %5196 = vpow2.f32 %v3088_v54 }
0x22c9   : > { %5198 = vpow2.f32 %v3090_v56 }
0x22ca   : > { %5200 = vpow2.f32 %v3092_v11 }
0x22d4   : > { %v5195_v58 = vpop.eup %5194 }
0x22d5   : > { %v5197_v18 = vpop.eup %5196  ;;  %3099 = vperm.xlu0 %5055, %v5195_v58   ;;  %v3160_v26 = vmul.f32 %v5195_v58, %v3140_v20 }
0x22d6   : > { %3102 = vperm.xlu1 %5054, %v5197_v18   ;;  %v5199_v60 = vpop.eup %5198  ;;  %v3161_v50 = vmul.f32 %v5197_v18, %v3144_v62 }
0x22d7   : > { %v5201_v22 = vpop.eup %5200  ;;  %v3162_v27 = vmul.f32 %v5199_v60, %v3151_v63 }
0x22d8   : > { %v3163_v39 = vmul.f32 %v5201_v22, %v3155_v29 }
0x22d9   : > { %3105 = vperm.xlu0 %5055, %v5199_v60  }
0x22da   : > { %3108 = vperm.xlu1 %5054, %v5201_v22  }
0x22dd   : > { %3166 = vperm.xlu0 %5055, %v3160_v26  }
0x22de   : > { %3171 = vperm.xlu1 %5054, %v3161_v50  }
0x22e1   : > { %3176 = vperm.xlu0 %5055, %v3162_v27  }
0x22e2   : > { %3181 = vperm.xlu1 %5054, %v3163_v39  }
0x2350   : > { %v3100_v40 = vpop.permute.xlu0 %3099 }
0x2351   : > { %v3103_v41 = vpop.permute.xlu1 %3102  ;;  %v3113_v43 = vrot.slane %v3100_v40, %v6045_v59 }
0x2352   : > { %v3117_v42 = vrot.slane %v3103_v41, %v6043_v57 }
0x2354   : > { %v3106_v37 = vpop.permute.xlu0 %3105  ;;  %v3118_v48 = vsel %vm817_vm2, %v3117_v42, %v3113_v43 }
0x2355   : > { %v3109_v44 = vpop.permute.xlu1 %3108  ;;  %v3122_v45 = vrot.slane %v3106_v37, %v6045_v59 }
0x2356   : > { %v3126_v2 = vrot.slane %v3109_v44, %v6043_v57 }
0x2358   : > { %v3167_v46 = vpop.permute.xlu0 %3166  ;;  %v3127_v49 = vsel %vm817_vm2, %v3126_v2, %v3122_v45 }
0x2359   : > { %v3172_v4 = vpop.permute.xlu1 %3171  ;;  %v3184_v6 = vmul.f32 %v3167_v46, %v6011_v25  ;;  %v3128_v61 = vsel %vm828_vm3, %v3127_v49, %v3118_v48  ;;  %v3209_v15 = vrot.slane %v3167_v46, %v6045_v59 }
0x235a   : > { %v3185_v12 = vmul.f32 %v6006_v21, %v3172_v4  ;;  %v3130_v30 = vsel %vm831_vm4, %v3128_v61, 0.0  ;;  %v3213_v14 = vrot.slane %v3172_v4, %v6043_v57  ;;  %v5279_v61 = vld [vmem:[#allocation10 + $0x10] sm:$0xff] }
0x235b   : > { %v3188_v7 = vsel %vm952_vm5, %v3184_v6, 0.0  ;;  %3131 = vadd.xlane.f32.xlu0 %v3130_v30  ;;  %v5278_v6 = vld [vmem:[#allocation10 + $0x18] sm:$0xff]  ;;  %v5281_v30 = vld [vmem:[#allocation10] sm:$0xff] }
0x235c   : > { %v3189_v13 = vsel %vm952_vm5, %v3185_v12, 0.0  ;;  %v3177_v32 = vpop.permute.xlu0 %3176  ;;  %v3214_v35 = vsel %vm817_vm2, %v3213_v14, %v3209_v15  ;;  %v5280_v12 = vld [vmem:[#allocation10 + $0x8] sm:$0xff] }
0x235d   : > { %v3190_v10 = vadd.f32 %v3189_v13, %v3188_v7  ;;  %v3182_v34 = vpop.permute.xlu1 %3181  ;;  %v3218_v62 = vrot.slane %v3177_v32, %v6045_v59  ;;  %v3186_v52 = vmul.f32 %v3177_v32, %v6018_v31 }
0x235e   : > { %v3222_v63 = vrot.slane %v3182_v34, %v6043_v57  ;;  %v3187_v9 = vmul.f32 %v6014_v28, %v3182_v34 }
0x235f   : > { %v3197_v8 = vsel %vm952_vm5, %v3186_v52, 0.0  ;;  %v3191_v58 = vrot.slane %v3190_v10, 4 }
0x2360   : > { %v3223_v17 = vsel %vm817_vm2, %v3222_v63, %v3218_v62  ;;  %v3198_v53 = vsel %vm952_vm5, %v3187_v9, 0.0 }
0x2361   : > { %v3224_v36 = vsel %vm828_vm3, %v3223_v17, %v3214_v35  ;;  %v3199_v54 = vadd.f32 %v3198_v53, %v3197_v8  ;;  %v3192_v26 = vadd.f32 %v3191_v58, %v3190_v10  ;;  %v6698_v8 = vld [vmem:[#allocation13 + $0x38] sm:$0xff] }
0x2362   : > { %v3226_v1 = vsel %vm831_vm4, %v3224_v36, 0.0  ;;  %v6716_v58 = vld [vmem:[#allocation13 + $0x18] sm:$0xff] }
0x2363   : > { %3227 = vadd.xlane.f32.xlu1 %v3226_v1  ;;  %v3200_v11 = vrot.slane %v3199_v54, 4 }
0x2365   : > { %v3201_v20 = vadd.f32 %v3200_v11, %v3199_v54  ;;  %v6704_v54 = vld [vmem:[#allocation13 + $0x30] sm:$0xff]  ;;  %v6712_v11 = vld [vmem:[#allocation13 + $0x20] sm:$0xff] }
0x2367   : > { %v3202_v50 = vrot.slane %v3201_v20, 2 }
0x2369   : > { %v3203_v29 = vadd.f32 %v3202_v50, %v3201_v20 }
0x236b   : > { %v3204_v39 = vrot.slane %v3203_v29, 1 }
0x236d   : > { %v3205_v42 = vadd.f32 %v3204_v39, %v3203_v29 }
0x2374   : > { %3245 = vrot.lane.b32.xlu1 %v6592_v5, %s5611_s5  ;;  %v3193_v5 = vrot.slane %v3192_v26, 2 }
0x2376   : > { %v3194_v27 = vadd.f32 %v3193_v5, %v3192_v26 }
0x2378   : > { %v3195_v40 = vrot.slane %v3194_v27, 1 }
0x237a   : > { %v3196_v37 = vadd.f32 %v3195_v40, %v3194_v27 }
0x23e4   : > { %v3132_v56 = vpop.xlane.xlu0 %3131 }
0x23e5   : > { %v3229_v18 = vmul.f32 1e-05, %v3132_v56  ;;  %v6708_v56 = vld [vmem:[#allocation13 + $0x28] sm:$0xff] }
0x23ec   : > { %v3228_v60 = vpop.xlane.xlu1 %3227 }
0x23ed   : > { %v3230_v22 = vmax.f32 %v3228_v60, %v3229_v18  ;;  %v6720_v18 = vld [vmem:[#allocation13 + $0x10] sm:$0xff]  ;;  %v6724_v60 = vld [vmem:[#allocation13 + $0x8] sm:$0xff] }
0x23ef   : > { %5202 = vrcp.f32 %v3230_v22 }
0x23f0   : > { %v3246_v48 = vpop.permute.xlu1 %3245 }
0x23fc   : > { %v5203_v41 = vpop.eup %5202 }
0x23fd   : > { %v3233_v43 = vrot.slane %v5203_v41, 1  ;;  %v3236_v45 = vmul.f32 %v5203_v41, %v3196_v37 }
0x23ff   : > { %v3237_v44 = vmul.f32 %v3233_v43, %v3205_v42 }
0x2401   : > { %v3240_v2 = vrot.slane %v3237_v44, 7  ;;  %v6741_v44 = vld [vmem:[%s7027_s6] ss:$0 sm:$0xff] }
0x2403   : > { %v3241_v46 = vsel %vm828_vm3, %v3240_v2, %v3236_v45 }
0x2404   : > { %3242 = vrot.lane.b32.xlu0 %v3241_v46, %s5610_s27 }
0x2476   : > { %v3243_v49 = vpop.permute.xlu0 %3242 }
0x2477   : > { %v3248_v4 = vsel %vm551_vm1, %v3243_v49, %v3246_v48 }
0x2478   : > { %4883 = vmatmul.mubr.msk.f32.vlgmr.msra.gmra.mxu1 %vm1020_vm6, %v3248_v4 }
0x2479   : > { %4916 = vmatpush3.msra.mxu1 %v5278_v6  ;;  %4923 = vmatprep.mubr.msk.f32.mxu1 %vm5606_vm0, %v5605_v0 }
0x247a   : > { %4917 = vmatprep.subr.mxu1 %v5605_v0 }
0x247b   : > { %4918 = vmatpush3.msra.mxu1 %v5279_v61 }
0x247c   : > { %4919 = vmatprep.subr.mxu1 %v5605_v0 }
0x247d   : > { %4920 = vmatpush3.msra.mxu1 %v5280_v12 }
0x247e   : > { %4921 = vmatprep.subr.mxu1 %v5605_v0 }
0x247f   : > { %4922 = vmatpush3.msra.mxu1 %v5281_v30 }
0x2480   : > { %4926 = vmatprep.subr.mxu1 %v5605_v0 }
0x2538   : > { %v3318_v7 = vpop.f32.mrf.mxu1 }
0x2539   : > { %v3319_v13 = vadd.f32 %v6477_v16, %v3318_v7  ;;  %v4547_v7 = vld [vmem:[%s5945_s9 + $0xc] sm:$0x3] }
0x253a   : > { %v4884_v14 = vpop.f32.mrf.mxu1 }
0x253b   : > { %5204 = vtanh.f32 %v3319_v13  ;;  %v4544_v32 = vmul.f32 -1.442695, %v3319_v13  ;;  %v3582_v13 = vrot.slane %v4547_v7, %v6009_v23  ;;  %v3593_v14 = vrot.slane %v4547_v7, %v6039_v51 }
0x253d   : > { %5206 = vpow2.f32 %v4544_v32 }
0x2548   : > { %v5205_v15 = vpop.eup %5204 }
0x2549   : > { %3331 = vrot.lane.b32.xlu0 %v5205_v15, %s5611_s5 }
0x254a   : > { %v5207_v10 = vpop.eup %5206 }
0x254b   : > { %v3325_v34 = vadd.f32 1.0, %v5207_v10 }
0x254d   : > { %5208 = vrcp.f32 %v3325_v34 }
0x255a   : > { %v5209_v62 = vpop.eup %5208 }
0x255b   : > { %v3329_v17 = vmul.f32 %v5209_v62, %v6588_v47 }
0x25bb   : > { %v3332_v63 = vpop.permute.xlu0 %3331 }
0x25bc   : > { %v3334_v35 = vmul.f32 %v5209_v62, %v3332_v63 }
0x25be   : > { %3336 = vrot.lane.b32.xlu1 %v3334_v35, %s5609_s26 }
0x2630   : > { %v3337_v36 = vpop.permute.xlu1 %3336 }
0x2631   : > { %v6687_v16 = vadd.f32 %v3337_v36, %v3329_v17 }
0x2633   : > { %5210 = vtanh.f32 %v6687_v16 }
0x2640   : > { %v5211_v1 = vpop.eup %5210 }
0x2641   : > { %3342 = vrot.lane.b32.xlu0 %v5211_v1, %s5611_s5 }
0x26b3   : > { %v3343_v9 = vpop.permute.xlu0 %3342 }
0x26b4   : > { %v6691_v52 = vmul.f32 %v5209_v62, %v3343_v9 }
0x26b6   : > { %3347 = vrot.lane.b32.xlu1 %v6691_v52, %s5609_s26 }
0x2728   : > { %v3348_v53 = vpop.permute.xlu1 %3347 }
0x2729   : > { %4545 = vst.msk [vmem:[%s6148_s12 + $0xa] sm:$0x3] %vm1126_vm7, %v3348_v53  ;;  %4894 = vmatmul.mubr.msk.f32.vlgmr.msra.gmra.mxu0 %vm551_vm1, %v3348_v53 }
0x272a   : > { %4897 = vmatpush3.msra.mxu0 %v6698_v8  ;;  %4912 = vmatprep.mubr.msk.f32.mxu0 %vm5606_vm0, %v5605_v0 }
0x272b   : > { %4898 = vmatprep.subr.mxu0 %v5605_v0 }
0x272c   : > { %4899 = vmatpush3.msra.mxu0 %v6704_v54 }
0x272d   : > { %4900 = vmatprep.subr.mxu0 %v5605_v0 }
0x272e   : > { %4901 = vmatpush3.msra.mxu0 %v6708_v56 }
0x272f   : > { %4902 = vmatprep.subr.mxu0 %v5605_v0 }
0x2730   : > { %4903 = vmatpush3.msra.mxu0 %v6712_v11 }
0x2731   : > { %4904 = vmatprep.subr.mxu0 %v5605_v0 }
0x2732   : > { %4905 = vmatpush3.msra.mxu0 %v6716_v58 }
0x2733   : > { %4906 = vmatprep.subr.mxu0 %v5605_v0 }
0x2734   : > { %4907 = vmatpush3.msra.mxu0 %v6720_v18 }
0x2735   : > { %4908 = vmatprep.subr.mxu0 %v5605_v0 }
0x2736   : > { %4909 = vmatpush3.msra.mxu0 %v6724_v60 }
0x2737   : > { %4910 = vmatprep.subr.mxu0 %v5605_v0 }
0x2738   : > { %4911 = vmatpush3.msra.mxu0 %v6510_v38 }
0x27e9   : > { %v3428_v20 = vpop.f32.mrf.mxu0 }
0x27ea   : > { %v3439_v22 = vrot.slane %v3428_v20, %v6004_v19 }
0x27eb   : > { %v4895_v26 = vpop.f32.mrf.mxu0 }
0x27ec   : > { %v3440_v50 = vcombine.high %v3439_v22, %v3439_v22  ;;  %v3447_v5 = vrot.slane %v3439_v22, %v6004_v19 }
0x27ee   : > { %v3454_v29 = vrot.slane %v3440_v50, %v6004_v19  ;;  %v3458_v27 = vrot.slane %v3447_v5, %v6009_v23 }
0x27f0   : > { %v3462_v39 = vrot.slane %v3454_v29, %v6009_v23  ;;  %v3465_v40 = vadd.f32 %v3458_v27, %v6011_v25  ;;  %v3466_v41 = vadd.f32 %v6006_v21, %v3458_v27 }
0x27f2   : > { %v3467_v42 = vadd.f32 %v3462_v39, %v6018_v31  ;;  %v3468_v38 = vadd.f32 %v6014_v28, %v3462_v39  ;;  %5212 = vtanh.f32 %v3465_v40 }
0x27f3   : > { %5214 = vtanh.f32 %v3466_v41 }
0x27f4   : > { %5216 = vtanh.f32 %v3467_v42 }
0x27f5   : > { %5218 = vtanh.f32 %v3468_v38 }
0x27ff   : > { %v5213_v43 = vpop.eup %5212 }
0x2800   : > { %v5215_v37 = vpop.eup %5214  ;;  %v3473_v45 = vmul.f32 %v6741_v44, %v5213_v43 }
0x2801   : > { %v5217_v2 = vpop.eup %5216  ;;  %v3474_v46 = vmul.f32 %v6741_v44, %v5215_v37 }
0x2802   : > { %v3477_v48 = vsel %vm551_vm1, %v3473_v45, 0.0  ;;  %v3475_v49 = vmul.f32 %v6741_v44, %v5217_v2  ;;  %v5219_v4 = vpop.eup %5218 }
0x2803   : > { %v3480_v6 = vsel %vm551_vm1, %v3474_v46, 0.0  ;;  %3478 = vadd.xlane.f32.xlu0 %v3477_v48  ;;  %v3476_v12 = vmul.f32 %v6741_v44, %v5219_v4 }
0x2804   : > { %3481 = vadd.xlane.f32.xlu1 %v3480_v6  ;;  %v3483_v61 = vsel %vm551_vm1, %v3475_v49, 0.0 }
0x2805   : > { %v3486_v30 = vsel %vm551_vm1, %v3476_v12, 0.0 }
0x2807   : > { %3484 = vadd.xlane.f32.xlu0 %v3483_v61 }
0x280b   : > { %3487 = vadd.xlane.f32.xlu0 %v3486_v30 }
0x2815   : > { %3584 = vbcast.lane.b32.xlu1 %v3582_v13, 256 }
0x2819   : > { %3595 = vbcast.lane.b32.xlu1 %v3593_v14, 256 }
0x281d   : > { %3599 = vbcast.lane.b32.xlu1 %v3593_v14, 264 }
0x288c   : > { %v3479_v15 = vpop.xlane.xlu0 %3478 }
0x288d   : > { %v3482_v32 = vpop.xlane.xlu1 %3481  ;;  %v3496_v62 = vrot.slane %v3479_v15, %v6045_v59 }
0x288e   : > { %v3500_v34 = vrot.slane %v3482_v32, %v6043_v57 }
0x2890   : > { %v3485_v10 = vpop.xlane.xlu0 %3484  ;;  %v3501_v36 = vsel %vm817_vm2, %v3500_v34, %v3496_v62 }
0x2891   : > { %v3505_v35 = vrot.slane %v3485_v10, %v6045_v59  ;;  %v3585_v38 = vpop.permute.xlu1 %3584 }
0x2894   : > { %v3488_v63 = vpop.xlane.xlu0 %3487 }
0x2895   : > { %v3509_v17 = vrot.slane %v3488_v63, %v6043_v57  ;;  %v3596_v45 = vpop.permute.xlu1 %3595 }
0x2897   : > { %v3510_v1 = vsel %vm817_vm2, %v3509_v17, %v3505_v35 }
0x2898   : > { %v3511_v9 = vsel %vm828_vm3, %v3510_v1, %v3501_v36 }
0x2899   : > { %v3513_v53 = vsel %vm831_vm4, %v3511_v9, -inf  ;;  %v3600_v6 = vpop.permute.xlu1 %3599 }
0x289a   : > { %3514 = vmax.xlane.f32.xlu0 %v3513_v53 }
0x28b0   : > { %3588 = vbcast.lane.b32.xlu0 %v3582_v13, 264 }
0x2923   : > { %v3515_v20 = vpop.xlane.xlu0 %3514 }
0x2924   : > { %v3520_v22 = vrot.slane %v3515_v20, %v6009_v23  ;;  %v3524_v26 = vrot.slane %v3515_v20, %v6039_v51 }
0x2926   : > { %v3527_v50 = vsub.f32 %v3479_v15, %v3520_v22  ;;  %v3528_v5 = vsub.f32 %v3482_v32, %v3520_v22  ;;  %v3529_v29 = vsub.f32 %v3485_v10, %v3524_v26  ;;  %v3530_v27 = vsub.f32 %v3488_v63, %v3524_v26 }
0x2927   : > { %v3589_v48 = vpop.permute.xlu0 %3588 }
0x2928   : > { %v3531_v39 = vmul.f32 1.442695, %v3527_v50  ;;  %v3533_v40 = vmul.f32 1.442695, %v3528_v5  ;;  %v3535_v41 = vmul.f32 1.442695, %v3529_v29 }
0x2929   : > { %v3537_v42 = vmul.f32 1.442695, %v3530_v27 }
0x292a   : > { %5220 = vpow2.f32 %v3531_v39 }
0x292b   : > { %5222 = vpow2.f32 %v3533_v40 }
0x292c   : > { %5224 = vpow2.f32 %v3535_v41 }
0x292d   : > { %5226 = vpow2.f32 %v3537_v42 }
0x2937   : > { %v5221_v43 = vpop.eup %5220 }
0x2938   : > { %v5223_v37 = vpop.eup %5222  ;;  %3544 = vperm.xlu1 %5054, %v5221_v43   ;;  %v3605_v49 = vmul.f32 %v5221_v43, %v3585_v38 }
0x2939   : > { %3547 = vperm.xlu0 %5055, %v5223_v37   ;;  %v5225_v2 = vpop.eup %5224  ;;  %v3606_v4 = vmul.f32 %v5223_v37, %v3589_v48 }
0x293a   : > { %v5227_v46 = vpop.eup %5226  ;;  %v3607_v61 = vmul.f32 %v5225_v2, %v3596_v45 }
0x293b   : > { %v3608_v12 = vmul.f32 %v5227_v46, %v3600_v6 }
0x293c   : > { %3550 = vperm.xlu1 %5054, %v5225_v2  }
0x293d   : > { %3553 = vperm.xlu0 %5055, %v5227_v46  }
0x2940   : > { %3611 = vperm.xlu1 %5054, %v3605_v49  }
0x2941   : > { %3616 = vperm.xlu0 %5055, %v3606_v4  }
0x2944   : > { %3621 = vperm.xlu1 %5054, %v3607_v61  }
0x2945   : > { %3626 = vperm.xlu0 %5055, %v3608_v12  }
0x29b3   : > { %v3545_v30 = vpop.permute.xlu1 %3544 }
0x29b4   : > { %v3548_v7 = vpop.permute.xlu0 %3547  ;;  %v3558_v13 = vrot.slane %v3545_v30, %v6045_v59 }
0x29b5   : > { %v3562_v14 = vrot.slane %v3548_v7, %v6043_v57 }
0x29b7   : > { %v3551_v15 = vpop.permute.xlu1 %3550  ;;  %v3563_v63 = vsel %vm817_vm2, %v3562_v14, %v3558_v13 }
0x29b8   : > { %v3567_v32 = vrot.slane %v3551_v15, %v6045_v59  ;;  %v3554_v10 = vpop.permute.xlu0 %3553 }
0x29b9   : > { %v3571_v34 = vrot.slane %v3554_v10, %v6043_v57 }
0x29bb   : > { %v3612_v62 = vpop.permute.xlu1 %3611  ;;  %v3572_v35 = vsel %vm817_vm2, %v3571_v34, %v3567_v32 }
0x29bc   : > { %v3629_v17 = vmul.f32 %v3612_v62, %v6011_v25  ;;  %v3617_v36 = vpop.permute.xlu0 %3616  ;;  %v3573_v1 = vsel %vm828_vm3, %v3572_v35, %v3563_v63  ;;  %v3654_v22 = vrot.slane %v3612_v62, %v6045_v59 }
0x29bd   : > { %v3630_v9 = vmul.f32 %v6006_v21, %v3617_v36  ;;  %v3575_v53 = vsel %vm831_vm4, %v3573_v1, 0.0  ;;  %v3658_v50 = vrot.slane %v3617_v36, %v6043_v57 }
0x29be   : > { %v3633_v20 = vsel %vm952_vm5, %v3629_v17, 0.0  ;;  %3576 = vadd.xlane.f32.xlu1 %v3575_v53 }
0x29bf   : > { %v3634_v26 = vsel %vm952_vm5, %v3630_v9, 0.0  ;;  %v3622_v5 = vpop.permute.xlu1 %3621  ;;  %v3659_v41 = vsel %vm817_vm2, %v3658_v50, %v3654_v22 }
0x29c0   : > { %v3635_v29 = vadd.f32 %v3634_v26, %v3633_v20  ;;  %v3663_v27 = vrot.slane %v3622_v5, %v6045_v59  ;;  %v3627_v39 = vpop.permute.xlu0 %3626  ;;  %v3631_v37 = vmul.f32 %v3622_v5, %v6018_v31  ;;  %v6797_v5 = vld [vmem:[%s7029_s8] ss:$0 sm:$0xff] }
0x29c1   : > { %v3667_v40 = vrot.slane %v3627_v39, %v6043_v57  ;;  %v3632_v45 = vmul.f32 %v6014_v28, %v3627_v39 }
0x29c2   : > { %v3642_v2 = vsel %vm952_vm5, %v3631_v37, 0.0  ;;  %v3636_v6 = vrot.slane %v3635_v29, 4 }
0x29c3   : > { %v3668_v42 = vsel %vm817_vm2, %v3667_v40, %v3663_v27  ;;  %v3643_v46 = vsel %vm952_vm5, %v3632_v45, 0.0 }
0x29c4   : > { %v3669_v38 = vsel %vm828_vm3, %v3668_v42, %v3659_v41  ;;  %v3644_v48 = vadd.f32 %v3643_v46, %v3642_v2  ;;  %v3637_v13 = vadd.f32 %v3636_v6, %v3635_v29 }
0x29c5   : > { %v3671_v43 = vsel %vm831_vm4, %v3669_v38, 0.0 }
0x29c6   : > { %3672 = vadd.xlane.f32.xlu0 %v3671_v43  ;;  %v3645_v4 = vrot.slane %v3644_v48, 4 }
0x29c8   : > { %v3646_v30 = vadd.f32 %v3645_v4, %v3644_v48 }
0x29ca   : > { %v3647_v14 = vrot.slane %v3646_v30, 2 }
0x29cc   : > { %v3648_v15 = vadd.f32 %v3647_v14, %v3646_v30 }
0x29ce   : > { %v3649_v10 = vrot.slane %v3648_v15, 1 }
0x29cf   : > { %3690 = vrot.lane.b32.xlu1 %v6691_v52, %s5611_s5  ;;  %v3638_v52 = vrot.slane %v3637_v13, 2 }
0x29d0   : > { %v3650_v63 = vadd.f32 %v3649_v10, %v3648_v15 }
0x29d1   : > { %v3639_v32 = vadd.f32 %v3638_v52, %v3637_v13 }
0x29d3   : > { %v3640_v34 = vrot.slane %v3639_v32, 1 }
0x29d5   : > { %v3641_v17 = vadd.f32 %v3640_v34, %v3639_v32 }
0x2a47   : > { %v3577_v49 = vpop.xlane.xlu1 %3576 }
0x2a48   : > { %v3674_v61 = vmul.f32 1e-05, %v3577_v49 }
0x2a4b   : > { %v3691_v20 = vpop.permute.xlu1 %3690 }
0x2a4f   : > { %v3673_v12 = vpop.xlane.xlu0 %3672 }
0x2a50   : > { %v3675_v7 = vmax.f32 %v3673_v12, %v3674_v61 }
0x2a52   : > { %5228 = vrcp.f32 %v3675_v7 }
0x2a5f   : > { %v5229_v62 = vpop.eup %5228 }
0x2a60   : > { %v3678_v35 = vrot.slane %v5229_v62, 1  ;;  %v3681_v1 = vmul.f32 %v5229_v62, %v3641_v17 }
0x2a62   : > { %v3682_v36 = vmul.f32 %v3678_v35, %v3650_v63 }
0x2a64   : > { %v3685_v9 = vrot.slane %v3682_v36, 7 }
0x2a66   : > { %v3686_v53 = vsel %vm828_vm3, %v3685_v9, %v3681_v1  ;;  %v4553_v1 = vld [vmem:[%s5945_s9 + $0xe] sm:$0x3] }
0x2a67   : > { %3687 = vrot.lane.b32.xlu0 %v3686_v53, %s5610_s27  ;;  %v4027_v9 = vrot.slane %v4553_v1, %v6009_v23  ;;  %v4038_v53 = vrot.slane %v4553_v1, %v6039_v51 }
0x2ad9   : > { %v3688_v22 = vpop.permute.xlu0 %3687 }
0x2ada   : > { %v3693_v26 = vsel %vm551_vm1, %v3688_v22, %v3691_v20 }
0x2adb   : > { %4913 = vmatmul.mubr.msk.f32.vlgmr.msra.gmra.mxu0 %vm1020_vm6, %v3693_v26 }
0x2b9b   : > { %v3763_v50 = vpop.f32.mrf.mxu0 }
0x2b9c   : > { %v3764_v29 = vadd.f32 %v6797_v5, %v3763_v50 }
0x2b9d   : > { %v4914_v27 = vpop.f32.mrf.mxu0 }
0x2b9e   : > { %5230 = vtanh.f32 %v3764_v29  ;;  %v4550_v40 = vmul.f32 -1.442695, %v3764_v29 }
0x2ba0   : > { %5232 = vpow2.f32 %v4550_v40 }
0x2bab   : > { %v5231_v39 = vpop.eup %5230 }
0x2bac   : > { %3776 = vrot.lane.b32.xlu1 %v5231_v39, %s5611_s5 }
0x2bad   : > { %v5233_v41 = vpop.eup %5232 }
0x2bae   : > { %v3770_v42 = vadd.f32 1.0, %v5233_v41 }
0x2bb0   : > { %5234 = vrcp.f32 %v3770_v42 }
0x2bbd   : > { %v5235_v38 = vpop.eup %5234 }
0x2bbe   : > { %v3774_v45 = vmul.f32 %v5235_v38, %v6687_v16 }
0x2c1e   : > { %v3777_v43 = vpop.permute.xlu1 %3776 }
0x2c1f   : > { %v3779_v37 = vmul.f32 %v5235_v38, %v3777_v43 }
0x2c21   : > { %3781 = vrot.lane.b32.xlu0 %v3779_v37, %s5609_s26 }
0x2c93   : > { %v3782_v2 = vpop.permute.xlu0 %3781 }
0x2c94   : > { %v6803_v46 = vadd.f32 %v3782_v2, %v3774_v45 }
0x2c96   : > { %5236 = vtanh.f32 %v6803_v46 }
0x2ca3   : > { %v5237_v48 = vpop.eup %5236 }
0x2ca4   : > { %3787 = vrot.lane.b32.xlu1 %v5237_v48, %s5611_s5 }
0x2d16   : > { %v3788_v49 = vpop.permute.xlu1 %3787 }
0x2d17   : > { %v6807_v4 = vmul.f32 %v5235_v38, %v3788_v49 }
0x2d19   : > { %3792 = vrot.lane.b32.xlu0 %v6807_v4, %s5609_s26 }
0x2d8b   : > { %v3793_v6 = vpop.permute.xlu0 %3792 }
0x2d8c   : > { %4551 = vst.msk [vmem:[%s6148_s12 + $0xc] sm:$0x3] %vm1126_vm7, %v3793_v6  ;;  %4924 = vmatmul.mubr.msk.f32.vlgmr.msra.gmra.mxu1 %vm551_vm1, %v3793_v6 }
0x2d8d   : > { %4927 = vmatpush3.msra.mxu1 %v6698_v8  ;;  %4942 = vmatprep.mubr.msk.f32.mxu1 %vm5606_vm0, %v5605_v0  ;;  %v5291_v8 = vld [vmem:[#allocation13] sm:$0xff] }
0x2d8e   : > { %4928 = vmatprep.subr.mxu1 %v5605_v0 }
0x2d8f   : > { %4929 = vmatpush3.msra.mxu1 %v6704_v54 }
0x2d90   : > { %4930 = vmatprep.subr.mxu1 %v5605_v0 }
0x2d91   : > { %4931 = vmatpush3.msra.mxu1 %v6708_v56 }
0x2d92   : > { %4932 = vmatprep.subr.mxu1 %v5605_v0 }
0x2d93   : > { %4933 = vmatpush3.msra.mxu1 %v6712_v11 }
0x2d94   : > { %4934 = vmatprep.subr.mxu1 %v5605_v0 }
0x2d95   : > { %4935 = vmatpush3.msra.mxu1 %v6716_v58 }
0x2d96   : > { %4936 = vmatprep.subr.mxu1 %v5605_v0 }
0x2d97   : > { %4937 = vmatpush3.msra.mxu1 %v6720_v18 }
0x2d98   : > { %4938 = vmatprep.subr.mxu1 %v5605_v0 }
0x2d99   : > { %4939 = vmatpush3.msra.mxu1 %v6724_v60 }
0x2d9a   : > { %4940 = vmatprep.subr.mxu1 %v5605_v0 }
0x2d9b   : > { %4941 = vmatpush3.msra.mxu1 %v5291_v8 }
0x2e4c   : > { %v3873_v54 = vpop.f32.mrf.mxu1 }
0x2e4d   : > { %v3884_v56 = vrot.slane %v3873_v54, %v6004_v19 }
0x2e4e   : > { %v4925_v11 = vpop.f32.mrf.mxu1 }
0x2e4f   : > { %v3885_v61 = vcombine.high %v3884_v56, %v3884_v56  ;;  %v3892_v12 = vrot.slane %v3884_v56, %v6004_v19 }
0x2e51   : > { %v3899_v58 = vrot.slane %v3885_v61, %v6004_v19  ;;  %v3903_v30 = vrot.slane %v3892_v12, %v6009_v23 }
0x2e53   : > { %v3907_v18 = vrot.slane %v3899_v58, %v6009_v23  ;;  %v3910_v7 = vadd.f32 %v3903_v30, %v6011_v25  ;;  %v3911_v60 = vadd.f32 %v6006_v21, %v3903_v30 }
0x2e55   : > { %v3912_v0 = vadd.f32 %v3907_v18, %v6018_v31  ;;  %5238 = vtanh.f32 %v3910_v7  ;;  %v3913_v13 = vadd.f32 %v6014_v28, %v3907_v18 }
0x2e56   : > { %5240 = vtanh.f32 %v3911_v60 }
0x2e57   : > { %5242 = vtanh.f32 %v3912_v0 }
0x2e58   : > { %5244 = vtanh.f32 %v3913_v13 }
0x2e62   : > { %v5239_v14 = vpop.eup %5238 }
0x2e63   : > { %v5241_v52 = vpop.eup %5240  ;;  %v3918_v19 = vmul.f32 %v6741_v44, %v5239_v14 }
0x2e64   : > { %v5243_v15 = vpop.eup %5242  ;;  %v3919_v32 = vmul.f32 %v6741_v44, %v5241_v52 }
0x2e65   : > { %v3922_v10 = vsel %vm551_vm1, %v3918_v19, 0.0  ;;  %v3920_v62 = vmul.f32 %v6741_v44, %v5243_v15  ;;  %v5245_v63 = vpop.eup %5244 }
0x2e66   : > { %v3925_v34 = vsel %vm551_vm1, %v3919_v32, 0.0  ;;  %3923 = vadd.xlane.f32.xlu1 %v3922_v10  ;;  %v3921_v17 = vmul.f32 %v6741_v44, %v5245_v63 }
0x2e67   : > { %3926 = vadd.xlane.f32.xlu0 %v3925_v34  ;;  %v3928_v35 = vsel %vm551_vm1, %v3920_v62, 0.0 }
0x2e68   : > { %v3931_v36 = vsel %vm551_vm1, %v3921_v17, 0.0 }
0x2e6b   : > { %3929 = vadd.xlane.f32.xlu0 %v3928_v35 }
0x2e6f   : > { %3932 = vadd.xlane.f32.xlu0 %v3931_v36 }
0x2e77   : > { %4033 = vbcast.lane.b32.xlu1 %v4027_v9, 264 }
0x2e7b   : > { %4040 = vbcast.lane.b32.xlu1 %v4038_v53, 256 }
0x2e85   : > { %4029 = vbcast.lane.b32.xlu0 %v4027_v9, 256 }
0x2eef   : > { %v3924_v22 = vpop.xlane.xlu1 %3923 }
0x2ef0   : > { %v3927_v20 = vpop.xlane.xlu0 %3926  ;;  %v3941_v29 = vrot.slane %v3924_v22, %v6045_v59 }
0x2ef1   : > { %v3945_v50 = vrot.slane %v3927_v20, %v6043_v57 }
0x2ef3   : > { %v3946_v40 = vsel %vm817_vm2, %v3945_v50, %v3941_v29  ;;  %v4034_v43 = vpop.permute.xlu1 %4033 }
0x2ef4   : > { %v3930_v26 = vpop.xlane.xlu0 %3929 }
0x2ef5   : > { %v3950_v27 = vrot.slane %v3930_v26, %v6045_v59 }
0x2ef7   : > { %v4041_v37 = vpop.permute.xlu1 %4040 }
0x2ef8   : > { %v3933_v44 = vpop.xlane.xlu0 %3932 }
0x2ef9   : > { %v3954_v39 = vrot.slane %v3933_v44, %v6043_v57 }
0x2efb   : > { %v3955_v41 = vsel %vm817_vm2, %v3954_v39, %v3950_v27 }
0x2efc   : > { %v3956_v42 = vsel %vm828_vm3, %v3955_v41, %v3946_v40 }
0x2efd   : > { %v3958_v38 = vsel %vm831_vm4, %v3956_v42, -inf }
0x2efe   : > { %3959 = vmax.xlane.f32.xlu1 %v3958_v38 }
0x2f0f   : > { %4044 = vbcast.lane.b32.xlu1 %v4038_v53, 264 }
0x2f87   : > { %v3960_v45 = vpop.xlane.xlu1 %3959 }
0x2f88   : > { %v3965_v2 = vrot.slane %v3960_v45, %v6009_v23  ;;  %v3969_v48 = vrot.slane %v3960_v45, %v6039_v51  ;;  %v4030_v23 = vpop.permute.xlu0 %4029 }
0x2f8a   : > { %v3972_v49 = vsub.f32 %v3924_v22, %v3965_v2  ;;  %v3973_v6 = vsub.f32 %v3927_v20, %v3965_v2  ;;  %v3974_v8 = vsub.f32 %v3930_v26, %v3969_v48  ;;  %v3975_v54 = vsub.f32 %v3933_v44, %v3969_v48 }
0x2f8b   : > { %v4045_v0 = vpop.permute.xlu1 %4044 }
0x2f8c   : > { %v3976_v56 = vmul.f32 1.442695, %v3972_v49  ;;  %v3978_v11 = vmul.f32 1.442695, %v3973_v6  ;;  %v3980_v61 = vmul.f32 1.442695, %v3974_v8 }
0x2f8d   : > { %v3982_v12 = vmul.f32 1.442695, %v3975_v54 }
0x2f8e   : > { %5246 = vpow2.f32 %v3976_v56 }
0x2f8f   : > { %5248 = vpow2.f32 %v3978_v11 }
0x2f90   : > { %5250 = vpow2.f32 %v3980_v61 }
0x2f91   : > { %5252 = vpow2.f32 %v3982_v12 }
0x2f9b   : > { %v5247_v58 = vpop.eup %5246 }
0x2f9c   : > { %v5249_v30 = vpop.eup %5248  ;;  %3989 = vperm.xlu0 %5055, %v5247_v58   ;;  %v4050_v51 = vmul.f32 %v5247_v58, %v4030_v23 }
0x2f9d   : > { %3992 = vperm.xlu1 %5054, %v5249_v30   ;;  %v5251_v18 = vpop.eup %5250  ;;  %v4051_v60 = vmul.f32 %v5249_v30, %v4034_v43 }
0x2f9e   : > { %v5253_v7 = vpop.eup %5252  ;;  %v4052_v13 = vmul.f32 %v5251_v18, %v4041_v37 }
0x2f9f   : > { %v4053_v14 = vmul.f32 %v5253_v7, %v4045_v0 }
0x2fa0   : > { %3995 = vperm.xlu0 %5055, %v5251_v18  }
0x2fa1   : > { %3998 = vperm.xlu1 %5054, %v5253_v7  }
0x2fa4   : > { %4056 = vperm.xlu0 %5055, %v4050_v51  }
0x2fa5   : > { %4061 = vperm.xlu1 %5054, %v4051_v60  }
0x2fa8   : > { %4066 = vperm.xlu0 %5055, %v4052_v13  }
0x2fa9   : > { %4071 = vperm.xlu1 %5054, %v4053_v14  }
0x3017   : > { %v3990_v52 = vpop.permute.xlu0 %3989 }
0x3018   : > { %v3993_v19 = vpop.permute.xlu1 %3992  ;;  %v4003_v32 = vrot.slane %v3990_v52, %v6045_v59 }
0x3019   : > { %v4007_v15 = vrot.slane %v3993_v19, %v6043_v57 }
0x301b   : > { %v3996_v10 = vpop.permute.xlu0 %3995  ;;  %v4008_v17 = vsel %vm817_vm2, %v4007_v15, %v4003_v32 }
0x301c   : > { %v3999_v34 = vpop.permute.xlu1 %3998  ;;  %v4012_v62 = vrot.slane %v3996_v10, %v6045_v59 }
0x301d   : > { %v4016_v63 = vrot.slane %v3999_v34, %v6043_v57 }
0x301f   : > { %v4057_v35 = vpop.permute.xlu0 %4056  ;;  %v4017_v36 = vsel %vm817_vm2, %v4016_v63, %v4012_v62 }
0x3020   : > { %v4062_v1 = vpop.permute.xlu1 %4061  ;;  %v4074_v9 = vmul.f32 %v4057_v35, %v6011_v25  ;;  %v4018_v53 = vsel %vm828_vm3, %v4017_v36, %v4008_v17  ;;  %v4099_v44 = vrot.slane %v4057_v35, %v6045_v59 }
0x3021   : > { %v4075_v20 = vmul.f32 %v6006_v21, %v4062_v1  ;;  %v4020_v22 = vsel %vm831_vm4, %v4018_v53, 0.0  ;;  %v4103_v29 = vrot.slane %v4062_v1, %v6043_v57 }
0x3022   : > { %v4078_v26 = vsel %vm952_vm5, %v4074_v9, 0.0  ;;  %4021 = vadd.xlane.f32.xlu0 %v4020_v22 }
0x3023   : > { %v4079_v50 = vsel %vm952_vm5, %v4075_v20, 0.0  ;;  %v4067_v27 = vpop.permute.xlu0 %4066  ;;  %v4104_v21 = vsel %vm817_vm2, %v4103_v29, %v4099_v44 }
0x3024   : > { %v4080_v39 = vadd.f32 %v4079_v50, %v4078_v26  ;;  %v4072_v40 = vpop.permute.xlu1 %4071  ;;  %v4108_v25 = vrot.slane %v4067_v27, %v6045_v59  ;;  %v4076_v59 = vmul.f32 %v4067_v27, %v6018_v31 }
0x3025   : > { %v4112_v41 = vrot.slane %v4072_v40, %v6043_v57  ;;  %v4077_v57 = vmul.f32 %v6014_v28, %v4072_v40 }
0x3026   : > { %v4087_v45 = vsel %vm952_vm5, %v4076_v59, 0.0  ;;  %v4081_v49 = vrot.slane %v4080_v39, 4 }
0x3027   : > { %v4113_v42 = vsel %vm817_vm2, %v4112_v41, %v4108_v25  ;;  %v4088_v37 = vsel %vm952_vm5, %v4077_v57, 0.0 }
0x3028   : > { %v4114_v38 = vsel %vm828_vm3, %v4113_v42, %v4104_v21  ;;  %v4089_v2 = vadd.f32 %v4088_v37, %v4087_v45  ;;  %v4082_v54 = vadd.f32 %v4081_v49, %v4080_v39 }
0x3029   : > { %v4116_v43 = vsel %vm831_vm4, %v4114_v38, 0.0 }
0x302a   : > { %4117 = vadd.xlane.f32.xlu1 %v4116_v43  ;;  %v4090_v48 = vrot.slane %v4089_v2, 4  ;;  %v4083_v28 = vrot.slane %v4082_v54, 2 }
0x302c   : > { %v4091_v8 = vadd.f32 %v4090_v48, %v4089_v2  ;;  %v4084_v61 = vadd.f32 %v4083_v28, %v4082_v54 }
0x302e   : > { %v4092_v56 = vrot.slane %v4091_v8, 2  ;;  %v4085_v30 = vrot.slane %v4084_v61, 1 }
0x3030   : > { %v4093_v31 = vadd.f32 %v4092_v56, %v4091_v8  ;;  %v4086_v60 = vadd.f32 %v4085_v30, %v4084_v61 }
0x3032   : > { %v4094_v58 = vrot.slane %v4093_v31, 1 }
0x3034   : > { %v4095_v7 = vadd.f32 %v4094_v58, %v4093_v31 }
0x303b   : > { %4135 = vrot.lane.b32.xlu1 %v6807_v4, %s5611_s5 }
0x303f   : > { %1573 = vrot.lane.b32.xlu1 %v6245_v55, %s5610_s27 }
0x3043   : > { %2463 = vrot.lane.b32.xlu1 %v6483_v24, %s5610_s27 }
0x3047   : > { %3353 = vrot.lane.b32.xlu1 %v6687_v16, %s5610_s27 }
0x30ab   : > { %v4022_v4 = vpop.xlane.xlu0 %4021 }
0x30ac   : > { %v4119_v55 = vmul.f32 1e-05, %v4022_v4 }
0x30b3   : > { %v4118_v6 = vpop.xlane.xlu1 %4117 }
0x30b4   : > { %v4120_v24 = vmax.f32 %v4118_v6, %v4119_v55 }
0x30b6   : > { %5254 = vrcp.f32 %v4120_v24 }
0x30b7   : > { %v4136_v16 = vpop.permute.xlu1 %4135 }
0x30bb   : > { %v1574_v11 = vpop.permute.xlu1 %1573 }
0x30bc   : > { %4522 = vst.msk [vmem:[%s6893_s25 + $0x2] sm:$0x3] %vm1126_vm7, %v1574_v11 }
0x30bf   : > { %v2464_v12 = vpop.permute.xlu1 %2463 }
0x30c0   : > { %4534 = vst.msk [vmem:[%s6893_s25 + $0x6] sm:$0x3] %vm1126_vm7, %v2464_v12 }
0x30c3   : > { %v5255_v18 = vpop.eup %5254  ;;  %v3354_v23 = vpop.permute.xlu1 %3353 }
0x30c4   : > { %4546 = vst.msk [vmem:[%s6893_s25 + $0xa] sm:$0x3] %vm1126_vm7, %v3354_v23  ;;  %v4123_v51 = vrot.slane %v5255_v18, 1  ;;  %v4126_v13 = vmul.f32 %v5255_v18, %v4086_v60 }
0x30c6   : > { %v4127_v0 = vmul.f32 %v4123_v51, %v4095_v7 }
0x30c8   : > { %v4130_v14 = vrot.slane %v4127_v0, 7 }
0x30ca   : > { %v4131_v52 = vsel %vm828_vm3, %v4130_v14, %v4126_v13 }
0x30cb   : > { %4132 = vrot.lane.b32.xlu0 %v4131_v52, %s5610_s27 }
0x30cf   : > { %1129 = vrot.lane.b32.xlu0 %v6139_v33, %s5610_s27 }
0x30d3   : > { %2018 = vrot.lane.b32.xlu0 %v6356_v3, %s5610_s27 }
0x30d7   : > { %2908 = vrot.lane.b32.xlu0 %v6588_v47, %s5610_s27 }
0x30db   : > { %3798 = vrot.lane.b32.xlu0 %v6803_v46, %s5610_s27 }
0x313d   : > { %v4133_v19 = vpop.permute.xlu0 %4132 }
0x313e   : > { %v4138_v15 = vsel %vm551_vm1, %v4133_v19, %v4136_v16 }
0x313f   : > { %4943 = vmatmul.mubr.msk.f32.vlgmr.msra.gmra.mxu1 %vm1020_vm6, %v4138_v15 }
0x3141   : > { %v1130_v32 = vpop.permute.xlu0 %1129 }
0x3142   : > { %1132 = vst.msk [vmem:[%s6893_s25] sm:$0x3] %vm1126_vm7, %v1130_v32 }
0x3145   : > { %v2019_v10 = vpop.permute.xlu0 %2018 }
0x3146   : > { %4528 = vst.msk [vmem:[%s6893_s25 + $0x4] sm:$0x3] %vm1126_vm7, %v2019_v10 }
0x3149   : > { %v2909_v33 = vpop.permute.xlu0 %2908 }
0x314a   : > { %4540 = vst.msk [vmem:[%s6893_s25 + $0x8] sm:$0x3] %vm1126_vm7, %v2909_v33 }
0x314d   : > { %v3799_v3 = vpop.permute.xlu0 %3798 }
0x314e   : > { %4552 = vst.msk [vmem:[%s6893_s25 + $0xc] sm:$0x3] %vm1126_vm7, %v3799_v3 }
0x31ff   : > { %v4208_v47 = vpop.f32.mrf.mxu1 }
0x3200   : > { %v4209_v34 = vadd.f32 %v6797_v5, %v4208_v47 }
0x3201   : > { %v4944_v62 = vpop.f32.mrf.mxu1 }
0x3202   : > { %5256 = vtanh.f32 %v4209_v34  ;;  %v4556_v35 = vmul.f32 -1.442695, %v4209_v34 }
0x3204   : > { %5258 = vpow2.f32 %v4556_v35 }
0x320f   : > { %v5257_v63 = vpop.eup %5256 }
0x3210   : > { %4221 = vrot.lane.b32.xlu1 %v5257_v63, %s5611_s5 }
0x3211   : > { %v5259_v17 = vpop.eup %5258 }
0x3212   : > { %v4215_v36 = vadd.f32 1.0, %v5259_v17 }
0x3214   : > { %5260 = vrcp.f32 %v4215_v36 }
0x3221   : > { %v5261_v1 = vpop.eup %5260 }
0x3222   : > { %v4219_v5 = vmul.f32 %v5261_v1, %v6803_v46 }
0x3282   : > { %v4222_v9 = vpop.permute.xlu1 %4221 }
0x3283   : > { %v4224_v53 = vmul.f32 %v5261_v1, %v4222_v9 }
0x3285   : > { %4226 = vrot.lane.b32.xlu0 %v4224_v53, %s5609_s26 }
0x32f7   : > { %v4227_v20 = vpop.permute.xlu0 %4226 }
0x32f8   : > { %v4229_v22 = vadd.f32 %v4227_v20, %v4219_v5 }
0x32fa   : > { %5262 = vtanh.f32 %v4229_v22 }
0x3307   : > { %v5263_v26 = vpop.eup %5262 }
0x3308   : > { %4232 = vrot.lane.b32.xlu1 %v5263_v26, %s5611_s5  ;;  %s5486_s5 = sshll.u32 %s5612_s20, 4  ;;  %s5487_s5 = int_to_ptr.vmem [resolvable:$false] %s5486_s5 }
0x3309   : > { %s5488_s7 = scalar_lea.vmem %s5487_s5, 512  ;;  %p5489_p0 = scmp.lt.s32.totalorder %s6929_s18, %s5487_s5 }
0x330a   : > { %p5490_p1 = scmp.lt.s32.totalorder %s5488_s7, %s5482_s10 }
0x330c   : > { %4243 = vrot.lane.b32.xlu1 %v4229_v22, %s5610_s27  ;;  %s4254_s27 = scalar_lea.sflag [#allocation16], %s5921_s23  ;;  %p5491_p6 = por %p5490_p1, %p5489_p0 }
0x330e   : > { %p5492_p12 = pnand %p5491_p6, %p5485_p11 }
0x337a   : > { %v4233_v50 = vpop.permute.xlu1 %4232 }
0x337b   : > { %v4235_v29 = vmul.f32 %v5261_v1, %v4233_v50 }
0x337d   : > { %4237 = vrot.lane.b32.xlu0 %v4235_v29, %s5609_s26 }
0x337e   : > { %v4244_v46 = vpop.permute.xlu1 %4243 }
0x337f   : > { %4558 = vst.msk [vmem:[%s6893_s25 + $0xe] sm:$0x3] %vm1126_vm7, %v4244_v46 }
0x3380   : > { %5495 = shalt.err (!%p5492_p12)
}
0x3381   : > { %s5496_s28 = scalar_lea.hbm %s6937_s13, 256  ;;  %s5500_s24 = scalar_lea.hbm %s7088_s19, 512 }
0x3382   : > { %p5497_p13 = scmp.ne.s32.totalorder %s6937_s13, %s5496_s28  ;;  %p5501_p5 = scmp.lt.s32.totalorder %s6937_s13, %s7088_s19 }
0x3383   : > { %p5502_p3 = scmp.lt.s32.totalorder %s5500_s24, %s5496_s28 }
0x3384   : > { %p5498_p10 = pnand %p5497_p13, %p7089_p4 }
0x3385   : > { %p5503_p7 = por %p5502_p3, %p5501_p5 }
0x3386   : > { %p5499_p9 = pneg %p5498_p10 }
0x3388   : > { %p5504_p2 = pnand %p5503_p7, %p5499_p9 }
0x338a   : > { %5507 = shalt.err (!%p5504_p2)
}
0x338b   : > { %s5613_s15 = smov 2   ;;  %s4267_s25 = sshll.u32 %s6148_s12, 4  ;;  %s6968_s25 = int_to_ptr.vmem [resolvable:$true] %s4267_s25 }
0x338c   : > { %4966 = dma.vmem_to_hbm [thread:$0]  (%p7089_p4), %s6929_s18, 256, %s6937_s13, %s4254_s27, %s5609_s26, %s5609_s26, %s5613_s15  }
0x338d   : > { %s7090_s10 = sld [smem:[#allocation33_spill]]  ;;  %s4249_s5 = scalar_lea.sflag [#allocation4], %s5921_s23 }
0x338e   : > { %s5508_s7 = scalar_lea.vmem %s6968_s25, 256  ;;  %s5614_s18 = smov [#allocation14]  }
0x338f   : > { %p5509_p8 = scmp.ne.s32.totalorder %s6968_s25, %s5508_s7  ;;  %s5512_s13 = sshll.u32 %s5614_s18, 4  ;;  %s5513_s13 = int_to_ptr.vmem [resolvable:$false] %s5512_s13 }
0x3390   : > { %s5514_s17 = scalar_lea.vmem %s5513_s13, 512  ;;  %p5515_p1 = scmp.lt.s32.totalorder %s6968_s25, %s5513_s13 }
0x3391   : > { %p5510_p11 = pnand %p5509_p8, %p7089_p4  ;;  %p5516_p6 = scmp.lt.s32.totalorder %s5514_s17, %s5508_s7 }
0x3393   : > { %s6975_s20 = scalar_lea.hbm %s7090_s10, %s4569_s1  ;;  %p5511_p0 = pneg %p5510_p11 }
0x3394   : > { %p5517_p12 = por %p5516_p6, %p5515_p1 }
0x3396   : > { %p5518_p13 = pnand %p5517_p12, %p5511_p0 }
0x33ef   : > { %v4238_v44 = vpop.permute.xlu0 %4237 }
0x33f0   : > { %4557 = vst.msk [vmem:[%s6148_s12 + $0xe] sm:$0x3] %vm1126_vm7, %v4238_v44 }
0x33f1   : > { %5521 = shalt.err (!%p5518_p13)
}
0x33f2   : > { %s5522_s12 = scalar_lea.hbm %s6975_s20, 256  ;;  %s5526_s27 = scalar_lea.hbm %s7090_s10, 512 }
0x33f3   : > { %p5523_p10 = scmp.ne.s32.totalorder %s6975_s20, %s5522_s12  ;;  %p5527_p3 = scmp.lt.s32.totalorder %s6975_s20, %s7090_s10 }
0x33f4   : > { %p5528_p7 = scmp.lt.s32.totalorder %s5526_s27, %s5522_s12 }
0x33f5   : > { %p5524_p9 = pnand %p5523_p10, %p7089_p4 }
0x33f6   : > { %p5529_p2 = por %p5528_p7, %p5527_p3 }
0x33f7   : > { %p5525_p5 = pneg %p5524_p9 }
0x33f9   : > { %p5530_p8 = pnand %p5529_p2, %p5525_p5 }
0x33fb   : > { %5533 = shalt.err (!%p5530_p8)
}
0x33fc   : > { %4965 = dma.vmem_to_hbm [thread:$0]  (%p7089_p4), %s6968_s25, 256, %s6975_s20, %s4249_s5, %s5609_s26, %s5609_s26, %s5613_s15  }
0x33fd PF: > { %s7091_s4 = sld [smem:[#allocation24_spill]]  ;;  %p7094_p0 = scmp.ge.s32.totalorder %s5592_s16, 2 }
0x33fe   : > { %s7092_s24 = sld [smem:[#allocation26_spill]] }
0x3403   : > { %s4298_s22 = sand.u32 1, %s7091_s4  }
0x3404   : > { %p7093_p11 = scmp.ne.s32.totalorder %s7092_s24, 0  ;;  %s4299_s21 = scalar_lea.sflag [#allocation4], %s4298_s22 }
0x3406   : > { %p4993_p1 = pnand %p7094_p0, %p7093_p11 }
0x3408   : > { %p4994_p6 = pneg %p4993_p1 }
0x340a   : > { %5571 = dma.done.wait (%p4994_p6), %s4299_s21, 256  }
0x340b   : > { %5573 = vsyncadd (%p4994_p6), %s4299_s21, 4294967040  ;;  %s4308_s11 = scalar_lea.sflag [#allocation16], %s4298_s22 }
0x340c   : > { %5575 = dma.done.wait (%p4994_p6), %s4308_s11, 256  }
0x340d   : > { %5577 = vsyncadd (%p4994_p6), %s4308_s11, 4294967040  ;;  %s7095_s16 = sld [smem:[#allocation27_spill]]  ;;  %s7098_s13 = smov %s5584_s14 }
0x340e   : > { %s7096_s30 = sld [smem:[#allocation25_spill]] }
0x340f   : > { %s7097_s15 = sld [smem:[#allocation28_spill]] }
0x3413   : > { %p34_p4 = scmp.ge.s32.totalorder %s7095_s16, 4  }
0x3414   : > { %s7099_s14 = smov %s7096_s30 }
0x3415   :  { %36 = sbr.rel (!%p34_p4) target bundleno = 19 (0x13), region = 188 }
0x341a   :  { %4313 = vsyncpa [#allocation3], 1 }
0x341b   :  { %4315 = vsyncpa [#allocation3 + $0x1], 1 }
0x341c   :  { %4316 = vsyncpa [#allocation6], 1 }
0x341d   :  { %4318 = vsyncpa [#allocation6 + $0x1], 1 }
0x341e   :  { %4319 = vsyncpa [#allocation9], 1 }
0x341f   :  { %4321 = vsyncpa [#allocation9 + $0x1], 1 }
0x3420   :  { %4322 = vsyncpa [#allocation12], 1 }
0x3421   :  { %4323 = vsyncpa [#allocation4], 1 }
0x3422   :  { %4325 = vsyncpa [#allocation4 + $0x1], 1 }
0x3423   :  { %4326 = vsyncpa [#allocation16], 1 }
0x3424   :  { %4328 = vsyncpa [#allocation16 + $0x1], 1 }

</bundles_post_ra>
